<compile_context>
chip_gen: v6e
topology: v6e:2x2x1
jax: 0.10.0
libtpu: 0.0.40
codegen_flags: <defaults>
</compile_context>

<pallas_src>
import functools

import jax
import jax.numpy as jnp
from jax.experimental import pallas as pl
from jax.experimental.pallas import tpu as pltpu


# ------------------------------ Pallas kernel -------------------------------

def _dcgan_fused_kernel(*refs, meta, tb, slope):
    """Whole DCGAN_D_nobn forward for TB samples, entirely in VMEM.

    refs = [x_ref, W_0, ..., W_{L-1}, out_ref,
            act_scr_0, ..., act_scr_{L-1},      # zero-padded activations (f32)
            patch_scr_0, ..., patch_scr_{L-1}]  # im2col patch matrices  (f32)

      x_ref : (TB, Hpad0*Wpad0, C0) f32  pre-padded, channels-last, row-major
      W_l   : (k*k*C_in, C_out)     bf16 pre-packed conv weights
      out   : (TB, 1, 1)            f32  final conv scalar per sample

    meta[l] = (k, s, p, cin, cout, hin, hpad, oh, use_act)  (static).
    """
    n_layers = len(meta)
    x_ref = refs[0]
    w_refs = refs[1:1 + n_layers]
    out_ref = refs[1 + n_layers]
    scr = refs[2 + n_layers:]
    act_scr = scr[:n_layers]
    patch_scr = scr[n_layers:]

    # Stage the (already zero-padded) input block into the layer-0 scratch so
    # every layer uses the same 2-D (spatial, C) read path.
    hpad0 = meta[0][6]
    spad0 = hpad0 * hpad0
    for b in range(tb):
        act_scr[0][b * spad0:(b + 1) * spad0, :] = x_ref[b, :, :]

    for l in range(n_layers):
        k, s, p, cin, cout, hin, hpad, oh_n, use_act = meta[l]
        spad = hpad * hpad
        m = oh_n * oh_n                      # output positions per sample
        src = act_scr[l]
        pr = patch_scr[l]

        # ---- im2col via direct (strided) VMEM reads -------------------------
        # patches layout: row = b*m + oh*OW + ow, col = (ki*k + kj)*cin + c
        for b in range(tb):
            for oh in range(oh_n):
                row0 = b * m + oh * oh_n
                for ki in range(k):
                    base = b * spad + (oh * s + ki) * hpad
                    for kj in range(k):
                        t = ki * k + kj
                        if s == 1:
                            v = src[pl.ds(base + kj, oh_n), :]
                        else:
                            v = src[pl.ds(base + kj, oh_n, stride=s), :]
                        pr[row0:row0 + oh_n, t * cin:(t + 1) * cin] = v

        # ---- one MXU matmul per layer: K = k*k*cin, bf16 x bf16 -> f32 ------
        acc = jnp.dot(pr[...].astype(jnp.bfloat16), w_refs[l][...],
                      preferred_element_type=jnp.float32)     # (tb*m, cout)

        if use_act:                                           # LeakyReLU on f32
            acc = jnp.where(acc >= 0.0, acc, slope * acc)

        if l + 1 < n_layers:
            # Scatter output rows into the next layer's zero-padded scratch.
            pnext = meta[l + 1][2]
            nhpad = meta[l + 1][6]
            nspad = nhpad * nhpad
            dst = act_scr[l + 1]
            if pnext > 0:
                dst[...] = jnp.zeros_like(dst)                # zero the border
            for b in range(tb):
                for oh in range(oh_n):
                    v = acc[b * m + oh * oh_n:b * m + (oh + 1) * oh_n, :]
                    start = b * nspad + (pnext + oh) * nhpad + pnext
                    dst[start:start + oh_n, :] = v
        else:
            # Final conv: m == 1, cout == 1 -> one scalar per sample.
            for b in range(tb):
                out_ref[b, :, :] = acc[b:b + 1, :]


# --------------------------- parameter construction -------------------------

def init_dcgan_d_params(key, isize, nc, ndf, n_extra_layers=0):
    """Deterministic weights + one-time packed (k*k*C_in, C_out) bf16 matrices."""
    assert isize % 16 == 0, "isize has to be a multiple of 16"
    convs = [(ndf, nc, 4, 2, 1, True)]                  # initial conv + LeakyReLU
    csize, cndf = isize // 2, ndf
    for _ in range(n_extra_layers):
        convs.append((cndf, cndf, 3, 1, 1, True))       # extra layers
    while csize > 4:
        convs.append((cndf * 2, cndf, 4, 2, 1, True))   # pyramid
        cndf *= 2
        csize //= 2
    convs.append((1, cndf, 4, 1, 0, False))             # final conv (no act)

    layers = []
    H = isize
    for (o, c, k, s, p, act) in convs:
        key, sub = jax.random.split(key)
        w = 0.02 * jax.random.normal(sub, (o, c, k, k), jnp.float32)
        # (O,C,kh,kw) -> (kh,kw,C,O) -> (k*k*C, O); column order matches the
        # in-kernel im2col layout  K-index = (ki*k + kj)*C + c.
        wm = jnp.transpose(w, (2, 3, 1, 0)).reshape(k * k * c, o).astype(jnp.bfloat16)
        OH = (H + 2 * p - k) // s + 1
        layers.append(dict(w=w, Wm=wm, k=k, stride=s, pad=p,
                           cin=c, cout=o, hin=H, oh=OH, act=act))
        H = OH
    return layers


# ------------------------------- forward pass -------------------------------

def dcgan_d_nobn_forward(params, x, tb=None):
    B, C, H, W = x.shape
    n_layers = len(params)
    assert H == W == params[0]["hin"] and C == params[0]["cin"]

    if tb is None:
        # Batch TB samples per grid step (bigger matmul M dim), but keep >= 2
        # grid steps so both v7x TensorCores get work (neutral on v5e/v6e).
        tb = B // 2 if (B % 2 == 0 and B >= 4) else 1
    assert B % tb == 0

    meta = []
    for layer in params:
        meta.append((layer["k"], layer["stride"], layer["pad"],
                     layer["cin"], layer["cout"], layer["hin"],
                     layer["hin"] + 2 * layer["pad"], layer["oh"],
                     bool(layer["act"])))

    p0 = meta[0][2]
    hpad0 = meta[0][6]
    # One-time layout plumbing in the wrapper (tiny tensor, cheap XLA ops):
    # NCHW -> zero-padded channels-last with flattened spatial (B, Hp*Wp, C).
    xp = jnp.pad(jnp.transpose(x, (0, 2, 3, 1)),
                 ((0, 0), (p0, p0), (p0, p0), (0, 0)))
    xp = xp.reshape(B, hpad0 * hpad0, C).astype(jnp.float32)

    in_specs = [pl.BlockSpec((tb, hpad0 * hpad0, C), lambda i: (i, 0, 0))]
    w_args = []
    for layer in params:
        wm = layer["Wm"]
        w_args.append(wm)
        # Full-array block with constant index_map -> weights stay resident.
        in_specs.append(pl.BlockSpec(wm.shape, lambda i: (0, 0)))

    scratch = []
    for (k, s, p, cin, cout, hin, hpad, oh, act) in meta:     # padded activations
        scratch.append(pltpu.VMEM((tb * hpad * hpad, cin), jnp.float32))
    for (k, s, p, cin, cout, hin, hpad, oh, act) in meta:     # im2col patches
        scratch.append(pltpu.VMEM((tb * oh * oh, k * k * cin), jnp.float32))

    flops = 2 * B * sum(oh * oh * k * k * cin * cout
                        for (k, s, p, cin, cout, hin, hpad, oh, act) in meta)
    bytes_accessed = int(xp.size) * 4 + sum(int(w.size) * 2 for w in w_args) + B * 4

    kern = functools.partial(_dcgan_fused_kernel, meta=tuple(meta), tb=tb, slope=0.2)

    per_sample = pl.pallas_call(
        kern,
        out_shape=jax.ShapeDtypeStruct((B, 1, 1), jnp.float32),
        grid=(B // tb,),
        in_specs=in_specs,
        out_specs=pl.BlockSpec((tb, 1, 1), lambda i: (i, 0, 0)),
        scratch_shapes=scratch,
        compiler_params=pltpu.CompilerParams(
            dimension_semantics=("parallel",),          # v7x: 2 TCs share batch
            vmem_limit_bytes=32 * 1024 * 1024),
        cost_estimate=pl.CostEstimate(flops=flops, transcendentals=0,
                                      bytes_accessed=bytes_accessed),
    )(xp, *w_args)

    # output.mean(0).view(1): mean of B scalars, kept outside the kernel so the
    # batch grid axis can remain "parallel".
    return jnp.mean(per_sample).reshape(1)


# --------------------------------- reference ---------------------------------

def _ref_forward(params, x):
    """Pure-JAX reference with matching bf16-operand / f32-accumulate rounding."""
    h = x
    for layer in params:
        hq = h.astype(jnp.bfloat16).astype(jnp.float32)
        wq = layer["w"].astype(jnp.bfloat16).astype(jnp.float32)
        s, p = layer["stride"], layer["pad"]
        h = jax.lax.conv_general_dilated(
            hq, wq, (s, s), [(p, p), (p, p)],
            dimension_numbers=("NCHW", "OIHW", "NCHW"),
            precision=jax.lax.Precision.HIGHEST)
        if layer["act"]:
            h = jnp.where(h >= 0.0, h, 0.2 * h)
    return jnp.mean(h, axis=0).reshape(1)


# ------------------------------------ main -----------------------------------

if __name__ == "__main__":
    # Module hyperparams consistent with the forward: isize=16, nc=4, ndf=8.
    isize, nc, ndf, n_extra = 16, 4, 8, 0
    B = 2

    key = jax.random.PRNGKey(0)
    kx, kw = jax.random.split(key)
    x = jax.random.normal(kx, (B, nc, isize, isize), jnp.float32)
    params = init_dcgan_d_params(kw, isize, nc, ndf, n_extra)

    out = jax.block_until_ready(dcgan_d_nobn_forward(params, x))
    ref = jax.block_until_ready(_ref_forward(params, x))

    assert out.shape == (1,), out.shape
    assert jnp.allclose(out, ref, rtol=5e-3, atol=2e-4), (out, ref)

    print("KERNEL_OK")
</pallas_src>

<mosaic_0001>
module attributes {stable_mosaic.version = 11 : i64} {
  func.func @_dcgan_fused_kernel(%arg0: i32, %arg1: memref<1x324x4xf32, #tpu.memory_space<vmem>>, %arg2: memref<64x8xbf16, #tpu.memory_space<vmem>>, %arg3: memref<128x16xbf16, #tpu.memory_space<vmem>>, %arg4: memref<256x1xbf16, #tpu.memory_space<vmem>>, %arg5: memref<1x1x1xf32, #tpu.memory_space<vmem>>, %arg6: memref<324x4xf32, #tpu.memory_space<vmem>>, %arg7: memref<100x8xf32, #tpu.memory_space<vmem>>, %arg8: memref<16x16xf32, #tpu.memory_space<vmem>>, %arg9: memref<64x64xf32, #tpu.memory_space<vmem>>, %arg10: memref<16x128xf32, #tpu.memory_space<vmem>>, %arg11: memref<1x256xf32, #tpu.memory_space<vmem>>) attributes {dimension_semantics = [#tpu.dimension_semantics<parallel>], iteration_bounds = array<i64: 2>, scalar_prefetch = 0 : i64, scratch_operands = 6 : i64, tpu.core_type = #tpu.core_type<tc>, window_params = [{transform_indices = @transform_0, window_bounds = array<i64: 1, 324, 4>}, {pipeline_mode = #tpu.pipeline_mode<synchronous>, transform_indices = @transform_1, window_bounds = array<i64: 64, 8>}, {pipeline_mode = #tpu.pipeline_mode<synchronous>, transform_indices = @transform_2, window_bounds = array<i64: 128, 16>}, {pipeline_mode = #tpu.pipeline_mode<synchronous>, transform_indices = @transform_3, window_bounds = array<i64: 256, 1>}, {transform_indices = @transform_4, window_bounds = array<i64: 1, 1, 1>}]} {
    %c0 = arith.constant 0 : index
    %c0_0 = arith.constant 0 : index
    %c0_1 = arith.constant 0 : index
    %0 = vector.load %arg1[%c0, %c0_0, %c0_1] : memref<1x324x4xf32, #tpu.memory_space<vmem>>, vector<1x324x4xf32>
    %1 = vector.shape_cast %0 : vector<1x324x4xf32> to vector<324x4xf32>
    %c0_2 = arith.constant 0 : index
    %c0_3 = arith.constant 0 : index
    %2 = vector.load %arg6[%c0_2, %c0_3] : memref<324x4xf32, #tpu.memory_space<vmem>>, vector<324x4xf32>
    tpu.vector_store %arg6[%c0_2, %c0_3], %1 {strides = array<i32>} : memref<324x4xf32, #tpu.memory_space<vmem>>, vector<324x4xf32>,
    %c0_4 = arith.constant 0 : index
    %c0_5 = arith.constant 0 : index
    %3 = tpu.strided_load %arg6[%c0_4, %c0_5] {strides = array<i32: 2, 1>} : memref<324x4xf32, #tpu.memory_space<vmem>>, vector<8x4xf32>
    %c0_6 = arith.constant 0 : index
    %c0_7 = arith.constant 0 : index
    %4 = vector.load %arg9[%c0_6, %c0_7] : memref<64x64xf32, #tpu.memory_space<vmem>>, vector<8x4xf32>
    tpu.vector_store %arg9[%c0_6, %c0_7], %3 {strides = array<i32>} : memref<64x64xf32, #tpu.memory_space<vmem>>, vector<8x4xf32>,
    %c1 = arith.constant 1 : index
    %c0_8 = arith.constant 0 : index
    %5 = tpu.strided_load %arg6[%c1, %c0_8] {strides = array<i32: 2, 1>} : memref<324x4xf32, #tpu.memory_space<vmem>>, vector<8x4xf32>
    %c0_9 = arith.constant 0 : index
    %c4 = arith.constant 4 : index
    %6 = vector.load %arg9[%c0_9, %c4] : memref<64x64xf32, #tpu.memory_space<vmem>>, vector<8x4xf32>
    tpu.vector_store %arg9[%c0_9, %c4], %5 {strides = array<i32>} : memref<64x64xf32, #tpu.memory_space<vmem>>, vector<8x4xf32>,
    %c2 = arith.constant 2 : index
    %c0_10 = arith.constant 0 : index
    %7 = tpu.strided_load %arg6[%c2, %c0_10] {strides = array<i32: 2, 1>} : memref<324x4xf32, #tpu.memory_space<vmem>>, vector<8x4xf32>
    %c0_11 = arith.constant 0 : index
    %c8 = arith.constant 8 : index
    %8 = vector.load %arg9[%c0_11, %c8] : memref<64x64xf32, #tpu.memory_space<vmem>>, vector<8x4xf32>
    tpu.vector_store %arg9[%c0_11, %c8], %7 {strides = array<i32>} : memref<64x64xf32, #tpu.memory_space<vmem>>, vector<8x4xf32>,
    %c3 = arith.constant 3 : index
    %c0_12 = arith.constant 0 : index
    %9 = tpu.strided_load %arg6[%c3, %c0_12] {strides = array<i32: 2, 1>} : memref<324x4xf32, #tpu.memory_space<vmem>>, vector<8x4xf32>
    %c0_13 = arith.constant 0 : index
    %c12 = arith.constant 12 : index
    %10 = vector.load %arg9[%c0_13, %c12] : memref<64x64xf32, #tpu.memory_space<vmem>>, vector<8x4xf32>
    tpu.vector_store %arg9[%c0_13, %c12], %9 {strides = array<i32>} : memref<64x64xf32, #tpu.memory_space<vmem>>, vector<8x4xf32>,
    %c18 = arith.constant 18 : index
    %c0_14 = arith.constant 0 : index
    %11 = tpu.strided_load %arg6[%c18, %c0_14] {strides = array<i32: 2, 1>} : memref<324x4xf32, #tpu.memory_space<vmem>>, vector<8x4xf32>
    %c0_15 = arith.constant 0 : index
    %c16 = arith.constant 16 : index
    %12 = vector.load %arg9[%c0_15, %c16] : memref<64x64xf32, #tpu.memory_space<vmem>>, vector<8x4xf32>
    tpu.vector_store %arg9[%c0_15, %c16], %11 {strides = array<i32>} : memref<64x64xf32, #tpu.memory_space<vmem>>, vector<8x4xf32>,
    %c19 = arith.constant 19 : index
    %c0_16 = arith.constant 0 : index
    %13 = tpu.strided_load %arg6[%c19, %c0_16] {strides = array<i32: 2, 1>} : memref<324x4xf32, #tpu.memory_space<vmem>>, vector<8x4xf32>
    %c0_17 = arith.constant 0 : index
    %c20 = arith.constant 20 : index
    %14 = vector.load %arg9[%c0_17, %c20] : memref<64x64xf32, #tpu.memory_space<vmem>>, vector<8x4xf32>
    tpu.vector_store %arg9[%c0_17, %c20], %13 {strides = array<i32>} : memref<64x64xf32, #tpu.memory_space<vmem>>, vector<8x4xf32>,
    %c20_18 = arith.constant 20 : index
    %c0_19 = arith.constant 0 : index
    %15 = tpu.strided_load %arg6[%c20_18, %c0_19] {strides = array<i32: 2, 1>} : memref<324x4xf32, #tpu.memory_space<vmem>>, vector<8x4xf32>
    %c0_20 = arith.constant 0 : index
    %c24 = arith.constant 24 : index
    %16 = vector.load %arg9[%c0_20, %c24] : memref<64x64xf32, #tpu.memory_space<vmem>>, vector<8x4xf32>
    tpu.vector_store %arg9[%c0_20, %c24], %15 {strides = array<i32>} : memref<64x64xf32, #tpu.memory_space<vmem>>, vector<8x4xf32>,
    %c21 = arith.constant 21 : index
    %c0_21 = arith.constant 0 : index
    %17 = tpu.strided_load %arg6[%c21, %c0_21] {strides = array<i32: 2, 1>} : memref<324x4xf32, #tpu.memory_space<vmem>>, vector<8x4xf32>
    %c0_22 = arith.constant 0 : index
    %c28 = arith.constant 28 : index
    %18 = vector.load %arg9[%c0_22, %c28] : memref<64x64xf32, #tpu.memory_space<vmem>>, vector<8x4xf32>
    tpu.vector_store %arg9[%c0_22, %c28], %17 {strides = array<i32>} : memref<64x64xf32, #tpu.memory_space<vmem>>, vector<8x4xf32>,
    %c36 = arith.constant 36 : index
    %c0_23 = arith.constant 0 : index
    %19 = tpu.strided_load %arg6[%c36, %c0_23] {strides = array<i32: 2, 1>} : memref<324x4xf32, #tpu.memory_space<vmem>>, vector<8x4xf32>
    %c0_24 = arith.constant 0 : index
    %c32 = arith.constant 32 : index
    %20 = vector.load %arg9[%c0_24, %c32] : memref<64x64xf32, #tpu.memory_space<vmem>>, vector<8x4xf32>
    tpu.vector_store %arg9[%c0_24, %c32], %19 {strides = array<i32>} : memref<64x64xf32, #tpu.memory_space<vmem>>, vector<8x4xf32>,
    %c37 = arith.constant 37 : index
    %c0_25 = arith.constant 0 : index
    %21 = tpu.strided_load %arg6[%c37, %c0_25] {strides = array<i32: 2, 1>} : memref<324x4xf32, #tpu.memory_space<vmem>>, vector<8x4xf32>
    %c0_26 = arith.constant 0 : index
    %c36_27 = arith.constant 36 : index
    %22 = vector.load %arg9[%c0_26, %c36_27] : memref<64x64xf32, #tpu.memory_space<vmem>>, vector<8x4xf32>
    tpu.vector_store %arg9[%c0_26, %c36_27], %21 {strides = array<i32>} : memref<64x64xf32, #tpu.memory_space<vmem>>, vector<8x4xf32>,
    %c38 = arith.constant 38 : index
    %c0_28 = arith.constant 0 : index
    %23 = tpu.strided_load %arg6[%c38, %c0_28] {strides = array<i32: 2, 1>} : memref<324x4xf32, #tpu.memory_space<vmem>>, vector<8x4xf32>
    %c0_29 = arith.constant 0 : index
    %c40 = arith.constant 40 : index
    %24 = vector.load %arg9[%c0_29, %c40] : memref<64x64xf32, #tpu.memory_space<vmem>>, vector<8x4xf32>
    tpu.vector_store %arg9[%c0_29, %c40], %23 {strides = array<i32>} : memref<64x64xf32, #tpu.memory_space<vmem>>, vector<8x4xf32>,
    %c39 = arith.constant 39 : index
    %c0_30 = arith.constant 0 : index
    %25 = tpu.strided_load %arg6[%c39, %c0_30] {strides = array<i32: 2, 1>} : memref<324x4xf32, #tpu.memory_space<vmem>>, vector<8x4xf32>
    %c0_31 = arith.constant 0 : index
    %c44 = arith.constant 44 : index
    %26 = vector.load %arg9[%c0_31, %c44] : memref<64x64xf32, #tpu.memory_space<vmem>>, vector<8x4xf32>
    tpu.vector_store %arg9[%c0_31, %c44], %25 {strides = array<i32>} : memref<64x64xf32, #tpu.memory_space<vmem>>, vector<8x4xf32>,
    %c54 = arith.constant 54 : index
    %c0_32 = arith.constant 0 : index
    %27 = tpu.strided_load %arg6[%c54, %c0_32] {strides = array<i32: 2, 1>} : memref<324x4xf32, #tpu.memory_space<vmem>>, vector<8x4xf32>
    %c0_33 = arith.constant 0 : index
    %c48 = arith.constant 48 : index
    %28 = vector.load %arg9[%c0_33, %c48] : memref<64x64xf32, #tpu.memory_space<vmem>>, vector<8x4xf32>
    tpu.vector_store %arg9[%c0_33, %c48], %27 {strides = array<i32>} : memref<64x64xf32, #tpu.memory_space<vmem>>, vector<8x4xf32>,
    %c55 = arith.constant 55 : index
    %c0_34 = arith.constant 0 : index
    %29 = tpu.strided_load %arg6[%c55, %c0_34] {strides = array<i32: 2, 1>} : memref<324x4xf32, #tpu.memory_space<vmem>>, vector<8x4xf32>
    %c0_35 = arith.constant 0 : index
    %c52 = arith.constant 52 : index
    %30 = vector.load %arg9[%c0_35, %c52] : memref<64x64xf32, #tpu.memory_space<vmem>>, vector<8x4xf32>
    tpu.vector_store %arg9[%c0_35, %c52], %29 {strides = array<i32>} : memref<64x64xf32, #tpu.memory_space<vmem>>, vector<8x4xf32>,
    %c56 = arith.constant 56 : index
    %c0_36 = arith.constant 0 : index
    %31 = tpu.strided_load %arg6[%c56, %c0_36] {strides = array<i32: 2, 1>} : memref<324x4xf32, #tpu.memory_space<vmem>>, vector<8x4xf32>
    %c0_37 = arith.constant 0 : index
    %c56_38 = arith.constant 56 : index
    %32 = vector.load %arg9[%c0_37, %c56_38] : memref<64x64xf32, #tpu.memory_space<vmem>>, vector<8x4xf32>
    tpu.vector_store %arg9[%c0_37, %c56_38], %31 {strides = array<i32>} : memref<64x64xf32, #tpu.memory_space<vmem>>, vector<8x4xf32>,
    %c57 = arith.constant 57 : index
    %c0_39 = arith.constant 0 : index
    %33 = tpu.strided_load %arg6[%c57, %c0_39] {strides = array<i32: 2, 1>} : memref<324x4xf32, #tpu.memory_space<vmem>>, vector<8x4xf32>
    %c0_40 = arith.constant 0 : index
    %c60 = arith.constant 60 : index
    %34 = vector.load %arg9[%c0_40, %c60] : memref<64x64xf32, #tpu.memory_space<vmem>>, vector<8x4xf32>
    tpu.vector_store %arg9[%c0_40, %c60], %33 {strides = array<i32>} : memref<64x64xf32, #tpu.memory_space<vmem>>, vector<8x4xf32>,
    %c36_41 = arith.constant 36 : index
    %c0_42 = arith.constant 0 : index
    %35 = tpu.strided_load %arg6[%c36_41, %c0_42] {strides = array<i32: 2, 1>} : memref<324x4xf32, #tpu.memory_space<vmem>>, vector<8x4xf32>
    %c8_43 = arith.constant 8 : index
    %c0_44 = arith.constant 0 : index
    %36 = vector.load %arg9[%c8_43, %c0_44] : memref<64x64xf32, #tpu.memory_space<vmem>>, vector<8x4xf32>
    tpu.vector_store %arg9[%c8_43, %c0_44], %35 {strides = array<i32>} : memref<64x64xf32, #tpu.memory_space<vmem>>, vector<8x4xf32>,
    %c37_45 = arith.constant 37 : index
    %c0_46 = arith.constant 0 : index
    %37 = tpu.strided_load %arg6[%c37_45, %c0_46] {strides = array<i32: 2, 1>} : memref<324x4xf32, #tpu.memory_space<vmem>>, vector<8x4xf32>
    %c8_47 = arith.constant 8 : index
    %c4_48 = arith.constant 4 : index
    %38 = vector.load %arg9[%c8_47, %c4_48] : memref<64x64xf32, #tpu.memory_space<vmem>>, vector<8x4xf32>
    tpu.vector_store %arg9[%c8_47, %c4_48], %37 {strides = array<i32>} : memref<64x64xf32, #tpu.memory_space<vmem>>, vector<8x4xf32>,
    %c38_49 = arith.constant 38 : index
    %c0_50 = arith.constant 0 : index
    %39 = tpu.strided_load %arg6[%c38_49, %c0_50] {strides = array<i32: 2, 1>} : memref<324x4xf32, #tpu.memory_space<vmem>>, vector<8x4xf32>
    %c8_51 = arith.constant 8 : index
    %c8_52 = arith.constant 8 : index
    %40 = vector.load %arg9[%c8_51, %c8_52] : memref<64x64xf32, #tpu.memory_space<vmem>>, vector<8x4xf32>
    tpu.vector_store %arg9[%c8_51, %c8_52], %39 {strides = array<i32>} : memref<64x64xf32, #tpu.memory_space<vmem>>, vector<8x4xf32>,
    %c39_53 = arith.constant 39 : index
    %c0_54 = arith.constant 0 : index
    %41 = tpu.strided_load %arg6[%c39_53, %c0_54] {strides = array<i32: 2, 1>} : memref<324x4xf32, #tpu.memory_space<vmem>>, vector<8x4xf32>
    %c8_55 = arith.constant 8 : index
    %c12_56 = arith.constant 12 : index
    %42 = vector.load %arg9[%c8_55, %c12_56] : memref<64x64xf32, #tpu.memory_space<vmem>>, vector<8x4xf32>
    tpu.vector_store %arg9[%c8_55, %c12_56], %41 {strides = array<i32>} : memref<64x64xf32, #tpu.memory_space<vmem>>, vector<8x4xf32>,
    %c54_57 = arith.constant 54 : index
    %c0_58 = arith.constant 0 : index
    %43 = tpu.strided_load %arg6[%c54_57, %c0_58] {strides = array<i32: 2, 1>} : memref<324x4xf32, #tpu.memory_space<vmem>>, vector<8x4xf32>
    %c8_59 = arith.constant 8 : index
    %c16_60 = arith.constant 16 : index
    %44 = vector.load %arg9[%c8_59, %c16_60] : memref<64x64xf32, #tpu.memory_space<vmem>>, vector<8x4xf32>
    tpu.vector_store %arg9[%c8_59, %c16_60], %43 {strides = array<i32>} : memref<64x64xf32, #tpu.memory_space<vmem>>, vector<8x4xf32>,
    %c55_61 = arith.constant 55 : index
    %c0_62 = arith.constant 0 : index
    %45 = tpu.strided_load %arg6[%c55_61, %c0_62] {strides = array<i32: 2, 1>} : memref<324x4xf32, #tpu.memory_space<vmem>>, vector<8x4xf32>
    %c8_63 = arith.constant 8 : index
    %c20_64 = arith.constant 20 : index
    %46 = vector.load %arg9[%c8_63, %c20_64] : memref<64x64xf32, #tpu.memory_space<vmem>>, vector<8x4xf32>
    tpu.vector_store %arg9[%c8_63, %c20_64], %45 {strides = array<i32>} : memref<64x64xf32, #tpu.memory_space<vmem>>, vector<8x4xf32>,
    %c56_65 = arith.constant 56 : index
    %c0_66 = arith.constant 0 : index
    %47 = tpu.strided_load %arg6[%c56_65, %c0_66] {strides = array<i32: 2, 1>} : memref<324x4xf32, #tpu.memory_space<vmem>>, vector<8x4xf32>
    %c8_67 = arith.constant 8 : index
    %c24_68 = arith.constant 24 : index
    %48 = vector.load %arg9[%c8_67, %c24_68] : memref<64x64xf32, #tpu.memory_space<vmem>>, vector<8x4xf32>
    tpu.vector_store %arg9[%c8_67, %c24_68], %47 {strides = array<i32>} : memref<64x64xf32, #tpu.memory_space<vmem>>, vector<8x4xf32>,
    %c57_69 = arith.constant 57 : index
    %c0_70 = arith.constant 0 : index
    %49 = tpu.strided_load %arg6[%c57_69, %c0_70] {strides = array<i32: 2, 1>} : memref<324x4xf32, #tpu.memory_space<vmem>>, vector<8x4xf32>
    %c8_71 = arith.constant 8 : index
    %c28_72 = arith.constant 28 : index
    %50 = vector.load %arg9[%c8_71, %c28_72] : memref<64x64xf32, #tpu.memory_space<vmem>>, vector<8x4xf32>
    tpu.vector_store %arg9[%c8_71, %c28_72], %49 {strides = array<i32>} : memref<64x64xf32, #tpu.memory_space<vmem>>, vector<8x4xf32>,
    %c72 = arith.constant 72 : index
    %c0_73 = arith.constant 0 : index
    %51 = tpu.strided_load %arg6[%c72, %c0_73] {strides = array<i32: 2, 1>} : memref<324x4xf32, #tpu.memory_space<vmem>>, vector<8x4xf32>
    %c8_74 = arith.constant 8 : index
    %c32_75 = arith.constant 32 : index
    %52 = vector.load %arg9[%c8_74, %c32_75] : memref<64x64xf32, #tpu.memory_space<vmem>>, vector<8x4xf32>
    tpu.vector_store %arg9[%c8_74, %c32_75], %51 {strides = array<i32>} : memref<64x64xf32, #tpu.memory_space<vmem>>, vector<8x4xf32>,
    %c73 = arith.constant 73 : index
    %c0_76 = arith.constant 0 : index
    %53 = tpu.strided_load %arg6[%c73, %c0_76] {strides = array<i32: 2, 1>} : memref<324x4xf32, #tpu.memory_space<vmem>>, vector<8x4xf32>
    %c8_77 = arith.constant 8 : index
    %c36_78 = arith.constant 36 : index
    %54 = vector.load %arg9[%c8_77, %c36_78] : memref<64x64xf32, #tpu.memory_space<vmem>>, vector<8x4xf32>
    tpu.vector_store %arg9[%c8_77, %c36_78], %53 {strides = array<i32>} : memref<64x64xf32, #tpu.memory_space<vmem>>, vector<8x4xf32>,
    %c74 = arith.constant 74 : index
    %c0_79 = arith.constant 0 : index
    %55 = tpu.strided_load %arg6[%c74, %c0_79] {strides = array<i32: 2, 1>} : memref<324x4xf32, #tpu.memory_space<vmem>>, vector<8x4xf32>
    %c8_80 = arith.constant 8 : index
    %c40_81 = arith.constant 40 : index
    %56 = vector.load %arg9[%c8_80, %c40_81] : memref<64x64xf32, #tpu.memory_space<vmem>>, vector<8x4xf32>
    tpu.vector_store %arg9[%c8_80, %c40_81], %55 {strides = array<i32>} : memref<64x64xf32, #tpu.memory_space<vmem>>, vector<8x4xf32>,
    %c75 = arith.constant 75 : index
    %c0_82 = arith.constant 0 : index
    %57 = tpu.strided_load %arg6[%c75, %c0_82] {strides = array<i32: 2, 1>} : memref<324x4xf32, #tpu.memory_space<vmem>>, vector<8x4xf32>
    %c8_83 = arith.constant 8 : index
    %c44_84 = arith.constant 44 : index
    %58 = vector.load %arg9[%c8_83, %c44_84] : memref<64x64xf32, #tpu.memory_space<vmem>>, vector<8x4xf32>
    tpu.vector_store %arg9[%c8_83, %c44_84], %57 {strides = array<i32>} : memref<64x64xf32, #tpu.memory_space<vmem>>, vector<8x4xf32>,
    %c90 = arith.constant 90 : index
    %c0_85 = arith.constant 0 : index
    %59 = tpu.strided_load %arg6[%c90, %c0_85] {strides = array<i32: 2, 1>} : memref<324x4xf32, #tpu.memory_space<vmem>>, vector<8x4xf32>
    %c8_86 = arith.constant 8 : index
    %c48_87 = arith.constant 48 : index
    %60 = vector.load %arg9[%c8_86, %c48_87] : memref<64x64xf32, #tpu.memory_space<vmem>>, vector<8x4xf32>
    tpu.vector_store %arg9[%c8_86, %c48_87], %59 {strides = array<i32>} : memref<64x64xf32, #tpu.memory_space<vmem>>, vector<8x4xf32>,
    %c91 = arith.constant 91 : index
    %c0_88 = arith.constant 0 : index
    %61 = tpu.strided_load %arg6[%c91, %c0_88] {strides = array<i32: 2, 1>} : memref<324x4xf32, #tpu.memory_space<vmem>>, vector<8x4xf32>
    %c8_89 = arith.constant 8 : index
    %c52_90 = arith.constant 52 : index
    %62 = vector.load %arg9[%c8_89, %c52_90] : memref<64x64xf32, #tpu.memory_space<vmem>>, vector<8x4xf32>
    tpu.vector_store %arg9[%c8_89, %c52_90], %61 {strides = array<i32>} : memref<64x64xf32, #tpu.memory_space<vmem>>, vector<8x4xf32>,
    %c92 = arith.constant 92 : index
    %c0_91 = arith.constant 0 : index
    %63 = tpu.strided_load %arg6[%c92, %c0_91] {strides = array<i32: 2, 1>} : memref<324x4xf32, #tpu.memory_space<vmem>>, vector<8x4xf32>
    %c8_92 = arith.constant 8 : index
    %c56_93 = arith.constant 56 : index
    %64 = vector.load %arg9[%c8_92, %c56_93] : memref<64x64xf32, #tpu.memory_space<vmem>>, vector<8x4xf32>
    tpu.vector_store %arg9[%c8_92, %c56_93], %63 {strides = array<i32>} : memref<64x64xf32, #tpu.memory_space<vmem>>, vector<8x4xf32>,
    %c93 = arith.constant 93 : index
    %c0_94 = arith.constant 0 : index
    %65 = tpu.strided_load %arg6[%c93, %c0_94] {strides = array<i32: 2, 1>} : memref<324x4xf32, #tpu.memory_space<vmem>>, vector<8x4xf32>
    %c8_95 = arith.constant 8 : index
    %c60_96 = arith.constant 60 : index
    %66 = vector.load %arg9[%c8_95, %c60_96] : memref<64x64xf32, #tpu.memory_space<vmem>>, vector<8x4xf32>
    tpu.vector_store %arg9[%c8_95, %c60_96], %65 {strides = array<i32>} : memref<64x64xf32, #tpu.memory_space<vmem>>, vector<8x4xf32>,
    %c72_97 = arith.constant 72 : index
    %c0_98 = arith.constant 0 : index
    %67 = tpu.strided_load %arg6[%c72_97, %c0_98] {strides = array<i32: 2, 1>} : memref<324x4xf32, #tpu.memory_space<vmem>>, vector<8x4xf32>
    %c16_99 = arith.constant 16 : index
    %c0_100 = arith.constant 0 : index
    %68 = vector.load %arg9[%c16_99, %c0_100] : memref<64x64xf32, #tpu.memory_space<vmem>>, vector<8x4xf32>
    tpu.vector_store %arg9[%c16_99, %c0_100], %67 {strides = array<i32>} : memref<64x64xf32, #tpu.memory_space<vmem>>, vector<8x4xf32>,
    %c73_101 = arith.constant 73 : index
    %c0_102 = arith.constant 0 : index
    %69 = tpu.strided_load %arg6[%c73_101, %c0_102] {strides = array<i32: 2, 1>} : memref<324x4xf32, #tpu.memory_space<vmem>>, vector<8x4xf32>
    %c16_103 = arith.constant 16 : index
    %c4_104 = arith.constant 4 : index
    %70 = vector.load %arg9[%c16_103, %c4_104] : memref<64x64xf32, #tpu.memory_space<vmem>>, vector<8x4xf32>
    tpu.vector_store %arg9[%c16_103, %c4_104], %69 {strides = array<i32>} : memref<64x64xf32, #tpu.memory_space<vmem>>, vector<8x4xf32>,
    %c74_105 = arith.constant 74 : index
    %c0_106 = arith.constant 0 : index
    %71 = tpu.strided_load %arg6[%c74_105, %c0_106] {strides = array<i32: 2, 1>} : memref<324x4xf32, #tpu.memory_space<vmem>>, vector<8x4xf32>
    %c16_107 = arith.constant 16 : index
    %c8_108 = arith.constant 8 : index
    %72 = vector.load %arg9[%c16_107, %c8_108] : memref<64x64xf32, #tpu.memory_space<vmem>>, vector<8x4xf32>
    tpu.vector_store %arg9[%c16_107, %c8_108], %71 {strides = array<i32>} : memref<64x64xf32, #tpu.memory_space<vmem>>, vector<8x4xf32>,
    %c75_109 = arith.constant 75 : index
    %c0_110 = arith.constant 0 : index
    %73 = tpu.strided_load %arg6[%c75_109, %c0_110] {strides = array<i32: 2, 1>} : memref<324x4xf32, #tpu.memory_space<vmem>>, vector<8x4xf32>
    %c16_111 = arith.constant 16 : index
    %c12_112 = arith.constant 12 : index
    %74 = vector.load %arg9[%c16_111, %c12_112] : memref<64x64xf32, #tpu.memory_space<vmem>>, vector<8x4xf32>
    tpu.vector_store %arg9[%c16_111, %c12_112], %73 {strides = array<i32>} : memref<64x64xf32, #tpu.memory_space<vmem>>, vector<8x4xf32>,
    %c90_113 = arith.constant 90 : index
    %c0_114 = arith.constant 0 : index
    %75 = tpu.strided_load %arg6[%c90_113, %c0_114] {strides = array<i32: 2, 1>} : memref<324x4xf32, #tpu.memory_space<vmem>>, vector<8x4xf32>
    %c16_115 = arith.constant 16 : index
    %c16_116 = arith.constant 16 : index
    %76 = vector.load %arg9[%c16_115, %c16_116] : memref<64x64xf32, #tpu.memory_space<vmem>>, vector<8x4xf32>
    tpu.vector_store %arg9[%c16_115, %c16_116], %75 {strides = array<i32>} : memref<64x64xf32, #tpu.memory_space<vmem>>, vector<8x4xf32>,
    %c91_117 = arith.constant 91 : index
    %c0_118 = arith.constant 0 : index
    %77 = tpu.strided_load %arg6[%c91_117, %c0_118] {strides = array<i32: 2, 1>} : memref<324x4xf32, #tpu.memory_space<vmem>>, vector<8x4xf32>
    %c16_119 = arith.constant 16 : index
    %c20_120 = arith.constant 20 : index
    %78 = vector.load %arg9[%c16_119, %c20_120] : memref<64x64xf32, #tpu.memory_space<vmem>>, vector<8x4xf32>
    tpu.vector_store %arg9[%c16_119, %c20_120], %77 {strides = array<i32>} : memref<64x64xf32, #tpu.memory_space<vmem>>, vector<8x4xf32>,
    %c92_121 = arith.constant 92 : index
    %c0_122 = arith.constant 0 : index
    %79 = tpu.strided_load %arg6[%c92_121, %c0_122] {strides = array<i32: 2, 1>} : memref<324x4xf32, #tpu.memory_space<vmem>>, vector<8x4xf32>
    %c16_123 = arith.constant 16 : index
    %c24_124 = arith.constant 24 : index
    %80 = vector.load %arg9[%c16_123, %c24_124] : memref<64x64xf32, #tpu.memory_space<vmem>>, vector<8x4xf32>
    tpu.vector_store %arg9[%c16_123, %c24_124], %79 {strides = array<i32>} : memref<64x64xf32, #tpu.memory_space<vmem>>, vector<8x4xf32>,
    %c93_125 = arith.constant 93 : index
    %c0_126 = arith.constant 0 : index
    %81 = tpu.strided_load %arg6[%c93_125, %c0_126] {strides = array<i32: 2, 1>} : memref<324x4xf32, #tpu.memory_space<vmem>>, vector<8x4xf32>
    %c16_127 = arith.constant 16 : index
    %c28_128 = arith.constant 28 : index
    %82 = vector.load %arg9[%c16_127, %c28_128] : memref<64x64xf32, #tpu.memory_space<vmem>>, vector<8x4xf32>
    tpu.vector_store %arg9[%c16_127, %c28_128], %81 {strides = array<i32>} : memref<64x64xf32, #tpu.memory_space<vmem>>, vector<8x4xf32>,
    %c108 = arith.constant 108 : index
    %c0_129 = arith.constant 0 : index
    %83 = tpu.strided_load %arg6[%c108, %c0_129] {strides = array<i32: 2, 1>} : memref<324x4xf32, #tpu.memory_space<vmem>>, vector<8x4xf32>
    %c16_130 = arith.constant 16 : index
    %c32_131 = arith.constant 32 : index
    %84 = vector.load %arg9[%c16_130, %c32_131] : memref<64x64xf32, #tpu.memory_space<vmem>>, vector<8x4xf32>
    tpu.vector_store %arg9[%c16_130, %c32_131], %83 {strides = array<i32>} : memref<64x64xf32, #tpu.memory_space<vmem>>, vector<8x4xf32>,
    %c109 = arith.constant 109 : index
    %c0_132 = arith.constant 0 : index
    %85 = tpu.strided_load %arg6[%c109, %c0_132] {strides = array<i32: 2, 1>} : memref<324x4xf32, #tpu.memory_space<vmem>>, vector<8x4xf32>
    %c16_133 = arith.constant 16 : index
    %c36_134 = arith.constant 36 : index
    %86 = vector.load %arg9[%c16_133, %c36_134] : memref<64x64xf32, #tpu.memory_space<vmem>>, vector<8x4xf32>
    tpu.vector_store %arg9[%c16_133, %c36_134], %85 {strides = array<i32>} : memref<64x64xf32, #tpu.memory_space<vmem>>, vector<8x4xf32>,
    %c110 = arith.constant 110 : index
    %c0_135 = arith.constant 0 : index
    %87 = tpu.strided_load %arg6[%c110, %c0_135] {strides = array<i32: 2, 1>} : memref<324x4xf32, #tpu.memory_space<vmem>>, vector<8x4xf32>
    %c16_136 = arith.constant 16 : index
    %c40_137 = arith.constant 40 : index
    %88 = vector.load %arg9[%c16_136, %c40_137] : memref<64x64xf32, #tpu.memory_space<vmem>>, vector<8x4xf32>
    tpu.vector_store %arg9[%c16_136, %c40_137], %87 {strides = array<i32>} : memref<64x64xf32, #tpu.memory_space<vmem>>, vector<8x4xf32>,
    %c111 = arith.constant 111 : index
    %c0_138 = arith.constant 0 : index
    %89 = tpu.strided_load %arg6[%c111, %c0_138] {strides = array<i32: 2, 1>} : memref<324x4xf32, #tpu.memory_space<vmem>>, vector<8x4xf32>
    %c16_139 = arith.constant 16 : index
    %c44_140 = arith.constant 44 : index
    %90 = vector.load %arg9[%c16_139, %c44_140] : memref<64x64xf32, #tpu.memory_space<vmem>>, vector<8x4xf32>
    tpu.vector_store %arg9[%c16_139, %c44_140], %89 {strides = array<i32>} : memref<64x64xf32, #tpu.memory_space<vmem>>, vector<8x4xf32>,
    %c126 = arith.constant 126 : index
    %c0_141 = arith.constant 0 : index
    %91 = tpu.strided_load %arg6[%c126, %c0_141] {strides = array<i32: 2, 1>} : memref<324x4xf32, #tpu.memory_space<vmem>>, vector<8x4xf32>
    %c16_142 = arith.constant 16 : index
    %c48_143 = arith.constant 48 : index
    %92 = vector.load %arg9[%c16_142, %c48_143] : memref<64x64xf32, #tpu.memory_space<vmem>>, vector<8x4xf32>
    tpu.vector_store %arg9[%c16_142, %c48_143], %91 {strides = array<i32>} : memref<64x64xf32, #tpu.memory_space<vmem>>, vector<8x4xf32>,
    %c127 = arith.constant 127 : index
    %c0_144 = arith.constant 0 : index
    %93 = tpu.strided_load %arg6[%c127, %c0_144] {strides = array<i32: 2, 1>} : memref<324x4xf32, #tpu.memory_space<vmem>>, vector<8x4xf32>
    %c16_145 = arith.constant 16 : index
    %c52_146 = arith.constant 52 : index
    %94 = vector.load %arg9[%c16_145, %c52_146] : memref<64x64xf32, #tpu.memory_space<vmem>>, vector<8x4xf32>
    tpu.vector_store %arg9[%c16_145, %c52_146], %93 {strides = array<i32>} : memref<64x64xf32, #tpu.memory_space<vmem>>, vector<8x4xf32>,
    %c128 = arith.constant 128 : index
    %c0_147 = arith.constant 0 : index
    %95 = tpu.strided_load %arg6[%c128, %c0_147] {strides = array<i32: 2, 1>} : memref<324x4xf32, #tpu.memory_space<vmem>>, vector<8x4xf32>
    %c16_148 = arith.constant 16 : index
    %c56_149 = arith.constant 56 : index
    %96 = vector.load %arg9[%c16_148, %c56_149] : memref<64x64xf32, #tpu.memory_space<vmem>>, vector<8x4xf32>
    tpu.vector_store %arg9[%c16_148, %c56_149], %95 {strides = array<i32>} : memref<64x64xf32, #tpu.memory_space<vmem>>, vector<8x4xf32>,
    %c129 = arith.constant 129 : index
    %c0_150 = arith.constant 0 : index
    %97 = tpu.strided_load %arg6[%c129, %c0_150] {strides = array<i32: 2, 1>} : memref<324x4xf32, #tpu.memory_space<vmem>>, vector<8x4xf32>
    %c16_151 = arith.constant 16 : index
    %c60_152 = arith.constant 60 : index
    %98 = vector.load %arg9[%c16_151, %c60_152] : memref<64x64xf32, #tpu.memory_space<vmem>>, vector<8x4xf32>
    tpu.vector_store %arg9[%c16_151, %c60_152], %97 {strides = array<i32>} : memref<64x64xf32, #tpu.memory_space<vmem>>, vector<8x4xf32>,
    %c108_153 = arith.constant 108 : index
    %c0_154 = arith.constant 0 : index
    %99 = tpu.strided_load %arg6[%c108_153, %c0_154] {strides = array<i32: 2, 1>} : memref<324x4xf32, #tpu.memory_space<vmem>>, vector<8x4xf32>
    %c24_155 = arith.constant 24 : index
    %c0_156 = arith.constant 0 : index
    %100 = vector.load %arg9[%c24_155, %c0_156] : memref<64x64xf32, #tpu.memory_space<vmem>>, vector<8x4xf32>
    tpu.vector_store %arg9[%c24_155, %c0_156], %99 {strides = array<i32>} : memref<64x64xf32, #tpu.memory_space<vmem>>, vector<8x4xf32>,
    %c109_157 = arith.constant 109 : index
    %c0_158 = arith.constant 0 : index
    %101 = tpu.strided_load %arg6[%c109_157, %c0_158] {strides = array<i32: 2, 1>} : memref<324x4xf32, #tpu.memory_space<vmem>>, vector<8x4xf32>
    %c24_159 = arith.constant 24 : index
    %c4_160 = arith.constant 4 : index
    %102 = vector.load %arg9[%c24_159, %c4_160] : memref<64x64xf32, #tpu.memory_space<vmem>>, vector<8x4xf32>
    tpu.vector_store %arg9[%c24_159, %c4_160], %101 {strides = array<i32>} : memref<64x64xf32, #tpu.memory_space<vmem>>, vector<8x4xf32>,
    %c110_161 = arith.constant 110 : index
    %c0_162 = arith.constant 0 : index
    %103 = tpu.strided_load %arg6[%c110_161, %c0_162] {strides = array<i32: 2, 1>} : memref<324x4xf32, #tpu.memory_space<vmem>>, vector<8x4xf32>
    %c24_163 = arith.constant 24 : index
    %c8_164 = arith.constant 8 : index
    %104 = vector.load %arg9[%c24_163, %c8_164] : memref<64x64xf32, #tpu.memory_space<vmem>>, vector<8x4xf32>
    tpu.vector_store %arg9[%c24_163, %c8_164], %103 {strides = array<i32>} : memref<64x64xf32, #tpu.memory_space<vmem>>, vector<8x4xf32>,
    %c111_165 = arith.constant 111 : index
    %c0_166 = arith.constant 0 : index
    %105 = tpu.strided_load %arg6[%c111_165, %c0_166] {strides = array<i32: 2, 1>} : memref<324x4xf32, #tpu.memory_space<vmem>>, vector<8x4xf32>
    %c24_167 = arith.constant 24 : index
    %c12_168 = arith.constant 12 : index
    %106 = vector.load %arg9[%c24_167, %c12_168] : memref<64x64xf32, #tpu.memory_space<vmem>>, vector<8x4xf32>
    tpu.vector_store %arg9[%c24_167, %c12_168], %105 {strides = array<i32>} : memref<64x64xf32, #tpu.memory_space<vmem>>, vector<8x4xf32>,
    %c126_169 = arith.constant 126 : index
    %c0_170 = arith.constant 0 : index
    %107 = tpu.strided_load %arg6[%c126_169, %c0_170] {strides = array<i32: 2, 1>} : memref<324x4xf32, #tpu.memory_space<vmem>>, vector<8x4xf32>
    %c24_171 = arith.constant 24 : index
    %c16_172 = arith.constant 16 : index
    %108 = vector.load %arg9[%c24_171, %c16_172] : memref<64x64xf32, #tpu.memory_space<vmem>>, vector<8x4xf32>
    tpu.vector_store %arg9[%c24_171, %c16_172], %107 {strides = array<i32>} : memref<64x64xf32, #tpu.memory_space<vmem>>, vector<8x4xf32>,
    %c127_173 = arith.constant 127 : index
    %c0_174 = arith.constant 0 : index
    %109 = tpu.strided_load %arg6[%c127_173, %c0_174] {strides = array<i32: 2, 1>} : memref<324x4xf32, #tpu.memory_space<vmem>>, vector<8x4xf32>
    %c24_175 = arith.constant 24 : index
    %c20_176 = arith.constant 20 : index
    %110 = vector.load %arg9[%c24_175, %c20_176] : memref<64x64xf32, #tpu.memory_space<vmem>>, vector<8x4xf32>
    tpu.vector_store %arg9[%c24_175, %c20_176], %109 {strides = array<i32>} : memref<64x64xf32, #tpu.memory_space<vmem>>, vector<8x4xf32>,
    %c128_177 = arith.constant 128 : index
    %c0_178 = arith.constant 0 : index
    %111 = tpu.strided_load %arg6[%c128_177, %c0_178] {strides = array<i32: 2, 1>} : memref<324x4xf32, #tpu.memory_space<vmem>>, vector<8x4xf32>
    %c24_179 = arith.constant 24 : index
    %c24_180 = arith.constant 24 : index
    %112 = vector.load %arg9[%c24_179, %c24_180] : memref<64x64xf32, #tpu.memory_space<vmem>>, vector<8x4xf32>
    tpu.vector_store %arg9[%c24_179, %c24_180], %111 {strides = array<i32>} : memref<64x64xf32, #tpu.memory_space<vmem>>, vector<8x4xf32>,
    %c129_181 = arith.constant 129 : index
    %c0_182 = arith.constant 0 : index
    %113 = tpu.strided_load %arg6[%c129_181, %c0_182] {strides = array<i32: 2, 1>} : memref<324x4xf32, #tpu.memory_space<vmem>>, vector<8x4xf32>
    %c24_183 = arith.constant 24 : index
    %c28_184 = arith.constant 28 : index
    %114 = vector.load %arg9[%c24_183, %c28_184] : memref<64x64xf32, #tpu.memory_space<vmem>>, vector<8x4xf32>
    tpu.vector_store %arg9[%c24_183, %c28_184], %113 {strides = array<i32>} : memref<64x64xf32, #tpu.memory_space<vmem>>, vector<8x4xf32>,
    %c144 = arith.constant 144 : index
    %c0_185 = arith.constant 0 : index
    %115 = tpu.strided_load %arg6[%c144, %c0_185] {strides = array<i32: 2, 1>} : memref<324x4xf32, #tpu.memory_space<vmem>>, vector<8x4xf32>
    %c24_186 = arith.constant 24 : index
    %c32_187 = arith.constant 32 : index
    %116 = vector.load %arg9[%c24_186, %c32_187] : memref<64x64xf32, #tpu.memory_space<vmem>>, vector<8x4xf32>
    tpu.vector_store %arg9[%c24_186, %c32_187], %115 {strides = array<i32>} : memref<64x64xf32, #tpu.memory_space<vmem>>, vector<8x4xf32>,
    %c145 = arith.constant 145 : index
    %c0_188 = arith.constant 0 : index
    %117 = tpu.strided_load %arg6[%c145, %c0_188] {strides = array<i32: 2, 1>} : memref<324x4xf32, #tpu.memory_space<vmem>>, vector<8x4xf32>
    %c24_189 = arith.constant 24 : index
    %c36_190 = arith.constant 36 : index
    %118 = vector.load %arg9[%c24_189, %c36_190] : memref<64x64xf32, #tpu.memory_space<vmem>>, vector<8x4xf32>
    tpu.vector_store %arg9[%c24_189, %c36_190], %117 {strides = array<i32>} : memref<64x64xf32, #tpu.memory_space<vmem>>, vector<8x4xf32>,
    %c146 = arith.constant 146 : index
    %c0_191 = arith.constant 0 : index
    %119 = tpu.strided_load %arg6[%c146, %c0_191] {strides = array<i32: 2, 1>} : memref<324x4xf32, #tpu.memory_space<vmem>>, vector<8x4xf32>
    %c24_192 = arith.constant 24 : index
    %c40_193 = arith.constant 40 : index
    %120 = vector.load %arg9[%c24_192, %c40_193] : memref<64x64xf32, #tpu.memory_space<vmem>>, vector<8x4xf32>
    tpu.vector_store %arg9[%c24_192, %c40_193], %119 {strides = array<i32>} : memref<64x64xf32, #tpu.memory_space<vmem>>, vector<8x4xf32>,
    %c147 = arith.constant 147 : index
    %c0_194 = arith.constant 0 : index
    %121 = tpu.strided_load %arg6[%c147, %c0_194] {strides = array<i32: 2, 1>} : memref<324x4xf32, #tpu.memory_space<vmem>>, vector<8x4xf32>
    %c24_195 = arith.constant 24 : index
    %c44_196 = arith.constant 44 : index
    %122 = vector.load %arg9[%c24_195, %c44_196] : memref<64x64xf32, #tpu.memory_space<vmem>>, vector<8x4xf32>
    tpu.vector_store %arg9[%c24_195, %c44_196], %121 {strides = array<i32>} : memref<64x64xf32, #tpu.memory_space<vmem>>, vector<8x4xf32>,
    %c162 = arith.constant 162 : index
    %c0_197 = arith.constant 0 : index
    %123 = tpu.strided_load %arg6[%c162, %c0_197] {strides = array<i32: 2, 1>} : memref<324x4xf32, #tpu.memory_space<vmem>>, vector<8x4xf32>
    %c24_198 = arith.constant 24 : index
    %c48_199 = arith.constant 48 : index
    %124 = vector.load %arg9[%c24_198, %c48_199] : memref<64x64xf32, #tpu.memory_space<vmem>>, vector<8x4xf32>
    tpu.vector_store %arg9[%c24_198, %c48_199], %123 {strides = array<i32>} : memref<64x64xf32, #tpu.memory_space<vmem>>, vector<8x4xf32>,
    %c163 = arith.constant 163 : index
    %c0_200 = arith.constant 0 : index
    %125 = tpu.strided_load %arg6[%c163, %c0_200] {strides = array<i32: 2, 1>} : memref<324x4xf32, #tpu.memory_space<vmem>>, vector<8x4xf32>
    %c24_201 = arith.constant 24 : index
    %c52_202 = arith.constant 52 : index
    %126 = vector.load %arg9[%c24_201, %c52_202] : memref<64x64xf32, #tpu.memory_space<vmem>>, vector<8x4xf32>
    tpu.vector_store %arg9[%c24_201, %c52_202], %125 {strides = array<i32>} : memref<64x64xf32, #tpu.memory_space<vmem>>, vector<8x4xf32>,
    %c164 = arith.constant 164 : index
    %c0_203 = arith.constant 0 : index
    %127 = tpu.strided_load %arg6[%c164, %c0_203] {strides = array<i32: 2, 1>} : memref<324x4xf32, #tpu.memory_space<vmem>>, vector<8x4xf32>
    %c24_204 = arith.constant 24 : index
    %c56_205 = arith.constant 56 : index
    %128 = vector.load %arg9[%c24_204, %c56_205] : memref<64x64xf32, #tpu.memory_space<vmem>>, vector<8x4xf32>
    tpu.vector_store %arg9[%c24_204, %c56_205], %127 {strides = array<i32>} : memref<64x64xf32, #tpu.memory_space<vmem>>, vector<8x4xf32>,
    %c165 = arith.constant 165 : index
    %c0_206 = arith.constant 0 : index
    %129 = tpu.strided_load %arg6[%c165, %c0_206] {strides = array<i32: 2, 1>} : memref<324x4xf32, #tpu.memory_space<vmem>>, vector<8x4xf32>
    %c24_207 = arith.constant 24 : index
    %c60_208 = arith.constant 60 : index
    %130 = vector.load %arg9[%c24_207, %c60_208] : memref<64x64xf32, #tpu.memory_space<vmem>>, vector<8x4xf32>
    tpu.vector_store %arg9[%c24_207, %c60_208], %129 {strides = array<i32>} : memref<64x64xf32, #tpu.memory_space<vmem>>, vector<8x4xf32>,
    %c144_209 = arith.constant 144 : index
    %c0_210 = arith.constant 0 : index
    %131 = tpu.strided_load %arg6[%c144_209, %c0_210] {strides = array<i32: 2, 1>} : memref<324x4xf32, #tpu.memory_space<vmem>>, vector<8x4xf32>
    %c32_211 = arith.constant 32 : index
    %c0_212 = arith.constant 0 : index
    %132 = vector.load %arg9[%c32_211, %c0_212] : memref<64x64xf32, #tpu.memory_space<vmem>>, vector<8x4xf32>
    tpu.vector_store %arg9[%c32_211, %c0_212], %131 {strides = array<i32>} : memref<64x64xf32, #tpu.memory_space<vmem>>, vector<8x4xf32>,
    %c145_213 = arith.constant 145 : index
    %c0_214 = arith.constant 0 : index
    %133 = tpu.strided_load %arg6[%c145_213, %c0_214] {strides = array<i32: 2, 1>} : memref<324x4xf32, #tpu.memory_space<vmem>>, vector<8x4xf32>
    %c32_215 = arith.constant 32 : index
    %c4_216 = arith.constant 4 : index
    %134 = vector.load %arg9[%c32_215, %c4_216] : memref<64x64xf32, #tpu.memory_space<vmem>>, vector<8x4xf32>
    tpu.vector_store %arg9[%c32_215, %c4_216], %133 {strides = array<i32>} : memref<64x64xf32, #tpu.memory_space<vmem>>, vector<8x4xf32>,
    %c146_217 = arith.constant 146 : index
    %c0_218 = arith.constant 0 : index
    %135 = tpu.strided_load %arg6[%c146_217, %c0_218] {strides = array<i32: 2, 1>} : memref<324x4xf32, #tpu.memory_space<vmem>>, vector<8x4xf32>
    %c32_219 = arith.constant 32 : index
    %c8_220 = arith.constant 8 : index
    %136 = vector.load %arg9[%c32_219, %c8_220] : memref<64x64xf32, #tpu.memory_space<vmem>>, vector<8x4xf32>
    tpu.vector_store %arg9[%c32_219, %c8_220], %135 {strides = array<i32>} : memref<64x64xf32, #tpu.memory_space<vmem>>, vector<8x4xf32>,
    %c147_221 = arith.constant 147 : index
    %c0_222 = arith.constant 0 : index
    %137 = tpu.strided_load %arg6[%c147_221, %c0_222] {strides = array<i32: 2, 1>} : memref<324x4xf32, #tpu.memory_space<vmem>>, vector<8x4xf32>
    %c32_223 = arith.constant 32 : index
    %c12_224 = arith.constant 12 : index
    %138 = vector.load %arg9[%c32_223, %c12_224] : memref<64x64xf32, #tpu.memory_space<vmem>>, vector<8x4xf32>
    tpu.vector_store %arg9[%c32_223, %c12_224], %137 {strides = array<i32>} : memref<64x64xf32, #tpu.memory_space<vmem>>, vector<8x4xf32>,
    %c162_225 = arith.constant 162 : index
    %c0_226 = arith.constant 0 : index
    %139 = tpu.strided_load %arg6[%c162_225, %c0_226] {strides = array<i32: 2, 1>} : memref<324x4xf32, #tpu.memory_space<vmem>>, vector<8x4xf32>
    %c32_227 = arith.constant 32 : index
    %c16_228 = arith.constant 16 : index
    %140 = vector.load %arg9[%c32_227, %c16_228] : memref<64x64xf32, #tpu.memory_space<vmem>>, vector<8x4xf32>
    tpu.vector_store %arg9[%c32_227, %c16_228], %139 {strides = array<i32>} : memref<64x64xf32, #tpu.memory_space<vmem>>, vector<8x4xf32>,
    %c163_229 = arith.constant 163 : index
    %c0_230 = arith.constant 0 : index
    %141 = tpu.strided_load %arg6[%c163_229, %c0_230] {strides = array<i32: 2, 1>} : memref<324x4xf32, #tpu.memory_space<vmem>>, vector<8x4xf32>
    %c32_231 = arith.constant 32 : index
    %c20_232 = arith.constant 20 : index
    %142 = vector.load %arg9[%c32_231, %c20_232] : memref<64x64xf32, #tpu.memory_space<vmem>>, vector<8x4xf32>
    tpu.vector_store %arg9[%c32_231, %c20_232], %141 {strides = array<i32>} : memref<64x64xf32, #tpu.memory_space<vmem>>, vector<8x4xf32>,
    %c164_233 = arith.constant 164 : index
    %c0_234 = arith.constant 0 : index
    %143 = tpu.strided_load %arg6[%c164_233, %c0_234] {strides = array<i32: 2, 1>} : memref<324x4xf32, #tpu.memory_space<vmem>>, vector<8x4xf32>
    %c32_235 = arith.constant 32 : index
    %c24_236 = arith.constant 24 : index
    %144 = vector.load %arg9[%c32_235, %c24_236] : memref<64x64xf32, #tpu.memory_space<vmem>>, vector<8x4xf32>
    tpu.vector_store %arg9[%c32_235, %c24_236], %143 {strides = array<i32>} : memref<64x64xf32, #tpu.memory_space<vmem>>, vector<8x4xf32>,
    %c165_237 = arith.constant 165 : index
    %c0_238 = arith.constant 0 : index
    %145 = tpu.strided_load %arg6[%c165_237, %c0_238] {strides = array<i32: 2, 1>} : memref<324x4xf32, #tpu.memory_space<vmem>>, vector<8x4xf32>
    %c32_239 = arith.constant 32 : index
    %c28_240 = arith.constant 28 : index
    %146 = vector.load %arg9[%c32_239, %c28_240] : memref<64x64xf32, #tpu.memory_space<vmem>>, vector<8x4xf32>
    tpu.vector_store %arg9[%c32_239, %c28_240], %145 {strides = array<i32>} : memref<64x64xf32, #tpu.memory_space<vmem>>, vector<8x4xf32>,
    %c180 = arith.constant 180 : index
    %c0_241 = arith.constant 0 : index
    %147 = tpu.strided_load %arg6[%c180, %c0_241] {strides = array<i32: 2, 1>} : memref<324x4xf32, #tpu.memory_space<vmem>>, vector<8x4xf32>
    %c32_242 = arith.constant 32 : index
    %c32_243 = arith.constant 32 : index
    %148 = vector.load %arg9[%c32_242, %c32_243] : memref<64x64xf32, #tpu.memory_space<vmem>>, vector<8x4xf32>
    tpu.vector_store %arg9[%c32_242, %c32_243], %147 {strides = array<i32>} : memref<64x64xf32, #tpu.memory_space<vmem>>, vector<8x4xf32>,
    %c181 = arith.constant 181 : index
    %c0_244 = arith.constant 0 : index
    %149 = tpu.strided_load %arg6[%c181, %c0_244] {strides = array<i32: 2, 1>} : memref<324x4xf32, #tpu.memory_space<vmem>>, vector<8x4xf32>
    %c32_245 = arith.constant 32 : index
    %c36_246 = arith.constant 36 : index
    %150 = vector.load %arg9[%c32_245, %c36_246] : memref<64x64xf32, #tpu.memory_space<vmem>>, vector<8x4xf32>
    tpu.vector_store %arg9[%c32_245, %c36_246], %149 {strides = array<i32>} : memref<64x64xf32, #tpu.memory_space<vmem>>, vector<8x4xf32>,
    %c182 = arith.constant 182 : index
    %c0_247 = arith.constant 0 : index
    %151 = tpu.strided_load %arg6[%c182, %c0_247] {strides = array<i32: 2, 1>} : memref<324x4xf32, #tpu.memory_space<vmem>>, vector<8x4xf32>
    %c32_248 = arith.constant 32 : index
    %c40_249 = arith.constant 40 : index
    %152 = vector.load %arg9[%c32_248, %c40_249] : memref<64x64xf32, #tpu.memory_space<vmem>>, vector<8x4xf32>
    tpu.vector_store %arg9[%c32_248, %c40_249], %151 {strides = array<i32>} : memref<64x64xf32, #tpu.memory_space<vmem>>, vector<8x4xf32>,
    %c183 = arith.constant 183 : index
    %c0_250 = arith.constant 0 : index
    %153 = tpu.strided_load %arg6[%c183, %c0_250] {strides = array<i32: 2, 1>} : memref<324x4xf32, #tpu.memory_space<vmem>>, vector<8x4xf32>
    %c32_251 = arith.constant 32 : index
    %c44_252 = arith.constant 44 : index
    %154 = vector.load %arg9[%c32_251, %c44_252] : memref<64x64xf32, #tpu.memory_space<vmem>>, vector<8x4xf32>
    tpu.vector_store %arg9[%c32_251, %c44_252], %153 {strides = array<i32>} : memref<64x64xf32, #tpu.memory_space<vmem>>, vector<8x4xf32>,
    %c198 = arith.constant 198 : index
    %c0_253 = arith.constant 0 : index
    %155 = tpu.strided_load %arg6[%c198, %c0_253] {strides = array<i32: 2, 1>} : memref<324x4xf32, #tpu.memory_space<vmem>>, vector<8x4xf32>
    %c32_254 = arith.constant 32 : index
    %c48_255 = arith.constant 48 : index
    %156 = vector.load %arg9[%c32_254, %c48_255] : memref<64x64xf32, #tpu.memory_space<vmem>>, vector<8x4xf32>
    tpu.vector_store %arg9[%c32_254, %c48_255], %155 {strides = array<i32>} : memref<64x64xf32, #tpu.memory_space<vmem>>, vector<8x4xf32>,
    %c199 = arith.constant 199 : index
    %c0_256 = arith.constant 0 : index
    %157 = tpu.strided_load %arg6[%c199, %c0_256] {strides = array<i32: 2, 1>} : memref<324x4xf32, #tpu.memory_space<vmem>>, vector<8x4xf32>
    %c32_257 = arith.constant 32 : index
    %c52_258 = arith.constant 52 : index
    %158 = vector.load %arg9[%c32_257, %c52_258] : memref<64x64xf32, #tpu.memory_space<vmem>>, vector<8x4xf32>
    tpu.vector_store %arg9[%c32_257, %c52_258], %157 {strides = array<i32>} : memref<64x64xf32, #tpu.memory_space<vmem>>, vector<8x4xf32>,
    %c200 = arith.constant 200 : index
    %c0_259 = arith.constant 0 : index
    %159 = tpu.strided_load %arg6[%c200, %c0_259] {strides = array<i32: 2, 1>} : memref<324x4xf32, #tpu.memory_space<vmem>>, vector<8x4xf32>
    %c32_260 = arith.constant 32 : index
    %c56_261 = arith.constant 56 : index
    %160 = vector.load %arg9[%c32_260, %c56_261] : memref<64x64xf32, #tpu.memory_space<vmem>>, vector<8x4xf32>
    tpu.vector_store %arg9[%c32_260, %c56_261], %159 {strides = array<i32>} : memref<64x64xf32, #tpu.memory_space<vmem>>, vector<8x4xf32>,
    %c201 = arith.constant 201 : index
    %c0_262 = arith.constant 0 : index
    %161 = tpu.strided_load %arg6[%c201, %c0_262] {strides = array<i32: 2, 1>} : memref<324x4xf32, #tpu.memory_space<vmem>>, vector<8x4xf32>
    %c32_263 = arith.constant 32 : index
    %c60_264 = arith.constant 60 : index
    %162 = vector.load %arg9[%c32_263, %c60_264] : memref<64x64xf32, #tpu.memory_space<vmem>>, vector<8x4xf32>
    tpu.vector_store %arg9[%c32_263, %c60_264], %161 {strides = array<i32>} : memref<64x64xf32, #tpu.memory_space<vmem>>, vector<8x4xf32>,
    %c180_265 = arith.constant 180 : index
    %c0_266 = arith.constant 0 : index
    %163 = tpu.strided_load %arg6[%c180_265, %c0_266] {strides = array<i32: 2, 1>} : memref<324x4xf32, #tpu.memory_space<vmem>>, vector<8x4xf32>
    %c40_267 = arith.constant 40 : index
    %c0_268 = arith.constant 0 : index
    %164 = vector.load %arg9[%c40_267, %c0_268] : memref<64x64xf32, #tpu.memory_space<vmem>>, vector<8x4xf32>
    tpu.vector_store %arg9[%c40_267, %c0_268], %163 {strides = array<i32>} : memref<64x64xf32, #tpu.memory_space<vmem>>, vector<8x4xf32>,
    %c181_269 = arith.constant 181 : index
    %c0_270 = arith.constant 0 : index
    %165 = tpu.strided_load %arg6[%c181_269, %c0_270] {strides = array<i32: 2, 1>} : memref<324x4xf32, #tpu.memory_space<vmem>>, vector<8x4xf32>
    %c40_271 = arith.constant 40 : index
    %c4_272 = arith.constant 4 : index
    %166 = vector.load %arg9[%c40_271, %c4_272] : memref<64x64xf32, #tpu.memory_space<vmem>>, vector<8x4xf32>
    tpu.vector_store %arg9[%c40_271, %c4_272], %165 {strides = array<i32>} : memref<64x64xf32, #tpu.memory_space<vmem>>, vector<8x4xf32>,
    %c182_273 = arith.constant 182 : index
    %c0_274 = arith.constant 0 : index
    %167 = tpu.strided_load %arg6[%c182_273, %c0_274] {strides = array<i32: 2, 1>} : memref<324x4xf32, #tpu.memory_space<vmem>>, vector<8x4xf32>
    %c40_275 = arith.constant 40 : index
    %c8_276 = arith.constant 8 : index
    %168 = vector.load %arg9[%c40_275, %c8_276] : memref<64x64xf32, #tpu.memory_space<vmem>>, vector<8x4xf32>
    tpu.vector_store %arg9[%c40_275, %c8_276], %167 {strides = array<i32>} : memref<64x64xf32, #tpu.memory_space<vmem>>, vector<8x4xf32>,
    %c183_277 = arith.constant 183 : index
    %c0_278 = arith.constant 0 : index
    %169 = tpu.strided_load %arg6[%c183_277, %c0_278] {strides = array<i32: 2, 1>} : memref<324x4xf32, #tpu.memory_space<vmem>>, vector<8x4xf32>
    %c40_279 = arith.constant 40 : index
    %c12_280 = arith.constant 12 : index
    %170 = vector.load %arg9[%c40_279, %c12_280] : memref<64x64xf32, #tpu.memory_space<vmem>>, vector<8x4xf32>
    tpu.vector_store %arg9[%c40_279, %c12_280], %169 {strides = array<i32>} : memref<64x64xf32, #tpu.memory_space<vmem>>, vector<8x4xf32>,
    %c198_281 = arith.constant 198 : index
    %c0_282 = arith.constant 0 : index
    %171 = tpu.strided_load %arg6[%c198_281, %c0_282] {strides = array<i32: 2, 1>} : memref<324x4xf32, #tpu.memory_space<vmem>>, vector<8x4xf32>
    %c40_283 = arith.constant 40 : index
    %c16_284 = arith.constant 16 : index
    %172 = vector.load %arg9[%c40_283, %c16_284] : memref<64x64xf32, #tpu.memory_space<vmem>>, vector<8x4xf32>
    tpu.vector_store %arg9[%c40_283, %c16_284], %171 {strides = array<i32>} : memref<64x64xf32, #tpu.memory_space<vmem>>, vector<8x4xf32>,
    %c199_285 = arith.constant 199 : index
    %c0_286 = arith.constant 0 : index
    %173 = tpu.strided_load %arg6[%c199_285, %c0_286] {strides = array<i32: 2, 1>} : memref<324x4xf32, #tpu.memory_space<vmem>>, vector<8x4xf32>
    %c40_287 = arith.constant 40 : index
    %c20_288 = arith.constant 20 : index
    %174 = vector.load %arg9[%c40_287, %c20_288] : memref<64x64xf32, #tpu.memory_space<vmem>>, vector<8x4xf32>
    tpu.vector_store %arg9[%c40_287, %c20_288], %173 {strides = array<i32>} : memref<64x64xf32, #tpu.memory_space<vmem>>, vector<8x4xf32>,
    %c200_289 = arith.constant 200 : index
    %c0_290 = arith.constant 0 : index
    %175 = tpu.strided_load %arg6[%c200_289, %c0_290] {strides = array<i32: 2, 1>} : memref<324x4xf32, #tpu.memory_space<vmem>>, vector<8x4xf32>
    %c40_291 = arith.constant 40 : index
    %c24_292 = arith.constant 24 : index
    %176 = vector.load %arg9[%c40_291, %c24_292] : memref<64x64xf32, #tpu.memory_space<vmem>>, vector<8x4xf32>
    tpu.vector_store %arg9[%c40_291, %c24_292], %175 {strides = array<i32>} : memref<64x64xf32, #tpu.memory_space<vmem>>, vector<8x4xf32>,
    %c201_293 = arith.constant 201 : index
    %c0_294 = arith.constant 0 : index
    %177 = tpu.strided_load %arg6[%c201_293, %c0_294] {strides = array<i32: 2, 1>} : memref<324x4xf32, #tpu.memory_space<vmem>>, vector<8x4xf32>
    %c40_295 = arith.constant 40 : index
    %c28_296 = arith.constant 28 : index
    %178 = vector.load %arg9[%c40_295, %c28_296] : memref<64x64xf32, #tpu.memory_space<vmem>>, vector<8x4xf32>
    tpu.vector_store %arg9[%c40_295, %c28_296], %177 {strides = array<i32>} : memref<64x64xf32, #tpu.memory_space<vmem>>, vector<8x4xf32>,
    %c216 = arith.constant 216 : index
    %c0_297 = arith.constant 0 : index
    %179 = tpu.strided_load %arg6[%c216, %c0_297] {strides = array<i32: 2, 1>} : memref<324x4xf32, #tpu.memory_space<vmem>>, vector<8x4xf32>
    %c40_298 = arith.constant 40 : index
    %c32_299 = arith.constant 32 : index
    %180 = vector.load %arg9[%c40_298, %c32_299] : memref<64x64xf32, #tpu.memory_space<vmem>>, vector<8x4xf32>
    tpu.vector_store %arg9[%c40_298, %c32_299], %179 {strides = array<i32>} : memref<64x64xf32, #tpu.memory_space<vmem>>, vector<8x4xf32>,
    %c217 = arith.constant 217 : index
    %c0_300 = arith.constant 0 : index
    %181 = tpu.strided_load %arg6[%c217, %c0_300] {strides = array<i32: 2, 1>} : memref<324x4xf32, #tpu.memory_space<vmem>>, vector<8x4xf32>
    %c40_301 = arith.constant 40 : index
    %c36_302 = arith.constant 36 : index
    %182 = vector.load %arg9[%c40_301, %c36_302] : memref<64x64xf32, #tpu.memory_space<vmem>>, vector<8x4xf32>
    tpu.vector_store %arg9[%c40_301, %c36_302], %181 {strides = array<i32>} : memref<64x64xf32, #tpu.memory_space<vmem>>, vector<8x4xf32>,
    %c218 = arith.constant 218 : index
    %c0_303 = arith.constant 0 : index
    %183 = tpu.strided_load %arg6[%c218, %c0_303] {strides = array<i32: 2, 1>} : memref<324x4xf32, #tpu.memory_space<vmem>>, vector<8x4xf32>
    %c40_304 = arith.constant 40 : index
    %c40_305 = arith.constant 40 : index
    %184 = vector.load %arg9[%c40_304, %c40_305] : memref<64x64xf32, #tpu.memory_space<vmem>>, vector<8x4xf32>
    tpu.vector_store %arg9[%c40_304, %c40_305], %183 {strides = array<i32>} : memref<64x64xf32, #tpu.memory_space<vmem>>, vector<8x4xf32>,
    %c219 = arith.constant 219 : index
    %c0_306 = arith.constant 0 : index
    %185 = tpu.strided_load %arg6[%c219, %c0_306] {strides = array<i32: 2, 1>} : memref<324x4xf32, #tpu.memory_space<vmem>>, vector<8x4xf32>
    %c40_307 = arith.constant 40 : index
    %c44_308 = arith.constant 44 : index
    %186 = vector.load %arg9[%c40_307, %c44_308] : memref<64x64xf32, #tpu.memory_space<vmem>>, vector<8x4xf32>
    tpu.vector_store %arg9[%c40_307, %c44_308], %185 {strides = array<i32>} : memref<64x64xf32, #tpu.memory_space<vmem>>, vector<8x4xf32>,
    %c234 = arith.constant 234 : index
    %c0_309 = arith.constant 0 : index
    %187 = tpu.strided_load %arg6[%c234, %c0_309] {strides = array<i32: 2, 1>} : memref<324x4xf32, #tpu.memory_space<vmem>>, vector<8x4xf32>
    %c40_310 = arith.constant 40 : index
    %c48_311 = arith.constant 48 : index
    %188 = vector.load %arg9[%c40_310, %c48_311] : memref<64x64xf32, #tpu.memory_space<vmem>>, vector<8x4xf32>
    tpu.vector_store %arg9[%c40_310, %c48_311], %187 {strides = array<i32>} : memref<64x64xf32, #tpu.memory_space<vmem>>, vector<8x4xf32>,
    %c235 = arith.constant 235 : index
    %c0_312 = arith.constant 0 : index
    %189 = tpu.strided_load %arg6[%c235, %c0_312] {strides = array<i32: 2, 1>} : memref<324x4xf32, #tpu.memory_space<vmem>>, vector<8x4xf32>
    %c40_313 = arith.constant 40 : index
    %c52_314 = arith.constant 52 : index
    %190 = vector.load %arg9[%c40_313, %c52_314] : memref<64x64xf32, #tpu.memory_space<vmem>>, vector<8x4xf32>
    tpu.vector_store %arg9[%c40_313, %c52_314], %189 {strides = array<i32>} : memref<64x64xf32, #tpu.memory_space<vmem>>, vector<8x4xf32>,
    %c236 = arith.constant 236 : index
    %c0_315 = arith.constant 0 : index
    %191 = tpu.strided_load %arg6[%c236, %c0_315] {strides = array<i32: 2, 1>} : memref<324x4xf32, #tpu.memory_space<vmem>>, vector<8x4xf32>
    %c40_316 = arith.constant 40 : index
    %c56_317 = arith.constant 56 : index
    %192 = vector.load %arg9[%c40_316, %c56_317] : memref<64x64xf32, #tpu.memory_space<vmem>>, vector<8x4xf32>
    tpu.vector_store %arg9[%c40_316, %c56_317], %191 {strides = array<i32>} : memref<64x64xf32, #tpu.memory_space<vmem>>, vector<8x4xf32>,
    %c237 = arith.constant 237 : index
    %c0_318 = arith.constant 0 : index
    %193 = tpu.strided_load %arg6[%c237, %c0_318] {strides = array<i32: 2, 1>} : memref<324x4xf32, #tpu.memory_space<vmem>>, vector<8x4xf32>
    %c40_319 = arith.constant 40 : index
    %c60_320 = arith.constant 60 : index
    %194 = vector.load %arg9[%c40_319, %c60_320] : memref<64x64xf32, #tpu.memory_space<vmem>>, vector<8x4xf32>
    tpu.vector_store %arg9[%c40_319, %c60_320], %193 {strides = array<i32>} : memref<64x64xf32, #tpu.memory_space<vmem>>, vector<8x4xf32>,
    %c216_321 = arith.constant 216 : index
    %c0_322 = arith.constant 0 : index
    %195 = tpu.strided_load %arg6[%c216_321, %c0_322] {strides = array<i32: 2, 1>} : memref<324x4xf32, #tpu.memory_space<vmem>>, vector<8x4xf32>
    %c48_323 = arith.constant 48 : index
    %c0_324 = arith.constant 0 : index
    %196 = vector.load %arg9[%c48_323, %c0_324] : memref<64x64xf32, #tpu.memory_space<vmem>>, vector<8x4xf32>
    tpu.vector_store %arg9[%c48_323, %c0_324], %195 {strides = array<i32>} : memref<64x64xf32, #tpu.memory_space<vmem>>, vector<8x4xf32>,
    %c217_325 = arith.constant 217 : index
    %c0_326 = arith.constant 0 : index
    %197 = tpu.strided_load %arg6[%c217_325, %c0_326] {strides = array<i32: 2, 1>} : memref<324x4xf32, #tpu.memory_space<vmem>>, vector<8x4xf32>
    %c48_327 = arith.constant 48 : index
    %c4_328 = arith.constant 4 : index
    %198 = vector.load %arg9[%c48_327, %c4_328] : memref<64x64xf32, #tpu.memory_space<vmem>>, vector<8x4xf32>
    tpu.vector_store %arg9[%c48_327, %c4_328], %197 {strides = array<i32>} : memref<64x64xf32, #tpu.memory_space<vmem>>, vector<8x4xf32>,
    %c218_329 = arith.constant 218 : index
    %c0_330 = arith.constant 0 : index
    %199 = tpu.strided_load %arg6[%c218_329, %c0_330] {strides = array<i32: 2, 1>} : memref<324x4xf32, #tpu.memory_space<vmem>>, vector<8x4xf32>
    %c48_331 = arith.constant 48 : index
    %c8_332 = arith.constant 8 : index
    %200 = vector.load %arg9[%c48_331, %c8_332] : memref<64x64xf32, #tpu.memory_space<vmem>>, vector<8x4xf32>
    tpu.vector_store %arg9[%c48_331, %c8_332], %199 {strides = array<i32>} : memref<64x64xf32, #tpu.memory_space<vmem>>, vector<8x4xf32>,
    %c219_333 = arith.constant 219 : index
    %c0_334 = arith.constant 0 : index
    %201 = tpu.strided_load %arg6[%c219_333, %c0_334] {strides = array<i32: 2, 1>} : memref<324x4xf32, #tpu.memory_space<vmem>>, vector<8x4xf32>
    %c48_335 = arith.constant 48 : index
    %c12_336 = arith.constant 12 : index
    %202 = vector.load %arg9[%c48_335, %c12_336] : memref<64x64xf32, #tpu.memory_space<vmem>>, vector<8x4xf32>
    tpu.vector_store %arg9[%c48_335, %c12_336], %201 {strides = array<i32>} : memref<64x64xf32, #tpu.memory_space<vmem>>, vector<8x4xf32>,
    %c234_337 = arith.constant 234 : index
    %c0_338 = arith.constant 0 : index
    %203 = tpu.strided_load %arg6[%c234_337, %c0_338] {strides = array<i32: 2, 1>} : memref<324x4xf32, #tpu.memory_space<vmem>>, vector<8x4xf32>
    %c48_339 = arith.constant 48 : index
    %c16_340 = arith.constant 16 : index
    %204 = vector.load %arg9[%c48_339, %c16_340] : memref<64x64xf32, #tpu.memory_space<vmem>>, vector<8x4xf32>
    tpu.vector_store %arg9[%c48_339, %c16_340], %203 {strides = array<i32>} : memref<64x64xf32, #tpu.memory_space<vmem>>, vector<8x4xf32>,
    %c235_341 = arith.constant 235 : index
    %c0_342 = arith.constant 0 : index
    %205 = tpu.strided_load %arg6[%c235_341, %c0_342] {strides = array<i32: 2, 1>} : memref<324x4xf32, #tpu.memory_space<vmem>>, vector<8x4xf32>
    %c48_343 = arith.constant 48 : index
    %c20_344 = arith.constant 20 : index
    %206 = vector.load %arg9[%c48_343, %c20_344] : memref<64x64xf32, #tpu.memory_space<vmem>>, vector<8x4xf32>
    tpu.vector_store %arg9[%c48_343, %c20_344], %205 {strides = array<i32>} : memref<64x64xf32, #tpu.memory_space<vmem>>, vector<8x4xf32>,
    %c236_345 = arith.constant 236 : index
    %c0_346 = arith.constant 0 : index
    %207 = tpu.strided_load %arg6[%c236_345, %c0_346] {strides = array<i32: 2, 1>} : memref<324x4xf32, #tpu.memory_space<vmem>>, vector<8x4xf32>
    %c48_347 = arith.constant 48 : index
    %c24_348 = arith.constant 24 : index
    %208 = vector.load %arg9[%c48_347, %c24_348] : memref<64x64xf32, #tpu.memory_space<vmem>>, vector<8x4xf32>
    tpu.vector_store %arg9[%c48_347, %c24_348], %207 {strides = array<i32>} : memref<64x64xf32, #tpu.memory_space<vmem>>, vector<8x4xf32>,
    %c237_349 = arith.constant 237 : index
    %c0_350 = arith.constant 0 : index
    %209 = tpu.strided_load %arg6[%c237_349, %c0_350] {strides = array<i32: 2, 1>} : memref<324x4xf32, #tpu.memory_space<vmem>>, vector<8x4xf32>
    %c48_351 = arith.constant 48 : index
    %c28_352 = arith.constant 28 : index
    %210 = vector.load %arg9[%c48_351, %c28_352] : memref<64x64xf32, #tpu.memory_space<vmem>>, vector<8x4xf32>
    tpu.vector_store %arg9[%c48_351, %c28_352], %209 {strides = array<i32>} : memref<64x64xf32, #tpu.memory_space<vmem>>, vector<8x4xf32>,
    %c252 = arith.constant 252 : index
    %c0_353 = arith.constant 0 : index
    %211 = tpu.strided_load %arg6[%c252, %c0_353] {strides = array<i32: 2, 1>} : memref<324x4xf32, #tpu.memory_space<vmem>>, vector<8x4xf32>
    %c48_354 = arith.constant 48 : index
    %c32_355 = arith.constant 32 : index
    %212 = vector.load %arg9[%c48_354, %c32_355] : memref<64x64xf32, #tpu.memory_space<vmem>>, vector<8x4xf32>
    tpu.vector_store %arg9[%c48_354, %c32_355], %211 {strides = array<i32>} : memref<64x64xf32, #tpu.memory_space<vmem>>, vector<8x4xf32>,
    %c253 = arith.constant 253 : index
    %c0_356 = arith.constant 0 : index
    %213 = tpu.strided_load %arg6[%c253, %c0_356] {strides = array<i32: 2, 1>} : memref<324x4xf32, #tpu.memory_space<vmem>>, vector<8x4xf32>
    %c48_357 = arith.constant 48 : index
    %c36_358 = arith.constant 36 : index
    %214 = vector.load %arg9[%c48_357, %c36_358] : memref<64x64xf32, #tpu.memory_space<vmem>>, vector<8x4xf32>
    tpu.vector_store %arg9[%c48_357, %c36_358], %213 {strides = array<i32>} : memref<64x64xf32, #tpu.memory_space<vmem>>, vector<8x4xf32>,
    %c254 = arith.constant 254 : index
    %c0_359 = arith.constant 0 : index
    %215 = tpu.strided_load %arg6[%c254, %c0_359] {strides = array<i32: 2, 1>} : memref<324x4xf32, #tpu.memory_space<vmem>>, vector<8x4xf32>
    %c48_360 = arith.constant 48 : index
    %c40_361 = arith.constant 40 : index
    %216 = vector.load %arg9[%c48_360, %c40_361] : memref<64x64xf32, #tpu.memory_space<vmem>>, vector<8x4xf32>
    tpu.vector_store %arg9[%c48_360, %c40_361], %215 {strides = array<i32>} : memref<64x64xf32, #tpu.memory_space<vmem>>, vector<8x4xf32>,
    %c255 = arith.constant 255 : index
    %c0_362 = arith.constant 0 : index
    %217 = tpu.strided_load %arg6[%c255, %c0_362] {strides = array<i32: 2, 1>} : memref<324x4xf32, #tpu.memory_space<vmem>>, vector<8x4xf32>
    %c48_363 = arith.constant 48 : index
    %c44_364 = arith.constant 44 : index
    %218 = vector.load %arg9[%c48_363, %c44_364] : memref<64x64xf32, #tpu.memory_space<vmem>>, vector<8x4xf32>
    tpu.vector_store %arg9[%c48_363, %c44_364], %217 {strides = array<i32>} : memref<64x64xf32, #tpu.memory_space<vmem>>, vector<8x4xf32>,
    %c270 = arith.constant 270 : index
    %c0_365 = arith.constant 0 : index
    %219 = tpu.strided_load %arg6[%c270, %c0_365] {strides = array<i32: 2, 1>} : memref<324x4xf32, #tpu.memory_space<vmem>>, vector<8x4xf32>
    %c48_366 = arith.constant 48 : index
    %c48_367 = arith.constant 48 : index
    %220 = vector.load %arg9[%c48_366, %c48_367] : memref<64x64xf32, #tpu.memory_space<vmem>>, vector<8x4xf32>
    tpu.vector_store %arg9[%c48_366, %c48_367], %219 {strides = array<i32>} : memref<64x64xf32, #tpu.memory_space<vmem>>, vector<8x4xf32>,
    %c271 = arith.constant 271 : index
    %c0_368 = arith.constant 0 : index
    %221 = tpu.strided_load %arg6[%c271, %c0_368] {strides = array<i32: 2, 1>} : memref<324x4xf32, #tpu.memory_space<vmem>>, vector<8x4xf32>
    %c48_369 = arith.constant 48 : index
    %c52_370 = arith.constant 52 : index
    %222 = vector.load %arg9[%c48_369, %c52_370] : memref<64x64xf32, #tpu.memory_space<vmem>>, vector<8x4xf32>
    tpu.vector_store %arg9[%c48_369, %c52_370], %221 {strides = array<i32>} : memref<64x64xf32, #tpu.memory_space<vmem>>, vector<8x4xf32>,
    %c272 = arith.constant 272 : index
    %c0_371 = arith.constant 0 : index
    %223 = tpu.strided_load %arg6[%c272, %c0_371] {strides = array<i32: 2, 1>} : memref<324x4xf32, #tpu.memory_space<vmem>>, vector<8x4xf32>
    %c48_372 = arith.constant 48 : index
    %c56_373 = arith.constant 56 : index
    %224 = vector.load %arg9[%c48_372, %c56_373] : memref<64x64xf32, #tpu.memory_space<vmem>>, vector<8x4xf32>
    tpu.vector_store %arg9[%c48_372, %c56_373], %223 {strides = array<i32>} : memref<64x64xf32, #tpu.memory_space<vmem>>, vector<8x4xf32>,
    %c273 = arith.constant 273 : index
    %c0_374 = arith.constant 0 : index
    %225 = tpu.strided_load %arg6[%c273, %c0_374] {strides = array<i32: 2, 1>} : memref<324x4xf32, #tpu.memory_space<vmem>>, vector<8x4xf32>
    %c48_375 = arith.constant 48 : index
    %c60_376 = arith.constant 60 : index
    %226 = vector.load %arg9[%c48_375, %c60_376] : memref<64x64xf32, #tpu.memory_space<vmem>>, vector<8x4xf32>
    tpu.vector_store %arg9[%c48_375, %c60_376], %225 {strides = array<i32>} : memref<64x64xf32, #tpu.memory_space<vmem>>, vector<8x4xf32>,
    %c252_377 = arith.constant 252 : index
    %c0_378 = arith.constant 0 : index
    %227 = tpu.strided_load %arg6[%c252_377, %c0_378] {strides = array<i32: 2, 1>} : memref<324x4xf32, #tpu.memory_space<vmem>>, vector<8x4xf32>
    %c56_379 = arith.constant 56 : index
    %c0_380 = arith.constant 0 : index
    %228 = vector.load %arg9[%c56_379, %c0_380] : memref<64x64xf32, #tpu.memory_space<vmem>>, vector<8x4xf32>
    tpu.vector_store %arg9[%c56_379, %c0_380], %227 {strides = array<i32>} : memref<64x64xf32, #tpu.memory_space<vmem>>, vector<8x4xf32>,
    %c253_381 = arith.constant 253 : index
    %c0_382 = arith.constant 0 : index
    %229 = tpu.strided_load %arg6[%c253_381, %c0_382] {strides = array<i32: 2, 1>} : memref<324x4xf32, #tpu.memory_space<vmem>>, vector<8x4xf32>
    %c56_383 = arith.constant 56 : index
    %c4_384 = arith.constant 4 : index
    %230 = vector.load %arg9[%c56_383, %c4_384] : memref<64x64xf32, #tpu.memory_space<vmem>>, vector<8x4xf32>
    tpu.vector_store %arg9[%c56_383, %c4_384], %229 {strides = array<i32>} : memref<64x64xf32, #tpu.memory_space<vmem>>, vector<8x4xf32>,
    %c254_385 = arith.constant 254 : index
    %c0_386 = arith.constant 0 : index
    %231 = tpu.strided_load %arg6[%c254_385, %c0_386] {strides = array<i32: 2, 1>} : memref<324x4xf32, #tpu.memory_space<vmem>>, vector<8x4xf32>
    %c56_387 = arith.constant 56 : index
    %c8_388 = arith.constant 8 : index
    %232 = vector.load %arg9[%c56_387, %c8_388] : memref<64x64xf32, #tpu.memory_space<vmem>>, vector<8x4xf32>
    tpu.vector_store %arg9[%c56_387, %c8_388], %231 {strides = array<i32>} : memref<64x64xf32, #tpu.memory_space<vmem>>, vector<8x4xf32>,
    %c255_389 = arith.constant 255 : index
    %c0_390 = arith.constant 0 : index
    %233 = tpu.strided_load %arg6[%c255_389, %c0_390] {strides = array<i32: 2, 1>} : memref<324x4xf32, #tpu.memory_space<vmem>>, vector<8x4xf32>
    %c56_391 = arith.constant 56 : index
    %c12_392 = arith.constant 12 : index
    %234 = vector.load %arg9[%c56_391, %c12_392] : memref<64x64xf32, #tpu.memory_space<vmem>>, vector<8x4xf32>
    tpu.vector_store %arg9[%c56_391, %c12_392], %233 {strides = array<i32>} : memref<64x64xf32, #tpu.memory_space<vmem>>, vector<8x4xf32>,
    %c270_393 = arith.constant 270 : index
    %c0_394 = arith.constant 0 : index
    %235 = tpu.strided_load %arg6[%c270_393, %c0_394] {strides = array<i32: 2, 1>} : memref<324x4xf32, #tpu.memory_space<vmem>>, vector<8x4xf32>
    %c56_395 = arith.constant 56 : index
    %c16_396 = arith.constant 16 : index
    %236 = vector.load %arg9[%c56_395, %c16_396] : memref<64x64xf32, #tpu.memory_space<vmem>>, vector<8x4xf32>
    tpu.vector_store %arg9[%c56_395, %c16_396], %235 {strides = array<i32>} : memref<64x64xf32, #tpu.memory_space<vmem>>, vector<8x4xf32>,
    %c271_397 = arith.constant 271 : index
    %c0_398 = arith.constant 0 : index
    %237 = tpu.strided_load %arg6[%c271_397, %c0_398] {strides = array<i32: 2, 1>} : memref<324x4xf32, #tpu.memory_space<vmem>>, vector<8x4xf32>
    %c56_399 = arith.constant 56 : index
    %c20_400 = arith.constant 20 : index
    %238 = vector.load %arg9[%c56_399, %c20_400] : memref<64x64xf32, #tpu.memory_space<vmem>>, vector<8x4xf32>
    tpu.vector_store %arg9[%c56_399, %c20_400], %237 {strides = array<i32>} : memref<64x64xf32, #tpu.memory_space<vmem>>, vector<8x4xf32>,
    %c272_401 = arith.constant 272 : index
    %c0_402 = arith.constant 0 : index
    %239 = tpu.strided_load %arg6[%c272_401, %c0_402] {strides = array<i32: 2, 1>} : memref<324x4xf32, #tpu.memory_space<vmem>>, vector<8x4xf32>
    %c56_403 = arith.constant 56 : index
    %c24_404 = arith.constant 24 : index
    %240 = vector.load %arg9[%c56_403, %c24_404] : memref<64x64xf32, #tpu.memory_space<vmem>>, vector<8x4xf32>
    tpu.vector_store %arg9[%c56_403, %c24_404], %239 {strides = array<i32>} : memref<64x64xf32, #tpu.memory_space<vmem>>, vector<8x4xf32>,
    %c273_405 = arith.constant 273 : index
    %c0_406 = arith.constant 0 : index
    %241 = tpu.strided_load %arg6[%c273_405, %c0_406] {strides = array<i32: 2, 1>} : memref<324x4xf32, #tpu.memory_space<vmem>>, vector<8x4xf32>
    %c56_407 = arith.constant 56 : index
    %c28_408 = arith.constant 28 : index
    %242 = vector.load %arg9[%c56_407, %c28_408] : memref<64x64xf32, #tpu.memory_space<vmem>>, vector<8x4xf32>
    tpu.vector_store %arg9[%c56_407, %c28_408], %241 {strides = array<i32>} : memref<64x64xf32, #tpu.memory_space<vmem>>, vector<8x4xf32>,
    %c288 = arith.constant 288 : index
    %c0_409 = arith.constant 0 : index
    %243 = tpu.strided_load %arg6[%c288, %c0_409] {strides = array<i32: 2, 1>} : memref<324x4xf32, #tpu.memory_space<vmem>>, vector<8x4xf32>
    %c56_410 = arith.constant 56 : index
    %c32_411 = arith.constant 32 : index
    %244 = vector.load %arg9[%c56_410, %c32_411] : memref<64x64xf32, #tpu.memory_space<vmem>>, vector<8x4xf32>
    tpu.vector_store %arg9[%c56_410, %c32_411], %243 {strides = array<i32>} : memref<64x64xf32, #tpu.memory_space<vmem>>, vector<8x4xf32>,
    %c289 = arith.constant 289 : index
    %c0_412 = arith.constant 0 : index
    %245 = tpu.strided_load %arg6[%c289, %c0_412] {strides = array<i32: 2, 1>} : memref<324x4xf32, #tpu.memory_space<vmem>>, vector<8x4xf32>
    %c56_413 = arith.constant 56 : index
    %c36_414 = arith.constant 36 : index
    %246 = vector.load %arg9[%c56_413, %c36_414] : memref<64x64xf32, #tpu.memory_space<vmem>>, vector<8x4xf32>
    tpu.vector_store %arg9[%c56_413, %c36_414], %245 {strides = array<i32>} : memref<64x64xf32, #tpu.memory_space<vmem>>, vector<8x4xf32>,
    %c290 = arith.constant 290 : index
    %c0_415 = arith.constant 0 : index
    %247 = tpu.strided_load %arg6[%c290, %c0_415] {strides = array<i32: 2, 1>} : memref<324x4xf32, #tpu.memory_space<vmem>>, vector<8x4xf32>
    %c56_416 = arith.constant 56 : index
    %c40_417 = arith.constant 40 : index
    %248 = vector.load %arg9[%c56_416, %c40_417] : memref<64x64xf32, #tpu.memory_space<vmem>>, vector<8x4xf32>
    tpu.vector_store %arg9[%c56_416, %c40_417], %247 {strides = array<i32>} : memref<64x64xf32, #tpu.memory_space<vmem>>, vector<8x4xf32>,
    %c291 = arith.constant 291 : index
    %c0_418 = arith.constant 0 : index
    %249 = tpu.strided_load %arg6[%c291, %c0_418] {strides = array<i32: 2, 1>} : memref<324x4xf32, #tpu.memory_space<vmem>>, vector<8x4xf32>
    %c56_419 = arith.constant 56 : index
    %c44_420 = arith.constant 44 : index
    %250 = vector.load %arg9[%c56_419, %c44_420] : memref<64x64xf32, #tpu.memory_space<vmem>>, vector<8x4xf32>
    tpu.vector_store %arg9[%c56_419, %c44_420], %249 {strides = array<i32>} : memref<64x64xf32, #tpu.memory_space<vmem>>, vector<8x4xf32>,
    %c306 = arith.constant 306 : index
    %c0_421 = arith.constant 0 : index
    %251 = tpu.strided_load %arg6[%c306, %c0_421] {strides = array<i32: 2, 1>} : memref<324x4xf32, #tpu.memory_space<vmem>>, vector<8x4xf32>
    %c56_422 = arith.constant 56 : index
    %c48_423 = arith.constant 48 : index
    %252 = vector.load %arg9[%c56_422, %c48_423] : memref<64x64xf32, #tpu.memory_space<vmem>>, vector<8x4xf32>
    tpu.vector_store %arg9[%c56_422, %c48_423], %251 {strides = array<i32>} : memref<64x64xf32, #tpu.memory_space<vmem>>, vector<8x4xf32>,
    %c307 = arith.constant 307 : index
    %c0_424 = arith.constant 0 : index
    %253 = tpu.strided_load %arg6[%c307, %c0_424] {strides = array<i32: 2, 1>} : memref<324x4xf32, #tpu.memory_space<vmem>>, vector<8x4xf32>
    %c56_425 = arith.constant 56 : index
    %c52_426 = arith.constant 52 : index
    %254 = vector.load %arg9[%c56_425, %c52_426] : memref<64x64xf32, #tpu.memory_space<vmem>>, vector<8x4xf32>
    tpu.vector_store %arg9[%c56_425, %c52_426], %253 {strides = array<i32>} : memref<64x64xf32, #tpu.memory_space<vmem>>, vector<8x4xf32>,
    %c308 = arith.constant 308 : index
    %c0_427 = arith.constant 0 : index
    %255 = tpu.strided_load %arg6[%c308, %c0_427] {strides = array<i32: 2, 1>} : memref<324x4xf32, #tpu.memory_space<vmem>>, vector<8x4xf32>
    %c56_428 = arith.constant 56 : index
    %c56_429 = arith.constant 56 : index
    %256 = vector.load %arg9[%c56_428, %c56_429] : memref<64x64xf32, #tpu.memory_space<vmem>>, vector<8x4xf32>
    tpu.vector_store %arg9[%c56_428, %c56_429], %255 {strides = array<i32>} : memref<64x64xf32, #tpu.memory_space<vmem>>, vector<8x4xf32>,
    %c309 = arith.constant 309 : index
    %c0_430 = arith.constant 0 : index
    %257 = tpu.strided_load %arg6[%c309, %c0_430] {strides = array<i32: 2, 1>} : memref<324x4xf32, #tpu.memory_space<vmem>>, vector<8x4xf32>
    %c56_431 = arith.constant 56 : index
    %c60_432 = arith.constant 60 : index
    %258 = vector.load %arg9[%c56_431, %c60_432] : memref<64x64xf32, #tpu.memory_space<vmem>>, vector<8x4xf32>
    tpu.vector_store %arg9[%c56_431, %c60_432], %257 {strides = array<i32>} : memref<64x64xf32, #tpu.memory_space<vmem>>, vector<8x4xf32>,
    %c0_433 = arith.constant 0 : index
    %c0_434 = arith.constant 0 : index
    %259 = vector.load %arg9[%c0_433, %c0_434] : memref<64x64xf32, #tpu.memory_space<vmem>>, vector<64x64xf32>
    %260 = arith.truncf %259 : vector<64x64xf32> to vector<64x64xbf16>
    %c0_435 = arith.constant 0 : index
    %c0_436 = arith.constant 0 : index
    %261 = vector.load %arg2[%c0_435, %c0_436] : memref<64x8xbf16, #tpu.memory_space<vmem>>, vector<64x8xbf16>
    %cst = arith.constant dense<0.000000e+00> : vector<64x8xf32>
    %262 = tpu.matmul %260, %261, %cst {dimension_numbers = #tpu.dot_dimension_numbers<[1], [0], [0], [1], [0, 0, 1, 1], [], []>} : vector<64x64xbf16>, vector<64x8xbf16>, vector<64x8xf32> -> vector<64x8xf32>
    %cst_437 = arith.constant 0.000000e+00 : f32
    %263 = vector.broadcast %cst_437 : f32 to vector<64x8xf32>
    %264 = arith.cmpf oge, %262, %263 : vector<64x8xf32>
    %cst_438 = arith.constant 2.000000e-01 : f32
    %265 = vector.broadcast %cst_438 : f32 to vector<64x8xf32>
    %266 = arith.mulf %265, %262 : vector<64x8xf32>
    %267 = arith.select %264, %262, %266 : vector<64x8xi1>, vector<64x8xf32>
    %cst_439 = arith.constant 0.000000e+00 : f32
    %268 = vector.broadcast %cst_439 : f32 to vector<100x8xf32>
    %c0_440 = arith.constant 0 : index
    %c0_441 = arith.constant 0 : index
    %269 = vector.load %arg7[%c0_440, %c0_441] : memref<100x8xf32, #tpu.memory_space<vmem>>, vector<100x8xf32>
    tpu.vector_store %arg7[%c0_440, %c0_441], %268 {strides = array<i32>} : memref<100x8xf32, #tpu.memory_space<vmem>>, vector<100x8xf32>,
    %270 = vector.extract_strided_slice %267 {offsets = [0, 0], sizes = [8, 8], strides = [1, 1]} : vector<64x8xf32> to vector<8x8xf32>
    %c11 = arith.constant 11 : index
    %c0_442 = arith.constant 0 : index
    %271 = vector.load %arg7[%c11, %c0_442] : memref<100x8xf32, #tpu.memory_space<vmem>>, vector<8x8xf32>
    tpu.vector_store %arg7[%c11, %c0_442], %270 {strides = array<i32>} : memref<100x8xf32, #tpu.memory_space<vmem>>, vector<8x8xf32>,
    %272 = vector.extract_strided_slice %267 {offsets = [8, 0], sizes = [8, 8], strides = [1, 1]} : vector<64x8xf32> to vector<8x8xf32>
    %c21_443 = arith.constant 21 : index
    %c0_444 = arith.constant 0 : index
    %273 = vector.load %arg7[%c21_443, %c0_444] : memref<100x8xf32, #tpu.memory_space<vmem>>, vector<8x8xf32>
    tpu.vector_store %arg7[%c21_443, %c0_444], %272 {strides = array<i32>} : memref<100x8xf32, #tpu.memory_space<vmem>>, vector<8x8xf32>,
    %274 = vector.extract_strided_slice %267 {offsets = [16, 0], sizes = [8, 8], strides = [1, 1]} : vector<64x8xf32> to vector<8x8xf32>
    %c31 = arith.constant 31 : index
    %c0_445 = arith.constant 0 : index
    %275 = vector.load %arg7[%c31, %c0_445] : memref<100x8xf32, #tpu.memory_space<vmem>>, vector<8x8xf32>
    tpu.vector_store %arg7[%c31, %c0_445], %274 {strides = array<i32>} : memref<100x8xf32, #tpu.memory_space<vmem>>, vector<8x8xf32>,
    %276 = vector.extract_strided_slice %267 {offsets = [24, 0], sizes = [8, 8], strides = [1, 1]} : vector<64x8xf32> to vector<8x8xf32>
    %c41 = arith.constant 41 : index
    %c0_446 = arith.constant 0 : index
    %277 = vector.load %arg7[%c41, %c0_446] : memref<100x8xf32, #tpu.memory_space<vmem>>, vector<8x8xf32>
    tpu.vector_store %arg7[%c41, %c0_446], %276 {strides = array<i32>} : memref<100x8xf32, #tpu.memory_space<vmem>>, vector<8x8xf32>,
    %278 = vector.extract_strided_slice %267 {offsets = [32, 0], sizes = [8, 8], strides = [1, 1]} : vector<64x8xf32> to vector<8x8xf32>
    %c51 = arith.constant 51 : index
    %c0_447 = arith.constant 0 : index
    %279 = vector.load %arg7[%c51, %c0_447] : memref<100x8xf32, #tpu.memory_space<vmem>>, vector<8x8xf32>
    tpu.vector_store %arg7[%c51, %c0_447], %278 {strides = array<i32>} : memref<100x8xf32, #tpu.memory_space<vmem>>, vector<8x8xf32>,
    %280 = vector.extract_strided_slice %267 {offsets = [40, 0], sizes = [8, 8], strides = [1, 1]} : vector<64x8xf32> to vector<8x8xf32>
    %c61 = arith.constant 61 : index
    %c0_448 = arith.constant 0 : index
    %281 = vector.load %arg7[%c61, %c0_448] : memref<100x8xf32, #tpu.memory_space<vmem>>, vector<8x8xf32>
    tpu.vector_store %arg7[%c61, %c0_448], %280 {strides = array<i32>} : memref<100x8xf32, #tpu.memory_space<vmem>>, vector<8x8xf32>,
    %282 = vector.extract_strided_slice %267 {offsets = [48, 0], sizes = [8, 8], strides = [1, 1]} : vector<64x8xf32> to vector<8x8xf32>
    %c71 = arith.constant 71 : index
    %c0_449 = arith.constant 0 : index
    %283 = vector.load %arg7[%c71, %c0_449] : memref<100x8xf32, #tpu.memory_space<vmem>>, vector<8x8xf32>
    tpu.vector_store %arg7[%c71, %c0_449], %282 {strides = array<i32>} : memref<100x8xf32, #tpu.memory_space<vmem>>, vector<8x8xf32>,
    %284 = vector.extract_strided_slice %267 {offsets = [56, 0], sizes = [8, 8], strides = [1, 1]} : vector<64x8xf32> to vector<8x8xf32>
    %c81 = arith.constant 81 : index
    %c0_450 = arith.constant 0 : index
    %285 = vector.load %arg7[%c81, %c0_450] : memref<100x8xf32, #tpu.memory_space<vmem>>, vector<8x8xf32>
    tpu.vector_store %arg7[%c81, %c0_450], %284 {strides = array<i32>} : memref<100x8xf32, #tpu.memory_space<vmem>>, vector<8x8xf32>,
    %c0_451 = arith.constant 0 : index
    %c0_452 = arith.constant 0 : index
    %286 = tpu.strided_load %arg7[%c0_451, %c0_452] {strides = array<i32: 2, 1>} : memref<100x8xf32, #tpu.memory_space<vmem>>, vector<4x8xf32>
    %c0_453 = arith.constant 0 : index
    %c0_454 = arith.constant 0 : index
    %287 = vector.load %arg10[%c0_453, %c0_454] : memref<16x128xf32, #tpu.memory_space<vmem>>, vector<4x8xf32>
    tpu.vector_store %arg10[%c0_453, %c0_454], %286 {strides = array<i32>} : memref<16x128xf32, #tpu.memory_space<vmem>>, vector<4x8xf32>,
    %c1_455 = arith.constant 1 : index
    %c0_456 = arith.constant 0 : index
    %288 = tpu.strided_load %arg7[%c1_455, %c0_456] {strides = array<i32: 2, 1>} : memref<100x8xf32, #tpu.memory_space<vmem>>, vector<4x8xf32>
    %c0_457 = arith.constant 0 : index
    %c8_458 = arith.constant 8 : index
    %289 = vector.load %arg10[%c0_457, %c8_458] : memref<16x128xf32, #tpu.memory_space<vmem>>, vector<4x8xf32>
    tpu.vector_store %arg10[%c0_457, %c8_458], %288 {strides = array<i32>} : memref<16x128xf32, #tpu.memory_space<vmem>>, vector<4x8xf32>,
    %c2_459 = arith.constant 2 : index
    %c0_460 = arith.constant 0 : index
    %290 = tpu.strided_load %arg7[%c2_459, %c0_460] {strides = array<i32: 2, 1>} : memref<100x8xf32, #tpu.memory_space<vmem>>, vector<4x8xf32>
    %c0_461 = arith.constant 0 : index
    %c16_462 = arith.constant 16 : index
    %291 = vector.load %arg10[%c0_461, %c16_462] : memref<16x128xf32, #tpu.memory_space<vmem>>, vector<4x8xf32>
    tpu.vector_store %arg10[%c0_461, %c16_462], %290 {strides = array<i32>} : memref<16x128xf32, #tpu.memory_space<vmem>>, vector<4x8xf32>,
    %c3_463 = arith.constant 3 : index
    %c0_464 = arith.constant 0 : index
    %292 = tpu.strided_load %arg7[%c3_463, %c0_464] {strides = array<i32: 2, 1>} : memref<100x8xf32, #tpu.memory_space<vmem>>, vector<4x8xf32>
    %c0_465 = arith.constant 0 : index
    %c24_466 = arith.constant 24 : index
    %293 = vector.load %arg10[%c0_465, %c24_466] : memref<16x128xf32, #tpu.memory_space<vmem>>, vector<4x8xf32>
    tpu.vector_store %arg10[%c0_465, %c24_466], %292 {strides = array<i32>} : memref<16x128xf32, #tpu.memory_space<vmem>>, vector<4x8xf32>,
    %c10 = arith.constant 10 : index
    %c0_467 = arith.constant 0 : index
    %294 = tpu.strided_load %arg7[%c10, %c0_467] {strides = array<i32: 2, 1>} : memref<100x8xf32, #tpu.memory_space<vmem>>, vector<4x8xf32>
    %c0_468 = arith.constant 0 : index
    %c32_469 = arith.constant 32 : index
    %295 = vector.load %arg10[%c0_468, %c32_469] : memref<16x128xf32, #tpu.memory_space<vmem>>, vector<4x8xf32>
    tpu.vector_store %arg10[%c0_468, %c32_469], %294 {strides = array<i32>} : memref<16x128xf32, #tpu.memory_space<vmem>>, vector<4x8xf32>,
    %c11_470 = arith.constant 11 : index
    %c0_471 = arith.constant 0 : index
    %296 = tpu.strided_load %arg7[%c11_470, %c0_471] {strides = array<i32: 2, 1>} : memref<100x8xf32, #tpu.memory_space<vmem>>, vector<4x8xf32>
    %c0_472 = arith.constant 0 : index
    %c40_473 = arith.constant 40 : index
    %297 = vector.load %arg10[%c0_472, %c40_473] : memref<16x128xf32, #tpu.memory_space<vmem>>, vector<4x8xf32>
    tpu.vector_store %arg10[%c0_472, %c40_473], %296 {strides = array<i32>} : memref<16x128xf32, #tpu.memory_space<vmem>>, vector<4x8xf32>,
    %c12_474 = arith.constant 12 : index
    %c0_475 = arith.constant 0 : index
    %298 = tpu.strided_load %arg7[%c12_474, %c0_475] {strides = array<i32: 2, 1>} : memref<100x8xf32, #tpu.memory_space<vmem>>, vector<4x8xf32>
    %c0_476 = arith.constant 0 : index
    %c48_477 = arith.constant 48 : index
    %299 = vector.load %arg10[%c0_476, %c48_477] : memref<16x128xf32, #tpu.memory_space<vmem>>, vector<4x8xf32>
    tpu.vector_store %arg10[%c0_476, %c48_477], %298 {strides = array<i32>} : memref<16x128xf32, #tpu.memory_space<vmem>>, vector<4x8xf32>,
    %c13 = arith.constant 13 : index
    %c0_478 = arith.constant 0 : index
    %300 = tpu.strided_load %arg7[%c13, %c0_478] {strides = array<i32: 2, 1>} : memref<100x8xf32, #tpu.memory_space<vmem>>, vector<4x8xf32>
    %c0_479 = arith.constant 0 : index
    %c56_480 = arith.constant 56 : index
    %301 = vector.load %arg10[%c0_479, %c56_480] : memref<16x128xf32, #tpu.memory_space<vmem>>, vector<4x8xf32>
    tpu.vector_store %arg10[%c0_479, %c56_480], %300 {strides = array<i32>} : memref<16x128xf32, #tpu.memory_space<vmem>>, vector<4x8xf32>,
    %c20_481 = arith.constant 20 : index
    %c0_482 = arith.constant 0 : index
    %302 = tpu.strided_load %arg7[%c20_481, %c0_482] {strides = array<i32: 2, 1>} : memref<100x8xf32, #tpu.memory_space<vmem>>, vector<4x8xf32>
    %c0_483 = arith.constant 0 : index
    %c64 = arith.constant 64 : index
    %303 = vector.load %arg10[%c0_483, %c64] : memref<16x128xf32, #tpu.memory_space<vmem>>, vector<4x8xf32>
    tpu.vector_store %arg10[%c0_483, %c64], %302 {strides = array<i32>} : memref<16x128xf32, #tpu.memory_space<vmem>>, vector<4x8xf32>,
    %c21_484 = arith.constant 21 : index
    %c0_485 = arith.constant 0 : index
    %304 = tpu.strided_load %arg7[%c21_484, %c0_485] {strides = array<i32: 2, 1>} : memref<100x8xf32, #tpu.memory_space<vmem>>, vector<4x8xf32>
    %c0_486 = arith.constant 0 : index
    %c72_487 = arith.constant 72 : index
    %305 = vector.load %arg10[%c0_486, %c72_487] : memref<16x128xf32, #tpu.memory_space<vmem>>, vector<4x8xf32>
    tpu.vector_store %arg10[%c0_486, %c72_487], %304 {strides = array<i32>} : memref<16x128xf32, #tpu.memory_space<vmem>>, vector<4x8xf32>,
    %c22 = arith.constant 22 : index
    %c0_488 = arith.constant 0 : index
    %306 = tpu.strided_load %arg7[%c22, %c0_488] {strides = array<i32: 2, 1>} : memref<100x8xf32, #tpu.memory_space<vmem>>, vector<4x8xf32>
    %c0_489 = arith.constant 0 : index
    %c80 = arith.constant 80 : index
    %307 = vector.load %arg10[%c0_489, %c80] : memref<16x128xf32, #tpu.memory_space<vmem>>, vector<4x8xf32>
    tpu.vector_store %arg10[%c0_489, %c80], %306 {strides = array<i32>} : memref<16x128xf32, #tpu.memory_space<vmem>>, vector<4x8xf32>,
    %c23 = arith.constant 23 : index
    %c0_490 = arith.constant 0 : index
    %308 = tpu.strided_load %arg7[%c23, %c0_490] {strides = array<i32: 2, 1>} : memref<100x8xf32, #tpu.memory_space<vmem>>, vector<4x8xf32>
    %c0_491 = arith.constant 0 : index
    %c88 = arith.constant 88 : index
    %309 = vector.load %arg10[%c0_491, %c88] : memref<16x128xf32, #tpu.memory_space<vmem>>, vector<4x8xf32>
    tpu.vector_store %arg10[%c0_491, %c88], %308 {strides = array<i32>} : memref<16x128xf32, #tpu.memory_space<vmem>>, vector<4x8xf32>,
    %c30 = arith.constant 30 : index
    %c0_492 = arith.constant 0 : index
    %310 = tpu.strided_load %arg7[%c30, %c0_492] {strides = array<i32: 2, 1>} : memref<100x8xf32, #tpu.memory_space<vmem>>, vector<4x8xf32>
    %c0_493 = arith.constant 0 : index
    %c96 = arith.constant 96 : index
    %311 = vector.load %arg10[%c0_493, %c96] : memref<16x128xf32, #tpu.memory_space<vmem>>, vector<4x8xf32>
    tpu.vector_store %arg10[%c0_493, %c96], %310 {strides = array<i32>} : memref<16x128xf32, #tpu.memory_space<vmem>>, vector<4x8xf32>,
    %c31_494 = arith.constant 31 : index
    %c0_495 = arith.constant 0 : index
    %312 = tpu.strided_load %arg7[%c31_494, %c0_495] {strides = array<i32: 2, 1>} : memref<100x8xf32, #tpu.memory_space<vmem>>, vector<4x8xf32>
    %c0_496 = arith.constant 0 : index
    %c104 = arith.constant 104 : index
    %313 = vector.load %arg10[%c0_496, %c104] : memref<16x128xf32, #tpu.memory_space<vmem>>, vector<4x8xf32>
    tpu.vector_store %arg10[%c0_496, %c104], %312 {strides = array<i32>} : memref<16x128xf32, #tpu.memory_space<vmem>>, vector<4x8xf32>,
    %c32_497 = arith.constant 32 : index
    %c0_498 = arith.constant 0 : index
    %314 = tpu.strided_load %arg7[%c32_497, %c0_498] {strides = array<i32: 2, 1>} : memref<100x8xf32, #tpu.memory_space<vmem>>, vector<4x8xf32>
    %c0_499 = arith.constant 0 : index
    %c112 = arith.constant 112 : index
    %315 = vector.load %arg10[%c0_499, %c112] : memref<16x128xf32, #tpu.memory_space<vmem>>, vector<4x8xf32>
    tpu.vector_store %arg10[%c0_499, %c112], %314 {strides = array<i32>} : memref<16x128xf32, #tpu.memory_space<vmem>>, vector<4x8xf32>,
    %c33 = arith.constant 33 : index
    %c0_500 = arith.constant 0 : index
    %316 = tpu.strided_load %arg7[%c33, %c0_500] {strides = array<i32: 2, 1>} : memref<100x8xf32, #tpu.memory_space<vmem>>, vector<4x8xf32>
    %c0_501 = arith.constant 0 : index
    %c120 = arith.constant 120 : index
    %317 = vector.load %arg10[%c0_501, %c120] : memref<16x128xf32, #tpu.memory_space<vmem>>, vector<4x8xf32>
    tpu.vector_store %arg10[%c0_501, %c120], %316 {strides = array<i32>} : memref<16x128xf32, #tpu.memory_space<vmem>>, vector<4x8xf32>,
    %c20_502 = arith.constant 20 : index
    %c0_503 = arith.constant 0 : index
    %318 = tpu.strided_load %arg7[%c20_502, %c0_503] {strides = array<i32: 2, 1>} : memref<100x8xf32, #tpu.memory_space<vmem>>, vector<4x8xf32>
    %c4_504 = arith.constant 4 : index
    %c0_505 = arith.constant 0 : index
    %319 = vector.load %arg10[%c4_504, %c0_505] : memref<16x128xf32, #tpu.memory_space<vmem>>, vector<4x8xf32>
    tpu.vector_store %arg10[%c4_504, %c0_505], %318 {strides = array<i32>} : memref<16x128xf32, #tpu.memory_space<vmem>>, vector<4x8xf32>,
    %c21_506 = arith.constant 21 : index
    %c0_507 = arith.constant 0 : index
    %320 = tpu.strided_load %arg7[%c21_506, %c0_507] {strides = array<i32: 2, 1>} : memref<100x8xf32, #tpu.memory_space<vmem>>, vector<4x8xf32>
    %c4_508 = arith.constant 4 : index
    %c8_509 = arith.constant 8 : index
    %321 = vector.load %arg10[%c4_508, %c8_509] : memref<16x128xf32, #tpu.memory_space<vmem>>, vector<4x8xf32>
    tpu.vector_store %arg10[%c4_508, %c8_509], %320 {strides = array<i32>} : memref<16x128xf32, #tpu.memory_space<vmem>>, vector<4x8xf32>,
    %c22_510 = arith.constant 22 : index
    %c0_511 = arith.constant 0 : index
    %322 = tpu.strided_load %arg7[%c22_510, %c0_511] {strides = array<i32: 2, 1>} : memref<100x8xf32, #tpu.memory_space<vmem>>, vector<4x8xf32>
    %c4_512 = arith.constant 4 : index
    %c16_513 = arith.constant 16 : index
    %323 = vector.load %arg10[%c4_512, %c16_513] : memref<16x128xf32, #tpu.memory_space<vmem>>, vector<4x8xf32>
    tpu.vector_store %arg10[%c4_512, %c16_513], %322 {strides = array<i32>} : memref<16x128xf32, #tpu.memory_space<vmem>>, vector<4x8xf32>,
    %c23_514 = arith.constant 23 : index
    %c0_515 = arith.constant 0 : index
    %324 = tpu.strided_load %arg7[%c23_514, %c0_515] {strides = array<i32: 2, 1>} : memref<100x8xf32, #tpu.memory_space<vmem>>, vector<4x8xf32>
    %c4_516 = arith.constant 4 : index
    %c24_517 = arith.constant 24 : index
    %325 = vector.load %arg10[%c4_516, %c24_517] : memref<16x128xf32, #tpu.memory_space<vmem>>, vector<4x8xf32>
    tpu.vector_store %arg10[%c4_516, %c24_517], %324 {strides = array<i32>} : memref<16x128xf32, #tpu.memory_space<vmem>>, vector<4x8xf32>,
    %c30_518 = arith.constant 30 : index
    %c0_519 = arith.constant 0 : index
    %326 = tpu.strided_load %arg7[%c30_518, %c0_519] {strides = array<i32: 2, 1>} : memref<100x8xf32, #tpu.memory_space<vmem>>, vector<4x8xf32>
    %c4_520 = arith.constant 4 : index
    %c32_521 = arith.constant 32 : index
    %327 = vector.load %arg10[%c4_520, %c32_521] : memref<16x128xf32, #tpu.memory_space<vmem>>, vector<4x8xf32>
    tpu.vector_store %arg10[%c4_520, %c32_521], %326 {strides = array<i32>} : memref<16x128xf32, #tpu.memory_space<vmem>>, vector<4x8xf32>,
    %c31_522 = arith.constant 31 : index
    %c0_523 = arith.constant 0 : index
    %328 = tpu.strided_load %arg7[%c31_522, %c0_523] {strides = array<i32: 2, 1>} : memref<100x8xf32, #tpu.memory_space<vmem>>, vector<4x8xf32>
    %c4_524 = arith.constant 4 : index
    %c40_525 = arith.constant 40 : index
    %329 = vector.load %arg10[%c4_524, %c40_525] : memref<16x128xf32, #tpu.memory_space<vmem>>, vector<4x8xf32>
    tpu.vector_store %arg10[%c4_524, %c40_525], %328 {strides = array<i32>} : memref<16x128xf32, #tpu.memory_space<vmem>>, vector<4x8xf32>,
    %c32_526 = arith.constant 32 : index
    %c0_527 = arith.constant 0 : index
    %330 = tpu.strided_load %arg7[%c32_526, %c0_527] {strides = array<i32: 2, 1>} : memref<100x8xf32, #tpu.memory_space<vmem>>, vector<4x8xf32>
    %c4_528 = arith.constant 4 : index
    %c48_529 = arith.constant 48 : index
    %331 = vector.load %arg10[%c4_528, %c48_529] : memref<16x128xf32, #tpu.memory_space<vmem>>, vector<4x8xf32>
    tpu.vector_store %arg10[%c4_528, %c48_529], %330 {strides = array<i32>} : memref<16x128xf32, #tpu.memory_space<vmem>>, vector<4x8xf32>,
    %c33_530 = arith.constant 33 : index
    %c0_531 = arith.constant 0 : index
    %332 = tpu.strided_load %arg7[%c33_530, %c0_531] {strides = array<i32: 2, 1>} : memref<100x8xf32, #tpu.memory_space<vmem>>, vector<4x8xf32>
    %c4_532 = arith.constant 4 : index
    %c56_533 = arith.constant 56 : index
    %333 = vector.load %arg10[%c4_532, %c56_533] : memref<16x128xf32, #tpu.memory_space<vmem>>, vector<4x8xf32>
    tpu.vector_store %arg10[%c4_532, %c56_533], %332 {strides = array<i32>} : memref<16x128xf32, #tpu.memory_space<vmem>>, vector<4x8xf32>,
    %c40_534 = arith.constant 40 : index
    %c0_535 = arith.constant 0 : index
    %334 = tpu.strided_load %arg7[%c40_534, %c0_535] {strides = array<i32: 2, 1>} : memref<100x8xf32, #tpu.memory_space<vmem>>, vector<4x8xf32>
    %c4_536 = arith.constant 4 : index
    %c64_537 = arith.constant 64 : index
    %335 = vector.load %arg10[%c4_536, %c64_537] : memref<16x128xf32, #tpu.memory_space<vmem>>, vector<4x8xf32>
    tpu.vector_store %arg10[%c4_536, %c64_537], %334 {strides = array<i32>} : memref<16x128xf32, #tpu.memory_space<vmem>>, vector<4x8xf32>,
    %c41_538 = arith.constant 41 : index
    %c0_539 = arith.constant 0 : index
    %336 = tpu.strided_load %arg7[%c41_538, %c0_539] {strides = array<i32: 2, 1>} : memref<100x8xf32, #tpu.memory_space<vmem>>, vector<4x8xf32>
    %c4_540 = arith.constant 4 : index
    %c72_541 = arith.constant 72 : index
    %337 = vector.load %arg10[%c4_540, %c72_541] : memref<16x128xf32, #tpu.memory_space<vmem>>, vector<4x8xf32>
    tpu.vector_store %arg10[%c4_540, %c72_541], %336 {strides = array<i32>} : memref<16x128xf32, #tpu.memory_space<vmem>>, vector<4x8xf32>,
    %c42 = arith.constant 42 : index
    %c0_542 = arith.constant 0 : index
    %338 = tpu.strided_load %arg7[%c42, %c0_542] {strides = array<i32: 2, 1>} : memref<100x8xf32, #tpu.memory_space<vmem>>, vector<4x8xf32>
    %c4_543 = arith.constant 4 : index
    %c80_544 = arith.constant 80 : index
    %339 = vector.load %arg10[%c4_543, %c80_544] : memref<16x128xf32, #tpu.memory_space<vmem>>, vector<4x8xf32>
    tpu.vector_store %arg10[%c4_543, %c80_544], %338 {strides = array<i32>} : memref<16x128xf32, #tpu.memory_space<vmem>>, vector<4x8xf32>,
    %c43 = arith.constant 43 : index
    %c0_545 = arith.constant 0 : index
    %340 = tpu.strided_load %arg7[%c43, %c0_545] {strides = array<i32: 2, 1>} : memref<100x8xf32, #tpu.memory_space<vmem>>, vector<4x8xf32>
    %c4_546 = arith.constant 4 : index
    %c88_547 = arith.constant 88 : index
    %341 = vector.load %arg10[%c4_546, %c88_547] : memref<16x128xf32, #tpu.memory_space<vmem>>, vector<4x8xf32>
    tpu.vector_store %arg10[%c4_546, %c88_547], %340 {strides = array<i32>} : memref<16x128xf32, #tpu.memory_space<vmem>>, vector<4x8xf32>,
    %c50 = arith.constant 50 : index
    %c0_548 = arith.constant 0 : index
    %342 = tpu.strided_load %arg7[%c50, %c0_548] {strides = array<i32: 2, 1>} : memref<100x8xf32, #tpu.memory_space<vmem>>, vector<4x8xf32>
    %c4_549 = arith.constant 4 : index
    %c96_550 = arith.constant 96 : index
    %343 = vector.load %arg10[%c4_549, %c96_550] : memref<16x128xf32, #tpu.memory_space<vmem>>, vector<4x8xf32>
    tpu.vector_store %arg10[%c4_549, %c96_550], %342 {strides = array<i32>} : memref<16x128xf32, #tpu.memory_space<vmem>>, vector<4x8xf32>,
    %c51_551 = arith.constant 51 : index
    %c0_552 = arith.constant 0 : index
    %344 = tpu.strided_load %arg7[%c51_551, %c0_552] {strides = array<i32: 2, 1>} : memref<100x8xf32, #tpu.memory_space<vmem>>, vector<4x8xf32>
    %c4_553 = arith.constant 4 : index
    %c104_554 = arith.constant 104 : index
    %345 = vector.load %arg10[%c4_553, %c104_554] : memref<16x128xf32, #tpu.memory_space<vmem>>, vector<4x8xf32>
    tpu.vector_store %arg10[%c4_553, %c104_554], %344 {strides = array<i32>} : memref<16x128xf32, #tpu.memory_space<vmem>>, vector<4x8xf32>,
    %c52_555 = arith.constant 52 : index
    %c0_556 = arith.constant 0 : index
    %346 = tpu.strided_load %arg7[%c52_555, %c0_556] {strides = array<i32: 2, 1>} : memref<100x8xf32, #tpu.memory_space<vmem>>, vector<4x8xf32>
    %c4_557 = arith.constant 4 : index
    %c112_558 = arith.constant 112 : index
    %347 = vector.load %arg10[%c4_557, %c112_558] : memref<16x128xf32, #tpu.memory_space<vmem>>, vector<4x8xf32>
    tpu.vector_store %arg10[%c4_557, %c112_558], %346 {strides = array<i32>} : memref<16x128xf32, #tpu.memory_space<vmem>>, vector<4x8xf32>,
    %c53 = arith.constant 53 : index
    %c0_559 = arith.constant 0 : index
    %348 = tpu.strided_load %arg7[%c53, %c0_559] {strides = array<i32: 2, 1>} : memref<100x8xf32, #tpu.memory_space<vmem>>, vector<4x8xf32>
    %c4_560 = arith.constant 4 : index
    %c120_561 = arith.constant 120 : index
    %349 = vector.load %arg10[%c4_560, %c120_561] : memref<16x128xf32, #tpu.memory_space<vmem>>, vector<4x8xf32>
    tpu.vector_store %arg10[%c4_560, %c120_561], %348 {strides = array<i32>} : memref<16x128xf32, #tpu.memory_space<vmem>>, vector<4x8xf32>,
    %c40_562 = arith.constant 40 : index
    %c0_563 = arith.constant 0 : index
    %350 = tpu.strided_load %arg7[%c40_562, %c0_563] {strides = array<i32: 2, 1>} : memref<100x8xf32, #tpu.memory_space<vmem>>, vector<4x8xf32>
    %c8_564 = arith.constant 8 : index
    %c0_565 = arith.constant 0 : index
    %351 = vector.load %arg10[%c8_564, %c0_565] : memref<16x128xf32, #tpu.memory_space<vmem>>, vector<4x8xf32>
    tpu.vector_store %arg10[%c8_564, %c0_565], %350 {strides = array<i32>} : memref<16x128xf32, #tpu.memory_space<vmem>>, vector<4x8xf32>,
    %c41_566 = arith.constant 41 : index
    %c0_567 = arith.constant 0 : index
    %352 = tpu.strided_load %arg7[%c41_566, %c0_567] {strides = array<i32: 2, 1>} : memref<100x8xf32, #tpu.memory_space<vmem>>, vector<4x8xf32>
    %c8_568 = arith.constant 8 : index
    %c8_569 = arith.constant 8 : index
    %353 = vector.load %arg10[%c8_568, %c8_569] : memref<16x128xf32, #tpu.memory_space<vmem>>, vector<4x8xf32>
    tpu.vector_store %arg10[%c8_568, %c8_569], %352 {strides = array<i32>} : memref<16x128xf32, #tpu.memory_space<vmem>>, vector<4x8xf32>,
    %c42_570 = arith.constant 42 : index
    %c0_571 = arith.constant 0 : index
    %354 = tpu.strided_load %arg7[%c42_570, %c0_571] {strides = array<i32: 2, 1>} : memref<100x8xf32, #tpu.memory_space<vmem>>, vector<4x8xf32>
    %c8_572 = arith.constant 8 : index
    %c16_573 = arith.constant 16 : index
    %355 = vector.load %arg10[%c8_572, %c16_573] : memref<16x128xf32, #tpu.memory_space<vmem>>, vector<4x8xf32>
    tpu.vector_store %arg10[%c8_572, %c16_573], %354 {strides = array<i32>} : memref<16x128xf32, #tpu.memory_space<vmem>>, vector<4x8xf32>,
    %c43_574 = arith.constant 43 : index
    %c0_575 = arith.constant 0 : index
    %356 = tpu.strided_load %arg7[%c43_574, %c0_575] {strides = array<i32: 2, 1>} : memref<100x8xf32, #tpu.memory_space<vmem>>, vector<4x8xf32>
    %c8_576 = arith.constant 8 : index
    %c24_577 = arith.constant 24 : index
    %357 = vector.load %arg10[%c8_576, %c24_577] : memref<16x128xf32, #tpu.memory_space<vmem>>, vector<4x8xf32>
    tpu.vector_store %arg10[%c8_576, %c24_577], %356 {strides = array<i32>} : memref<16x128xf32, #tpu.memory_space<vmem>>, vector<4x8xf32>,
    %c50_578 = arith.constant 50 : index
    %c0_579 = arith.constant 0 : index
    %358 = tpu.strided_load %arg7[%c50_578, %c0_579] {strides = array<i32: 2, 1>} : memref<100x8xf32, #tpu.memory_space<vmem>>, vector<4x8xf32>
    %c8_580 = arith.constant 8 : index
    %c32_581 = arith.constant 32 : index
    %359 = vector.load %arg10[%c8_580, %c32_581] : memref<16x128xf32, #tpu.memory_space<vmem>>, vector<4x8xf32>
    tpu.vector_store %arg10[%c8_580, %c32_581], %358 {strides = array<i32>} : memref<16x128xf32, #tpu.memory_space<vmem>>, vector<4x8xf32>,
    %c51_582 = arith.constant 51 : index
    %c0_583 = arith.constant 0 : index
    %360 = tpu.strided_load %arg7[%c51_582, %c0_583] {strides = array<i32: 2, 1>} : memref<100x8xf32, #tpu.memory_space<vmem>>, vector<4x8xf32>
    %c8_584 = arith.constant 8 : index
    %c40_585 = arith.constant 40 : index
    %361 = vector.load %arg10[%c8_584, %c40_585] : memref<16x128xf32, #tpu.memory_space<vmem>>, vector<4x8xf32>
    tpu.vector_store %arg10[%c8_584, %c40_585], %360 {strides = array<i32>} : memref<16x128xf32, #tpu.memory_space<vmem>>, vector<4x8xf32>,
    %c52_586 = arith.constant 52 : index
    %c0_587 = arith.constant 0 : index
    %362 = tpu.strided_load %arg7[%c52_586, %c0_587] {strides = array<i32: 2, 1>} : memref<100x8xf32, #tpu.memory_space<vmem>>, vector<4x8xf32>
    %c8_588 = arith.constant 8 : index
    %c48_589 = arith.constant 48 : index
    %363 = vector.load %arg10[%c8_588, %c48_589] : memref<16x128xf32, #tpu.memory_space<vmem>>, vector<4x8xf32>
    tpu.vector_store %arg10[%c8_588, %c48_589], %362 {strides = array<i32>} : memref<16x128xf32, #tpu.memory_space<vmem>>, vector<4x8xf32>,
    %c53_590 = arith.constant 53 : index
    %c0_591 = arith.constant 0 : index
    %364 = tpu.strided_load %arg7[%c53_590, %c0_591] {strides = array<i32: 2, 1>} : memref<100x8xf32, #tpu.memory_space<vmem>>, vector<4x8xf32>
    %c8_592 = arith.constant 8 : index
    %c56_593 = arith.constant 56 : index
    %365 = vector.load %arg10[%c8_592, %c56_593] : memref<16x128xf32, #tpu.memory_space<vmem>>, vector<4x8xf32>
    tpu.vector_store %arg10[%c8_592, %c56_593], %364 {strides = array<i32>} : memref<16x128xf32, #tpu.memory_space<vmem>>, vector<4x8xf32>,
    %c60_594 = arith.constant 60 : index
    %c0_595 = arith.constant 0 : index
    %366 = tpu.strided_load %arg7[%c60_594, %c0_595] {strides = array<i32: 2, 1>} : memref<100x8xf32, #tpu.memory_space<vmem>>, vector<4x8xf32>
    %c8_596 = arith.constant 8 : index
    %c64_597 = arith.constant 64 : index
    %367 = vector.load %arg10[%c8_596, %c64_597] : memref<16x128xf32, #tpu.memory_space<vmem>>, vector<4x8xf32>
    tpu.vector_store %arg10[%c8_596, %c64_597], %366 {strides = array<i32>} : memref<16x128xf32, #tpu.memory_space<vmem>>, vector<4x8xf32>,
    %c61_598 = arith.constant 61 : index
    %c0_599 = arith.constant 0 : index
    %368 = tpu.strided_load %arg7[%c61_598, %c0_599] {strides = array<i32: 2, 1>} : memref<100x8xf32, #tpu.memory_space<vmem>>, vector<4x8xf32>
    %c8_600 = arith.constant 8 : index
    %c72_601 = arith.constant 72 : index
    %369 = vector.load %arg10[%c8_600, %c72_601] : memref<16x128xf32, #tpu.memory_space<vmem>>, vector<4x8xf32>
    tpu.vector_store %arg10[%c8_600, %c72_601], %368 {strides = array<i32>} : memref<16x128xf32, #tpu.memory_space<vmem>>, vector<4x8xf32>,
    %c62 = arith.constant 62 : index
    %c0_602 = arith.constant 0 : index
    %370 = tpu.strided_load %arg7[%c62, %c0_602] {strides = array<i32: 2, 1>} : memref<100x8xf32, #tpu.memory_space<vmem>>, vector<4x8xf32>
    %c8_603 = arith.constant 8 : index
    %c80_604 = arith.constant 80 : index
    %371 = vector.load %arg10[%c8_603, %c80_604] : memref<16x128xf32, #tpu.memory_space<vmem>>, vector<4x8xf32>
    tpu.vector_store %arg10[%c8_603, %c80_604], %370 {strides = array<i32>} : memref<16x128xf32, #tpu.memory_space<vmem>>, vector<4x8xf32>,
    %c63 = arith.constant 63 : index
    %c0_605 = arith.constant 0 : index
    %372 = tpu.strided_load %arg7[%c63, %c0_605] {strides = array<i32: 2, 1>} : memref<100x8xf32, #tpu.memory_space<vmem>>, vector<4x8xf32>
    %c8_606 = arith.constant 8 : index
    %c88_607 = arith.constant 88 : index
    %373 = vector.load %arg10[%c8_606, %c88_607] : memref<16x128xf32, #tpu.memory_space<vmem>>, vector<4x8xf32>
    tpu.vector_store %arg10[%c8_606, %c88_607], %372 {strides = array<i32>} : memref<16x128xf32, #tpu.memory_space<vmem>>, vector<4x8xf32>,
    %c70 = arith.constant 70 : index
    %c0_608 = arith.constant 0 : index
    %374 = tpu.strided_load %arg7[%c70, %c0_608] {strides = array<i32: 2, 1>} : memref<100x8xf32, #tpu.memory_space<vmem>>, vector<4x8xf32>
    %c8_609 = arith.constant 8 : index
    %c96_610 = arith.constant 96 : index
    %375 = vector.load %arg10[%c8_609, %c96_610] : memref<16x128xf32, #tpu.memory_space<vmem>>, vector<4x8xf32>
    tpu.vector_store %arg10[%c8_609, %c96_610], %374 {strides = array<i32>} : memref<16x128xf32, #tpu.memory_space<vmem>>, vector<4x8xf32>,
    %c71_611 = arith.constant 71 : index
    %c0_612 = arith.constant 0 : index
    %376 = tpu.strided_load %arg7[%c71_611, %c0_612] {strides = array<i32: 2, 1>} : memref<100x8xf32, #tpu.memory_space<vmem>>, vector<4x8xf32>
    %c8_613 = arith.constant 8 : index
    %c104_614 = arith.constant 104 : index
    %377 = vector.load %arg10[%c8_613, %c104_614] : memref<16x128xf32, #tpu.memory_space<vmem>>, vector<4x8xf32>
    tpu.vector_store %arg10[%c8_613, %c104_614], %376 {strides = array<i32>} : memref<16x128xf32, #tpu.memory_space<vmem>>, vector<4x8xf32>,
    %c72_615 = arith.constant 72 : index
    %c0_616 = arith.constant 0 : index
    %378 = tpu.strided_load %arg7[%c72_615, %c0_616] {strides = array<i32: 2, 1>} : memref<100x8xf32, #tpu.memory_space<vmem>>, vector<4x8xf32>
    %c8_617 = arith.constant 8 : index
    %c112_618 = arith.constant 112 : index
    %379 = vector.load %arg10[%c8_617, %c112_618] : memref<16x128xf32, #tpu.memory_space<vmem>>, vector<4x8xf32>
    tpu.vector_store %arg10[%c8_617, %c112_618], %378 {strides = array<i32>} : memref<16x128xf32, #tpu.memory_space<vmem>>, vector<4x8xf32>,
    %c73_619 = arith.constant 73 : index
    %c0_620 = arith.constant 0 : index
    %380 = tpu.strided_load %arg7[%c73_619, %c0_620] {strides = array<i32: 2, 1>} : memref<100x8xf32, #tpu.memory_space<vmem>>, vector<4x8xf32>
    %c8_621 = arith.constant 8 : index
    %c120_622 = arith.constant 120 : index
    %381 = vector.load %arg10[%c8_621, %c120_622] : memref<16x128xf32, #tpu.memory_space<vmem>>, vector<4x8xf32>
    tpu.vector_store %arg10[%c8_621, %c120_622], %380 {strides = array<i32>} : memref<16x128xf32, #tpu.memory_space<vmem>>, vector<4x8xf32>,
    %c60_623 = arith.constant 60 : index
    %c0_624 = arith.constant 0 : index
    %382 = tpu.strided_load %arg7[%c60_623, %c0_624] {strides = array<i32: 2, 1>} : memref<100x8xf32, #tpu.memory_space<vmem>>, vector<4x8xf32>
    %c12_625 = arith.constant 12 : index
    %c0_626 = arith.constant 0 : index
    %383 = vector.load %arg10[%c12_625, %c0_626] : memref<16x128xf32, #tpu.memory_space<vmem>>, vector<4x8xf32>
    tpu.vector_store %arg10[%c12_625, %c0_626], %382 {strides = array<i32>} : memref<16x128xf32, #tpu.memory_space<vmem>>, vector<4x8xf32>,
    %c61_627 = arith.constant 61 : index
    %c0_628 = arith.constant 0 : index
    %384 = tpu.strided_load %arg7[%c61_627, %c0_628] {strides = array<i32: 2, 1>} : memref<100x8xf32, #tpu.memory_space<vmem>>, vector<4x8xf32>
    %c12_629 = arith.constant 12 : index
    %c8_630 = arith.constant 8 : index
    %385 = vector.load %arg10[%c12_629, %c8_630] : memref<16x128xf32, #tpu.memory_space<vmem>>, vector<4x8xf32>
    tpu.vector_store %arg10[%c12_629, %c8_630], %384 {strides = array<i32>} : memref<16x128xf32, #tpu.memory_space<vmem>>, vector<4x8xf32>,
    %c62_631 = arith.constant 62 : index
    %c0_632 = arith.constant 0 : index
    %386 = tpu.strided_load %arg7[%c62_631, %c0_632] {strides = array<i32: 2, 1>} : memref<100x8xf32, #tpu.memory_space<vmem>>, vector<4x8xf32>
    %c12_633 = arith.constant 12 : index
    %c16_634 = arith.constant 16 : index
    %387 = vector.load %arg10[%c12_633, %c16_634] : memref<16x128xf32, #tpu.memory_space<vmem>>, vector<4x8xf32>
    tpu.vector_store %arg10[%c12_633, %c16_634], %386 {strides = array<i32>} : memref<16x128xf32, #tpu.memory_space<vmem>>, vector<4x8xf32>,
    %c63_635 = arith.constant 63 : index
    %c0_636 = arith.constant 0 : index
    %388 = tpu.strided_load %arg7[%c63_635, %c0_636] {strides = array<i32: 2, 1>} : memref<100x8xf32, #tpu.memory_space<vmem>>, vector<4x8xf32>
    %c12_637 = arith.constant 12 : index
    %c24_638 = arith.constant 24 : index
    %389 = vector.load %arg10[%c12_637, %c24_638] : memref<16x128xf32, #tpu.memory_space<vmem>>, vector<4x8xf32>
    tpu.vector_store %arg10[%c12_637, %c24_638], %388 {strides = array<i32>} : memref<16x128xf32, #tpu.memory_space<vmem>>, vector<4x8xf32>,
    %c70_639 = arith.constant 70 : index
    %c0_640 = arith.constant 0 : index
    %390 = tpu.strided_load %arg7[%c70_639, %c0_640] {strides = array<i32: 2, 1>} : memref<100x8xf32, #tpu.memory_space<vmem>>, vector<4x8xf32>
    %c12_641 = arith.constant 12 : index
    %c32_642 = arith.constant 32 : index
    %391 = vector.load %arg10[%c12_641, %c32_642] : memref<16x128xf32, #tpu.memory_space<vmem>>, vector<4x8xf32>
    tpu.vector_store %arg10[%c12_641, %c32_642], %390 {strides = array<i32>} : memref<16x128xf32, #tpu.memory_space<vmem>>, vector<4x8xf32>,
    %c71_643 = arith.constant 71 : index
    %c0_644 = arith.constant 0 : index
    %392 = tpu.strided_load %arg7[%c71_643, %c0_644] {strides = array<i32: 2, 1>} : memref<100x8xf32, #tpu.memory_space<vmem>>, vector<4x8xf32>
    %c12_645 = arith.constant 12 : index
    %c40_646 = arith.constant 40 : index
    %393 = vector.load %arg10[%c12_645, %c40_646] : memref<16x128xf32, #tpu.memory_space<vmem>>, vector<4x8xf32>
    tpu.vector_store %arg10[%c12_645, %c40_646], %392 {strides = array<i32>} : memref<16x128xf32, #tpu.memory_space<vmem>>, vector<4x8xf32>,
    %c72_647 = arith.constant 72 : index
    %c0_648 = arith.constant 0 : index
    %394 = tpu.strided_load %arg7[%c72_647, %c0_648] {strides = array<i32: 2, 1>} : memref<100x8xf32, #tpu.memory_space<vmem>>, vector<4x8xf32>
    %c12_649 = arith.constant 12 : index
    %c48_650 = arith.constant 48 : index
    %395 = vector.load %arg10[%c12_649, %c48_650] : memref<16x128xf32, #tpu.memory_space<vmem>>, vector<4x8xf32>
    tpu.vector_store %arg10[%c12_649, %c48_650], %394 {strides = array<i32>} : memref<16x128xf32, #tpu.memory_space<vmem>>, vector<4x8xf32>,
    %c73_651 = arith.constant 73 : index
    %c0_652 = arith.constant 0 : index
    %396 = tpu.strided_load %arg7[%c73_651, %c0_652] {strides = array<i32: 2, 1>} : memref<100x8xf32, #tpu.memory_space<vmem>>, vector<4x8xf32>
    %c12_653 = arith.constant 12 : index
    %c56_654 = arith.constant 56 : index
    %397 = vector.load %arg10[%c12_653, %c56_654] : memref<16x128xf32, #tpu.memory_space<vmem>>, vector<4x8xf32>
    tpu.vector_store %arg10[%c12_653, %c56_654], %396 {strides = array<i32>} : memref<16x128xf32, #tpu.memory_space<vmem>>, vector<4x8xf32>,
    %c80_655 = arith.constant 80 : index
    %c0_656 = arith.constant 0 : index
    %398 = tpu.strided_load %arg7[%c80_655, %c0_656] {strides = array<i32: 2, 1>} : memref<100x8xf32, #tpu.memory_space<vmem>>, vector<4x8xf32>
    %c12_657 = arith.constant 12 : index
    %c64_658 = arith.constant 64 : index
    %399 = vector.load %arg10[%c12_657, %c64_658] : memref<16x128xf32, #tpu.memory_space<vmem>>, vector<4x8xf32>
    tpu.vector_store %arg10[%c12_657, %c64_658], %398 {strides = array<i32>} : memref<16x128xf32, #tpu.memory_space<vmem>>, vector<4x8xf32>,
    %c81_659 = arith.constant 81 : index
    %c0_660 = arith.constant 0 : index
    %400 = tpu.strided_load %arg7[%c81_659, %c0_660] {strides = array<i32: 2, 1>} : memref<100x8xf32, #tpu.memory_space<vmem>>, vector<4x8xf32>
    %c12_661 = arith.constant 12 : index
    %c72_662 = arith.constant 72 : index
    %401 = vector.load %arg10[%c12_661, %c72_662] : memref<16x128xf32, #tpu.memory_space<vmem>>, vector<4x8xf32>
    tpu.vector_store %arg10[%c12_661, %c72_662], %400 {strides = array<i32>} : memref<16x128xf32, #tpu.memory_space<vmem>>, vector<4x8xf32>,
    %c82 = arith.constant 82 : index
    %c0_663 = arith.constant 0 : index
    %402 = tpu.strided_load %arg7[%c82, %c0_663] {strides = array<i32: 2, 1>} : memref<100x8xf32, #tpu.memory_space<vmem>>, vector<4x8xf32>
    %c12_664 = arith.constant 12 : index
    %c80_665 = arith.constant 80 : index
    %403 = vector.load %arg10[%c12_664, %c80_665] : memref<16x128xf32, #tpu.memory_space<vmem>>, vector<4x8xf32>
    tpu.vector_store %arg10[%c12_664, %c80_665], %402 {strides = array<i32>} : memref<16x128xf32, #tpu.memory_space<vmem>>, vector<4x8xf32>,
    %c83 = arith.constant 83 : index
    %c0_666 = arith.constant 0 : index
    %404 = tpu.strided_load %arg7[%c83, %c0_666] {strides = array<i32: 2, 1>} : memref<100x8xf32, #tpu.memory_space<vmem>>, vector<4x8xf32>
    %c12_667 = arith.constant 12 : index
    %c88_668 = arith.constant 88 : index
    %405 = vector.load %arg10[%c12_667, %c88_668] : memref<16x128xf32, #tpu.memory_space<vmem>>, vector<4x8xf32>
    tpu.vector_store %arg10[%c12_667, %c88_668], %404 {strides = array<i32>} : memref<16x128xf32, #tpu.memory_space<vmem>>, vector<4x8xf32>,
    %c90_669 = arith.constant 90 : index
    %c0_670 = arith.constant 0 : index
    %406 = tpu.strided_load %arg7[%c90_669, %c0_670] {strides = array<i32: 2, 1>} : memref<100x8xf32, #tpu.memory_space<vmem>>, vector<4x8xf32>
    %c12_671 = arith.constant 12 : index
    %c96_672 = arith.constant 96 : index
    %407 = vector.load %arg10[%c12_671, %c96_672] : memref<16x128xf32, #tpu.memory_space<vmem>>, vector<4x8xf32>
    tpu.vector_store %arg10[%c12_671, %c96_672], %406 {strides = array<i32>} : memref<16x128xf32, #tpu.memory_space<vmem>>, vector<4x8xf32>,
    %c91_673 = arith.constant 91 : index
    %c0_674 = arith.constant 0 : index
    %408 = tpu.strided_load %arg7[%c91_673, %c0_674] {strides = array<i32: 2, 1>} : memref<100x8xf32, #tpu.memory_space<vmem>>, vector<4x8xf32>
    %c12_675 = arith.constant 12 : index
    %c104_676 = arith.constant 104 : index
    %409 = vector.load %arg10[%c12_675, %c104_676] : memref<16x128xf32, #tpu.memory_space<vmem>>, vector<4x8xf32>
    tpu.vector_store %arg10[%c12_675, %c104_676], %408 {strides = array<i32>} : memref<16x128xf32, #tpu.memory_space<vmem>>, vector<4x8xf32>,
    %c92_677 = arith.constant 92 : index
    %c0_678 = arith.constant 0 : index
    %410 = tpu.strided_load %arg7[%c92_677, %c0_678] {strides = array<i32: 2, 1>} : memref<100x8xf32, #tpu.memory_space<vmem>>, vector<4x8xf32>
    %c12_679 = arith.constant 12 : index
    %c112_680 = arith.constant 112 : index
    %411 = vector.load %arg10[%c12_679, %c112_680] : memref<16x128xf32, #tpu.memory_space<vmem>>, vector<4x8xf32>
    tpu.vector_store %arg10[%c12_679, %c112_680], %410 {strides = array<i32>} : memref<16x128xf32, #tpu.memory_space<vmem>>, vector<4x8xf32>,
    %c93_681 = arith.constant 93 : index
    %c0_682 = arith.constant 0 : index
    %412 = tpu.strided_load %arg7[%c93_681, %c0_682] {strides = array<i32: 2, 1>} : memref<100x8xf32, #tpu.memory_space<vmem>>, vector<4x8xf32>
    %c12_683 = arith.constant 12 : index
    %c120_684 = arith.constant 120 : index
    %413 = vector.load %arg10[%c12_683, %c120_684] : memref<16x128xf32, #tpu.memory_space<vmem>>, vector<4x8xf32>
    tpu.vector_store %arg10[%c12_683, %c120_684], %412 {strides = array<i32>} : memref<16x128xf32, #tpu.memory_space<vmem>>, vector<4x8xf32>,
    %c0_685 = arith.constant 0 : index
    %c0_686 = arith.constant 0 : index
    %414 = vector.load %arg10[%c0_685, %c0_686] : memref<16x128xf32, #tpu.memory_space<vmem>>, vector<16x128xf32>
    %415 = arith.truncf %414 : vector<16x128xf32> to vector<16x128xbf16>
    %c0_687 = arith.constant 0 : index
    %c0_688 = arith.constant 0 : index
    %416 = vector.load %arg3[%c0_687, %c0_688] : memref<128x16xbf16, #tpu.memory_space<vmem>>, vector<128x16xbf16>
    %cst_689 = arith.constant dense<0.000000e+00> : vector<16x16xf32>
    %417 = tpu.matmul %415, %416, %cst_689 {dimension_numbers = #tpu.dot_dimension_numbers<[1], [0], [0], [1], [0, 0, 1, 1], [], []>} : vector<16x128xbf16>, vector<128x16xbf16>, vector<16x16xf32> -> vector<16x16xf32>
    %cst_690 = arith.constant 0.000000e+00 : f32
    %418 = vector.broadcast %cst_690 : f32 to vector<16x16xf32>
    %419 = arith.cmpf oge, %417, %418 : vector<16x16xf32>
    %cst_691 = arith.constant 2.000000e-01 : f32
    %420 = vector.broadcast %cst_691 : f32 to vector<16x16xf32>
    %421 = arith.mulf %420, %417 : vector<16x16xf32>
    %422 = arith.select %419, %417, %421 : vector<16x16xi1>, vector<16x16xf32>
    %423 = vector.extract_strided_slice %422 {offsets = [0, 0], sizes = [4, 16], strides = [1, 1]} : vector<16x16xf32> to vector<4x16xf32>
    %c0_692 = arith.constant 0 : index
    %c0_693 = arith.constant 0 : index
    %424 = vector.load %arg8[%c0_692, %c0_693] : memref<16x16xf32, #tpu.memory_space<vmem>>, vector<4x16xf32>
    tpu.vector_store %arg8[%c0_692, %c0_693], %423 {strides = array<i32>} : memref<16x16xf32, #tpu.memory_space<vmem>>, vector<4x16xf32>,
    %425 = vector.extract_strided_slice %422 {offsets = [4, 0], sizes = [4, 16], strides = [1, 1]} : vector<16x16xf32> to vector<4x16xf32>
    %c4_694 = arith.constant 4 : index
    %c0_695 = arith.constant 0 : index
    %426 = vector.load %arg8[%c4_694, %c0_695] : memref<16x16xf32, #tpu.memory_space<vmem>>, vector<4x16xf32>
    tpu.vector_store %arg8[%c4_694, %c0_695], %425 {strides = array<i32>} : memref<16x16xf32, #tpu.memory_space<vmem>>, vector<4x16xf32>,
    %427 = vector.extract_strided_slice %422 {offsets = [8, 0], sizes = [4, 16], strides = [1, 1]} : vector<16x16xf32> to vector<4x16xf32>
    %c8_696 = arith.constant 8 : index
    %c0_697 = arith.constant 0 : index
    %428 = vector.load %arg8[%c8_696, %c0_697] : memref<16x16xf32, #tpu.memory_space<vmem>>, vector<4x16xf32>
    tpu.vector_store %arg8[%c8_696, %c0_697], %427 {strides = array<i32>} : memref<16x16xf32, #tpu.memory_space<vmem>>, vector<4x16xf32>,
    %429 = vector.extract_strided_slice %422 {offsets = [12, 0], sizes = [4, 16], strides = [1, 1]} : vector<16x16xf32> to vector<4x16xf32>
    %c12_698 = arith.constant 12 : index
    %c0_699 = arith.constant 0 : index
    %430 = vector.load %arg8[%c12_698, %c0_699] : memref<16x16xf32, #tpu.memory_space<vmem>>, vector<4x16xf32>
    tpu.vector_store %arg8[%c12_698, %c0_699], %429 {strides = array<i32>} : memref<16x16xf32, #tpu.memory_space<vmem>>, vector<4x16xf32>,
    %c0_700 = arith.constant 0 : index
    %c0_701 = arith.constant 0 : index
    %431 = vector.load %arg8[%c0_700, %c0_701] : memref<16x16xf32, #tpu.memory_space<vmem>>, vector<1x16xf32>
    %c0_702 = arith.constant 0 : index
    %c0_703 = arith.constant 0 : index
    %432 = vector.load %arg11[%c0_702, %c0_703] : memref<1x256xf32, #tpu.memory_space<vmem>>, vector<1x16xf32>
    tpu.vector_store %arg11[%c0_702, %c0_703], %431 {strides = array<i32>} : memref<1x256xf32, #tpu.memory_space<vmem>>, vector<1x16xf32>,
    %c1_704 = arith.constant 1 : index
    %c0_705 = arith.constant 0 : index
    %433 = vector.load %arg8[%c1_704, %c0_705] : memref<16x16xf32, #tpu.memory_space<vmem>>, vector<1x16xf32>
    %c0_706 = arith.constant 0 : index
    %c16_707 = arith.constant 16 : index
    %434 = vector.load %arg11[%c0_706, %c16_707] : memref<1x256xf32, #tpu.memory_space<vmem>>, vector<1x16xf32>
    tpu.vector_store %arg11[%c0_706, %c16_707], %433 {strides = array<i32>} : memref<1x256xf32, #tpu.memory_space<vmem>>, vector<1x16xf32>,
    %c2_708 = arith.constant 2 : index
    %c0_709 = arith.constant 0 : index
    %435 = vector.load %arg8[%c2_708, %c0_709] : memref<16x16xf32, #tpu.memory_space<vmem>>, vector<1x16xf32>
    %c0_710 = arith.constant 0 : index
    %c32_711 = arith.constant 32 : index
    %436 = vector.load %arg11[%c0_710, %c32_711] : memref<1x256xf32, #tpu.memory_space<vmem>>, vector<1x16xf32>
    tpu.vector_store %arg11[%c0_710, %c32_711], %435 {strides = array<i32>} : memref<1x256xf32, #tpu.memory_space<vmem>>, vector<1x16xf32>,
    %c3_712 = arith.constant 3 : index
    %c0_713 = arith.constant 0 : index
    %437 = vector.load %arg8[%c3_712, %c0_713] : memref<16x16xf32, #tpu.memory_space<vmem>>, vector<1x16xf32>
    %c0_714 = arith.constant 0 : index
    %c48_715 = arith.constant 48 : index
    %438 = vector.load %arg11[%c0_714, %c48_715] : memref<1x256xf32, #tpu.memory_space<vmem>>, vector<1x16xf32>
    tpu.vector_store %arg11[%c0_714, %c48_715], %437 {strides = array<i32>} : memref<1x256xf32, #tpu.memory_space<vmem>>, vector<1x16xf32>,
    %c4_716 = arith.constant 4 : index
    %c0_717 = arith.constant 0 : index
    %439 = vector.load %arg8[%c4_716, %c0_717] : memref<16x16xf32, #tpu.memory_space<vmem>>, vector<1x16xf32>
    %c0_718 = arith.constant 0 : index
    %c64_719 = arith.constant 64 : index
    %440 = vector.load %arg11[%c0_718, %c64_719] : memref<1x256xf32, #tpu.memory_space<vmem>>, vector<1x16xf32>
    tpu.vector_store %arg11[%c0_718, %c64_719], %439 {strides = array<i32>} : memref<1x256xf32, #tpu.memory_space<vmem>>, vector<1x16xf32>,
    %c5 = arith.constant 5 : index
    %c0_720 = arith.constant 0 : index
    %441 = vector.load %arg8[%c5, %c0_720] : memref<16x16xf32, #tpu.memory_space<vmem>>, vector<1x16xf32>
    %c0_721 = arith.constant 0 : index
    %c80_722 = arith.constant 80 : index
    %442 = vector.load %arg11[%c0_721, %c80_722] : memref<1x256xf32, #tpu.memory_space<vmem>>, vector<1x16xf32>
    tpu.vector_store %arg11[%c0_721, %c80_722], %441 {strides = array<i32>} : memref<1x256xf32, #tpu.memory_space<vmem>>, vector<1x16xf32>,
    %c6 = arith.constant 6 : index
    %c0_723 = arith.constant 0 : index
    %443 = vector.load %arg8[%c6, %c0_723] : memref<16x16xf32, #tpu.memory_space<vmem>>, vector<1x16xf32>
    %c0_724 = arith.constant 0 : index
    %c96_725 = arith.constant 96 : index
    %444 = vector.load %arg11[%c0_724, %c96_725] : memref<1x256xf32, #tpu.memory_space<vmem>>, vector<1x16xf32>
    tpu.vector_store %arg11[%c0_724, %c96_725], %443 {strides = array<i32>} : memref<1x256xf32, #tpu.memory_space<vmem>>, vector<1x16xf32>,
    %c7 = arith.constant 7 : index
    %c0_726 = arith.constant 0 : index
    %445 = vector.load %arg8[%c7, %c0_726] : memref<16x16xf32, #tpu.memory_space<vmem>>, vector<1x16xf32>
    %c0_727 = arith.constant 0 : index
    %c112_728 = arith.constant 112 : index
    %446 = vector.load %arg11[%c0_727, %c112_728] : memref<1x256xf32, #tpu.memory_space<vmem>>, vector<1x16xf32>
    tpu.vector_store %arg11[%c0_727, %c112_728], %445 {strides = array<i32>} : memref<1x256xf32, #tpu.memory_space<vmem>>, vector<1x16xf32>,
    %c8_729 = arith.constant 8 : index
    %c0_730 = arith.constant 0 : index
    %447 = vector.load %arg8[%c8_729, %c0_730] : memref<16x16xf32, #tpu.memory_space<vmem>>, vector<1x16xf32>
    %c0_731 = arith.constant 0 : index
    %c128_732 = arith.constant 128 : index
    %448 = vector.load %arg11[%c0_731, %c128_732] : memref<1x256xf32, #tpu.memory_space<vmem>>, vector<1x16xf32>
    tpu.vector_store %arg11[%c0_731, %c128_732], %447 {strides = array<i32>} : memref<1x256xf32, #tpu.memory_space<vmem>>, vector<1x16xf32>,
    %c9 = arith.constant 9 : index
    %c0_733 = arith.constant 0 : index
    %449 = vector.load %arg8[%c9, %c0_733] : memref<16x16xf32, #tpu.memory_space<vmem>>, vector<1x16xf32>
    %c0_734 = arith.constant 0 : index
    %c144_735 = arith.constant 144 : index
    %450 = vector.load %arg11[%c0_734, %c144_735] : memref<1x256xf32, #tpu.memory_space<vmem>>, vector<1x16xf32>
    tpu.vector_store %arg11[%c0_734, %c144_735], %449 {strides = array<i32>} : memref<1x256xf32, #tpu.memory_space<vmem>>, vector<1x16xf32>,
    %c10_736 = arith.constant 10 : index
    %c0_737 = arith.constant 0 : index
    %451 = vector.load %arg8[%c10_736, %c0_737] : memref<16x16xf32, #tpu.memory_space<vmem>>, vector<1x16xf32>
    %c0_738 = arith.constant 0 : index
    %c160 = arith.constant 160 : index
    %452 = vector.load %arg11[%c0_738, %c160] : memref<1x256xf32, #tpu.memory_space<vmem>>, vector<1x16xf32>
    tpu.vector_store %arg11[%c0_738, %c160], %451 {strides = array<i32>} : memref<1x256xf32, #tpu.memory_space<vmem>>, vector<1x16xf32>,
    %c11_739 = arith.constant 11 : index
    %c0_740 = arith.constant 0 : index
    %453 = vector.load %arg8[%c11_739, %c0_740] : memref<16x16xf32, #tpu.memory_space<vmem>>, vector<1x16xf32>
    %c0_741 = arith.constant 0 : index
    %c176 = arith.constant 176 : index
    %454 = vector.load %arg11[%c0_741, %c176] : memref<1x256xf32, #tpu.memory_space<vmem>>, vector<1x16xf32>
    tpu.vector_store %arg11[%c0_741, %c176], %453 {strides = array<i32>} : memref<1x256xf32, #tpu.memory_space<vmem>>, vector<1x16xf32>,
    %c12_742 = arith.constant 12 : index
    %c0_743 = arith.constant 0 : index
    %455 = vector.load %arg8[%c12_742, %c0_743] : memref<16x16xf32, #tpu.memory_space<vmem>>, vector<1x16xf32>
    %c0_744 = arith.constant 0 : index
    %c192 = arith.constant 192 : index
    %456 = vector.load %arg11[%c0_744, %c192] : memref<1x256xf32, #tpu.memory_space<vmem>>, vector<1x16xf32>
    tpu.vector_store %arg11[%c0_744, %c192], %455 {strides = array<i32>} : memref<1x256xf32, #tpu.memory_space<vmem>>, vector<1x16xf32>,
    %c13_745 = arith.constant 13 : index
    %c0_746 = arith.constant 0 : index
    %457 = vector.load %arg8[%c13_745, %c0_746] : memref<16x16xf32, #tpu.memory_space<vmem>>, vector<1x16xf32>
    %c0_747 = arith.constant 0 : index
    %c208 = arith.constant 208 : index
    %458 = vector.load %arg11[%c0_747, %c208] : memref<1x256xf32, #tpu.memory_space<vmem>>, vector<1x16xf32>
    tpu.vector_store %arg11[%c0_747, %c208], %457 {strides = array<i32>} : memref<1x256xf32, #tpu.memory_space<vmem>>, vector<1x16xf32>,
    %c14 = arith.constant 14 : index
    %c0_748 = arith.constant 0 : index
    %459 = vector.load %arg8[%c14, %c0_748] : memref<16x16xf32, #tpu.memory_space<vmem>>, vector<1x16xf32>
    %c0_749 = arith.constant 0 : index
    %c224 = arith.constant 224 : index
    %460 = vector.load %arg11[%c0_749, %c224] : memref<1x256xf32, #tpu.memory_space<vmem>>, vector<1x16xf32>
    tpu.vector_store %arg11[%c0_749, %c224], %459 {strides = array<i32>} : memref<1x256xf32, #tpu.memory_space<vmem>>, vector<1x16xf32>,
    %c15 = arith.constant 15 : index
    %c0_750 = arith.constant 0 : index
    %461 = vector.load %arg8[%c15, %c0_750] : memref<16x16xf32, #tpu.memory_space<vmem>>, vector<1x16xf32>
    %c0_751 = arith.constant 0 : index
    %c240 = arith.constant 240 : index
    %462 = vector.load %arg11[%c0_751, %c240] : memref<1x256xf32, #tpu.memory_space<vmem>>, vector<1x16xf32>
    tpu.vector_store %arg11[%c0_751, %c240], %461 {strides = array<i32>} : memref<1x256xf32, #tpu.memory_space<vmem>>, vector<1x16xf32>,
    %c0_752 = arith.constant 0 : index
    %c0_753 = arith.constant 0 : index
    %463 = vector.load %arg11[%c0_752, %c0_753] : memref<1x256xf32, #tpu.memory_space<vmem>>, vector<1x256xf32>
    %464 = arith.truncf %463 : vector<1x256xf32> to vector<1x256xbf16>
    %c0_754 = arith.constant 0 : index
    %c0_755 = arith.constant 0 : index
    %465 = vector.load %arg4[%c0_754, %c0_755] : memref<256x1xbf16, #tpu.memory_space<vmem>>, vector<256x1xbf16>
    %cst_756 = arith.constant dense<0.000000e+00> : vector<1x1xf32>
    %466 = tpu.matmul %464, %465, %cst_756 {dimension_numbers = #tpu.dot_dimension_numbers<[1], [0], [0], [1], [0, 0, 1, 1], [], []>} : vector<1x256xbf16>, vector<256x1xbf16>, vector<1x1xf32> -> vector<1x1xf32>
    %c0_757 = arith.constant 0 : index
    %c0_758 = arith.constant 0 : index
    %c0_759 = arith.constant 0 : index
    %467 = vector.load %arg5[%c0_757, %c0_758, %c0_759] : memref<1x1x1xf32, #tpu.memory_space<vmem>>, vector<1x1x1xf32>
    %468 = vector.shape_cast %467 : vector<1x1x1xf32> to vector<1x1xf32>
    %469 = vector.shape_cast %466 : vector<1x1xf32> to vector<1x1x1xf32>
    tpu.vector_store %arg5[%c0_757, %c0_758, %c0_759], %469 {strides = array<i32>} : memref<1x1x1xf32, #tpu.memory_space<vmem>>, vector<1x1x1xf32>,
    return
  }
  func.func @transform_0(%arg0: i32) -> (i32, i32, i32) {
    %c0_i32 = arith.constant 0 : i32
    %c0_i32_0 = arith.constant 0 : i32
    %c0_i32_1 = arith.constant 0 : i32
    return %arg0, %c0_i32, %c0_i32_0 : i32, i32, i32
  }
  func.func @transform_1(%arg0: i32) -> (i32, i32) {
    %c0_i32 = arith.constant 0 : i32
    %c0_i32_0 = arith.constant 0 : i32
    %c0_i32_1 = arith.constant 0 : i32
    return %c0_i32, %c0_i32_0 : i32, i32
  }
  func.func @transform_2(%arg0: i32) -> (i32, i32) {
    %c0_i32 = arith.constant 0 : i32
    %c0_i32_0 = arith.constant 0 : i32
    %c0_i32_1 = arith.constant 0 : i32
    return %c0_i32, %c0_i32_0 : i32, i32
  }
  func.func @transform_3(%arg0: i32) -> (i32, i32) {
    %c0_i32 = arith.constant 0 : i32
    %c0_i32_0 = arith.constant 0 : i32
    %c0_i32_1 = arith.constant 0 : i32
    return %c0_i32, %c0_i32_0 : i32, i32
  }
  func.func @transform_4(%arg0: i32) -> (i32, i32, i32) {
    %c0_i32 = arith.constant 0 : i32
    %c0_i32_0 = arith.constant 0 : i32
    %c0_i32_1 = arith.constant 0 : i32
    return %arg0, %c0_i32, %c0_i32_0 : i32, i32, i32
  }
}

</mosaic_0001>

<bundles_post_ra>
// kernel: tpu_custom_call.1
= control target key start
LH: loop header
LB: loop body
LE: loop exit
PB: predicated region body
PF: predicated region fallthrough
CT: control target
= control target key end

     0   :  { %s2603_s15 = smov 0   ;;  %s3347_s0 = inlined_call_operand.vmem [shape: f32[2,324,4], index: 0, kind: input, shape index: {}]   ;;  %s3348_s1 = inlined_call_operand.vmem [shape: bf16[64,8], index: 1, kind: input, shape index: {}]   ;;  %s3349_s2 = inlined_call_operand.vmem [shape: bf16[128,16], index: 2, kind: input, shape index: {}]   ;;  %s3350_s3 = inlined_call_operand.vmem [shape: bf16[256,1], index: 3, kind: input, shape index: {}]   ;;  %s3351_s4 = inlined_call_operand.vmem [shape: f32[2,1,1], index: 4, kind: output, shape index: {}]  }
   0x1 LB: > { %s2352_s16 = sadd.s32 4294967295, %s2550_s15   ;;  %p2356_p0 = scmp.ge.s32.totalorder %s2550_s15, 1  ;;  %s2550_s15 = sphi %s2603_s15, %s14_s15  }
   0x2   : > { %p162_p1 = scmp.lt.s32.totalorder %s2550_s15, 3 }
   0x4   : > { %p163_p2 = pnand %p2356_p0, %p162_p1 }
   0x5   : > { %p186_p3 = scmp.lt.s32.totalorder (!%p163_p2), %s2352_s16, 1  ;;  %s2552_s21 = smov (!%p163_p2), 8  }
   0x6   : > { %166 = sbr.rel (%p163_p2) target bundleno = 1344 (0x540), region = 36  ;;  %s2553_s22 = smov (!%p163_p2), 4  }
   0x7   : > { %s2554_s23 = smov (!%p163_p2), 12   ;;  %s2555_s24 = smov (!%p163_p2), 16  }
   0x8   : > { %s2556_s25 = smov (!%p163_p2), 20   ;;  %s2557_s26 = smov (!%p163_p2), 24  }
   0x9   : > { %s2558_s27 = smov (!%p163_p2), 28   ;;  %s2559_s28 = smov (!%p163_p2), 32  }
   0xa   : > { %s2560_s29 = smov (!%p163_p2), 36   ;;  %s2561_s30 = smov (!%p163_p2), 40  }
   0xb   : > { %s3375_s16 = smov (!%p186_p3, %s2352_s16), 1  ;;  %vm236_vm0 = vcmask 31744   ;;  %vm277_vm1 = vcmask 27648   ;;  %s2562_s5 = smov 44   ;;  %vm287_vm2 = vcmask 64544   ;;  %vm295_vm3 = vcmask 97344  }
   0xc   : > { %s2481_s17 = smul.u32 328, %s3375_s16  ;;  %s2563_s6 = smov 48   ;;  %vm303_vm4 = vcmask 130144   ;;  %vm311_vm5 = vcmask 162944   ;;  %vm319_vm6 = vcmask 195744   ;;  %vm327_vm7 = vcmask 228544  }
   0xd   : > { %s2564_s7 = smov 52   ;;  %s2565_s8 = smov 56   ;;  %vm335_vm8 = vcmask 261344   ;;  %vm343_vm9 = vcmask 294144   ;;  %vm351_vm10 = vcmask 326944   ;;  %vm359_vm11 = vcmask 359744  }
   0xe   : > { %s2617_s20 = scalar_lea.vmem %s3347_s0, %s2481_s17  ;;  %s2566_s13 = smov 60   ;;  %vm367_vm12 = vcmask 392544   ;;  %vm375_vm13 = vcmask 425344   ;;  %vm383_vm14 = vcmask 458144   ;;  %vm1247_vm15 = vcmask 64512  }
   0xf   : > { %v195_v0 = vld [vmem:[%s2617_s20] sm:$0xff]  ;;  %v196_v1 = vld [vmem:[%s2617_s20 + $0x8] sm:$0xff]  ;;  %v197_v2 = vld [vmem:[%s2617_s20 + $0x10] sm:$0xff] }
  0x10   : > { %237 = vst.msk [vmem:[#allocation2] sm:$0xff] %vm236_vm0, %v195_v0  ;;  %238 = vst.msk [vmem:[#allocation2 + $0x8] sm:$0xff] %vm236_vm0, %v196_v1  ;;  %v199_v3 = vld [vmem:[%s2617_s20 + $0x20] sm:$0xff]  ;;  %v200_v4 = vld [vmem:[%s2617_s20 + $0x28] sm:$0xff] }
  0x11   : > { %239 = vst.msk [vmem:[#allocation2 + $0x10] sm:$0xff] %vm236_vm0, %v197_v2  ;;  %v201_v5 = vld [vmem:[%s2617_s20 + $0x30] sm:$0xff]  ;;  %241 = vst.msk [vmem:[#allocation2 + $0x20] sm:$0xff] %vm236_vm0, %v199_v3  ;;  %v208_v6 = vld [vmem:[%s2617_s20 + $0x68] sm:$0xff] }
  0x12   : > { %242 = vst.msk [vmem:[#allocation2 + $0x28] sm:$0xff] %vm236_vm0, %v200_v4  ;;  %243 = vst.msk [vmem:[#allocation2 + $0x30] sm:$0xff] %vm236_vm0, %v201_v5  ;;  %v209_v7 = vld [vmem:[%s2617_s20 + $0x70] sm:$0xff]  ;;  %v210_v8 = vld [vmem:[%s2617_s20 + $0x78] sm:$0xff] }
  0x13   : > { %250 = vst.msk [vmem:[#allocation2 + $0x68] sm:$0xff] %vm236_vm0, %v208_v6  ;;  %251 = vst.msk [vmem:[#allocation2 + $0x70] sm:$0xff] %vm236_vm0, %v209_v7  ;;  %v204_v9 = vld [vmem:[%s2617_s20 + $0x48] sm:$0xff]  ;;  %v205_v10 = vld [vmem:[%s2617_s20 + $0x50] sm:$0xff] }
  0x14   : > { %252 = vst.msk [vmem:[#allocation2 + $0x78] sm:$0xff] %vm236_vm0, %v210_v8  ;;  %v206_v11 = vld [vmem:[%s2617_s20 + $0x58] sm:$0xff]  ;;  %246 = vst.msk [vmem:[#allocation2 + $0x48] sm:$0xff] %vm236_vm0, %v204_v9  ;;  %v203_v13 = vld [vmem:[%s2617_s20 + $0x40] sm:$0xff] }
  0x15   : > { %247 = vst.msk [vmem:[#allocation2 + $0x50] sm:$0xff] %vm236_vm0, %v205_v10  ;;  %248 = vst.msk [vmem:[#allocation2 + $0x58] sm:$0xff] %vm236_vm0, %v206_v11  ;;  %v202_v12 = vld [vmem:[%s2617_s20 + $0x38] sm:$0xff]  ;;  %v211_v15 = vld [vmem:[%s2617_s20 + $0x80] sm:$0xff] }
  0x16   : > { %v198_v14 = vld [vmem:[%s2617_s20 + $0x18] sm:$0xff]  ;;  %244 = vst.msk [vmem:[#allocation2 + $0x38] sm:$0xff] %vm236_vm0, %v202_v12  ;;  %245 = vst.msk [vmem:[#allocation2 + $0x40] sm:$0xff] %vm236_vm0, %v203_v13  ;;  %v212_v16 = vld [vmem:[%s2617_s20 + $0x88] sm:$0xff] }
  0x17   : > { %240 = vst.msk [vmem:[#allocation2 + $0x18] sm:$0xff] %vm236_vm0, %v198_v14  ;;  %v207_v17 = vld [vmem:[%s2617_s20 + $0x60] sm:$0xff]  ;;  %253 = vst.msk [vmem:[#allocation2 + $0x80] sm:$0xff] %vm236_vm0, %v211_v15  ;;  %v213_v18 = vld [vmem:[%s2617_s20 + $0x90] sm:$0xff] }
  0x18   : > { %254 = vst.msk [vmem:[#allocation2 + $0x88] sm:$0xff] %vm236_vm0, %v212_v16  ;;  %249 = vst.msk [vmem:[#allocation2 + $0x60] sm:$0xff] %vm236_vm0, %v207_v17  ;;  %v214_v19 = vld [vmem:[%s2617_s20 + $0x98] sm:$0xff]  ;;  %v217_v20 = vld [vmem:[%s2617_s20 + $0xb0] sm:$0xff] }
  0x19   : > { %255 = vst.msk [vmem:[#allocation2 + $0x90] sm:$0xff] %vm236_vm0, %v213_v18  ;;  %256 = vst.msk [vmem:[#allocation2 + $0x98] sm:$0xff] %vm236_vm0, %v214_v19  ;;  %v218_v21 = vld [vmem:[%s2617_s20 + $0xb8] sm:$0xff]  ;;  %v219_v22 = vld [vmem:[%s2617_s20 + $0xc0] sm:$0xff] }
  0x1a   : > { %259 = vst.msk [vmem:[#allocation2 + $0xb0] sm:$0xff] %vm236_vm0, %v217_v20  ;;  %v215_v23 = vld [vmem:[%s2617_s20 + $0xa0] sm:$0xff]  ;;  %260 = vst.msk [vmem:[#allocation2 + $0xb8] sm:$0xff] %vm236_vm0, %v218_v21  ;;  %v226_v34 = vld [vmem:[%s2617_s20 + $0xf8] sm:$0xff] }
  0x1b   : > { %v290_v24 = vld [vmem:[#allocation2 + $0x2] ss:$2 sm:$0xff]  ;;  %v282_v25 = vld [vmem:[#allocation2 + $0x1] ss:$2 sm:$0xff]  ;;  %261 = vst.msk [vmem:[#allocation2 + $0xc0] sm:$0xff] %vm236_vm0, %v219_v22  ;;  %257 = vst.msk [vmem:[#allocation2 + $0xa0] sm:$0xff] %vm236_vm0, %v215_v23 }
  0x1c   : > { %292 = vrot.lane.b32.xlu1 %v290_v24, %s2552_s21  ;;  %284 = vrot.lane.b32.xlu0 %v282_v25, %s2553_s22  ;;  %v409_v26 = vld [vmem:[#allocation2 + $0x26] ss:$2 sm:$0xff]  ;;  %v403_v27 = vld [vmem:[#allocation2 + $0x25] ss:$2 sm:$0xff]  ;;  %268 = vst.msk [vmem:[#allocation2 + $0xf8] sm:$0xff] %vm236_vm0, %v226_v34  ;;  %v222_v37 = vld [vmem:[%s2617_s20 + $0xd8] sm:$0xff] }
  0x1d   : > { %v603_v28 = vld [vmem:[#allocation2 + $0x6d] ss:$2 sm:$0xff]  ;;  %v609_v32 = vld [vmem:[#allocation2 + $0x6e] ss:$2 sm:$0xff]  ;;  %v227_v35 = vld [vmem:[%s2617_s20 + $0x100] sm:$0xff]  ;;  %264 = vst.msk [vmem:[#allocation2 + $0xd8] sm:$0xff] %vm236_vm0, %v222_v37 }
  0x1e   : > { %v503_v29 = vld [vmem:[#allocation2 + $0x49] ss:$2 sm:$0xff]  ;;  %v509_v33 = vld [vmem:[#allocation2 + $0x4a] ss:$2 sm:$0xff]  ;;  %269 = vst.msk [vmem:[#allocation2 + $0x100] sm:$0xff] %vm236_vm0, %v227_v35  ;;  %v223_v38 = vld [vmem:[%s2617_s20 + $0xe0] sm:$0xff] }
  0x1f   : > { %v415_v30 = vld [vmem:[#allocation2 + $0x27] ss:$2 sm:$0xff]  ;;  %265 = vst.msk [vmem:[#allocation2 + $0xe0] sm:$0xff] %vm236_vm0, %v223_v38  ;;  %v421_v40 = vld [vmem:[#allocation2 + $0x36] ss:$2 sm:$0xff] }
  0x20   : > { %411 = vrot.lane.b32.xlu1 %v409_v26, %s2552_s21  ;;  %405 = vrot.lane.b32.xlu0 %v403_v27, %s2553_s22  ;;  %v298_v31 = vld [vmem:[#allocation2 + $0x3] ss:$2 sm:$0xff]  ;;  %v306_v41 = vld [vmem:[#allocation2 + $0x12] ss:$2 sm:$0xff]  ;;  %v314_v55 = vld [vmem:[#allocation2 + $0x13] ss:$2 sm:$0xff] }
  0x21   : > { %v228_v36 = vld [vmem:[%s2617_s20 + $0x108] sm:$0xff]  ;;  %v221_v43 = vld [vmem:[%s2617_s20 + $0xd0] sm:$0xff]  ;;  %v230_v52 = vld [vmem:[%s2617_s20 + $0x118] sm:$0xff] }
  0x22   : > { %270 = vst.msk [vmem:[#allocation2 + $0x108] sm:$0xff] %vm236_vm0, %v228_v36  ;;  %v224_v39 = vld [vmem:[%s2617_s20 + $0xe8] sm:$0xff]  ;;  %263 = vst.msk [vmem:[#allocation2 + $0xd0] sm:$0xff] %vm236_vm0, %v221_v43  ;;  %v229_v51 = vld [vmem:[%s2617_s20 + $0x110] sm:$0xff] }
  0x23   : > { %266 = vst.msk [vmem:[#allocation2 + $0xe8] sm:$0xff] %vm236_vm0, %v224_v39  ;;  %v220_v42 = vld [vmem:[%s2617_s20 + $0xc8] sm:$0xff]  ;;  %v225_v53 = vld [vmem:[%s2617_s20 + $0xf0] sm:$0xff]  ;;  %271 = vst.msk [vmem:[#allocation2 + $0x110] sm:$0xff] %vm236_vm0, %v229_v51 }
  0x24   : > { %605 = vrot.lane.b32.xlu1 %v603_v28, %s2553_s22  ;;  %505 = vrot.lane.b32.xlu0 %v503_v29, %s2553_s22  ;;  %262 = vst.msk [vmem:[#allocation2 + $0xc8] sm:$0xff] %vm236_vm0, %v220_v42  ;;  %v216_v44 = vld [vmem:[%s2617_s20 + $0xa8] sm:$0xff]  ;;  %272 = vst.msk [vmem:[#allocation2 + $0x118] sm:$0xff] %vm236_vm0, %v230_v52  ;;  %v427_v54 = vld [vmem:[#allocation2 + $0x37] ss:$2 sm:$0xff] }
  0x25   : > { %v279_v45 = vld [vmem:[#allocation2] ss:$2 sm:$0xff]  ;;  %258 = vst.msk [vmem:[#allocation2 + $0xa8] sm:$0xff] %vm236_vm0, %v216_v44  ;;  %v615_v48 = vld [vmem:[#allocation2 + $0x6f] ss:$2 sm:$0xff]  ;;  %267 = vst.msk [vmem:[#allocation2 + $0xf0] sm:$0xff] %vm236_vm0, %v225_v53 }
  0x26   : > { %v401_v46 = vld [vmem:[#allocation2 + $0x24] ss:$2 sm:$0xff]  ;;  %280 = vst.msk [vmem:[#allocation5] sm:$0xff] %vm236_vm0, %v279_v45  ;;  %v515_v49 = vld [vmem:[#allocation2 + $0x4b] ss:$2 sm:$0xff] }
  0x27   : > { %402 = vst.msk [vmem:[#allocation5 + $0x8] sm:$0xff] %vm236_vm0, %v401_v46  ;;  %v601_v47 = vld [vmem:[#allocation2 + $0x6c] ss:$2 sm:$0xff]  ;;  %v627_v60 = vld [vmem:[#allocation2 + $0x7f] ss:$2 sm:$0xff] }
  0x28   : > { %417 = vrot.lane.b32.xlu1 %v415_v30, %s2554_s23  ;;  %300 = vrot.lane.b32.xlu0 %v298_v31, %s2554_s23  ;;  %602 = vst.msk [vmem:[#allocation5 + $0x18] sm:$0xff] %vm236_vm0, %v601_v47  ;;  %v501_v50 = vld [vmem:[#allocation2 + $0x48] ss:$2 sm:$0xff]  ;;  %v433_v58 = vld [vmem:[#allocation2 + $0x38] ss:$2 sm:$0xff] }
  0x29   : > { %502 = vst.msk [vmem:[#allocation5 + $0x10] sm:$0xff] %vm236_vm0, %v501_v50  ;;  %v621_v56 = vld [vmem:[#allocation2 + $0x7e] ss:$2 sm:$0xff]  ;;  %v527_v61 = vld [vmem:[#allocation2 + $0x5b] ss:$2 sm:$0xff]  ;;  %v233_v14 = vld [vmem:[%s2617_s20 + $0x130] sm:$0xff] }
  0x2a   : > { %v521_v57 = vld [vmem:[#allocation2 + $0x5a] ss:$2 sm:$0xff]  ;;  %v439_v62 = vld [vmem:[#allocation2 + $0x39] ss:$2 sm:$0xff]  ;;  %v453_v10 = vld [vmem:[#allocation2 + $0x49] ss:$2 sm:$0xff] }
  0x2b   : > { %v322_v59 = vld [vmem:[#allocation2 + $0x14] ss:$2 sm:$0xff]  ;;  %v330_v63 = vld [vmem:[#allocation2 + $0x15] ss:$2 sm:$0xff]  ;;  %v338_v4 = vld [vmem:[#allocation2 + $0x24] ss:$2 sm:$0xff] }
  0x2c   : > { %611 = vrot.lane.b32.xlu1 %v609_v32, %s2552_s21  ;;  %511 = vrot.lane.b32.xlu0 %v509_v33, %s2552_s21  ;;  %v633_v0 = vld [vmem:[#allocation2 + $0x80] ss:$2 sm:$0xff]  ;;  %v639_v7 = vld [vmem:[#allocation2 + $0x81] ss:$2 sm:$0xff]  ;;  %v701_v9 = vld [vmem:[#allocation2 + $0x90] ss:$2 sm:$0xff] }
  0x2d   : > { %v533_v1 = vld [vmem:[#allocation2 + $0x5c] ss:$2 sm:$0xff]  ;;  %v539_v8 = vld [vmem:[#allocation2 + $0x5d] ss:$2 sm:$0xff]  ;;  %702 = vst.msk [vmem:[#allocation5 + $0x20] sm:$0xff] %vm236_vm0, %v701_v9  ;;  %275 = vst.msk [vmem:[#allocation2 + $0x130] sm:$0xff] %vm236_vm0, %v233_v14 }
  0x2e   : > { %v446_v2 = vld [vmem:[#allocation2 + $0x48] ss:$2 sm:$0xff]  ;;  %v231_v3 = vld [vmem:[%s2617_s20 + $0x120] sm:$0xff]  ;;  %v703_v16 = vld [vmem:[#allocation2 + $0x91] ss:$2 sm:$0xff] }
  0x2f   : > { %v232_v5 = vld [vmem:[%s2617_s20 + $0x128] sm:$0xff]  ;;  %273 = vst.msk [vmem:[#allocation2 + $0x120] sm:$0xff] %vm236_vm0, %v231_v3  ;;  %v801_v6 = vld [vmem:[#allocation2 + $0xb4] ss:$2 sm:$0xff]  ;;  %v803_v15 = vld [vmem:[#allocation2 + $0xb5] ss:$2 sm:$0xff] }
  0x30   : > { %423 = vrot.lane.b32.xlu1 %v421_v40, %s2555_s24  ;;  %308 = vrot.lane.b32.xlu0 %v306_v41, %s2555_s24  ;;  %274 = vst.msk [vmem:[#allocation2 + $0x128] sm:$0xff] %vm236_vm0, %v232_v5  ;;  %802 = vst.msk [vmem:[#allocation5 + $0x28] sm:$0xff] %vm236_vm0, %v801_v6  ;;  %v346_v11 = vld [vmem:[#allocation2 + $0x25] ss:$2 sm:$0xff]  ;;  %v646_v12 = vld [vmem:[#allocation2 + $0x90] ss:$2 sm:$0xff] }
  0x31   : > { %v546_v13 = vld [vmem:[#allocation2 + $0x6c] ss:$2 sm:$0xff]  ;;  %v1001_v17 = vld [vmem:[#allocation2 + $0xfc] ss:$2 sm:$0xff]  ;;  %v653_v21 = vld [vmem:[#allocation2 + $0x91] ss:$2 sm:$0xff] }
  0x32   : > { %v460_v18 = vld [vmem:[#allocation2 + $0x4a] ss:$2 sm:$0xff]  ;;  %1002 = vst.msk [vmem:[#allocation5 + $0x38] sm:$0xff] %vm236_vm0, %v1001_v17  ;;  %v553_v22 = vld [vmem:[#allocation2 + $0x6d] ss:$2 sm:$0xff] }
  0x33   : > { %v354_v19 = vld [vmem:[#allocation2 + $0x26] ss:$2 sm:$0xff]  ;;  %v809_v23 = vld [vmem:[#allocation2 + $0xb6] ss:$2 sm:$0xff]  ;;  %v1003_v27 = vld [vmem:[#allocation2 + $0xfd] ss:$2 sm:$0xff] }
  0x34   : > { %617 = vrot.lane.b32.xlu1 %v615_v48, %s2554_s23  ;;  %517 = vrot.lane.b32.xlu0 %v515_v49, %s2554_s23  ;;  %v901_v20 = vld [vmem:[#allocation2 + $0xd8] ss:$2 sm:$0xff]  ;;  %v903_v28 = vld [vmem:[#allocation2 + $0xd9] ss:$2 sm:$0xff] }
  0x35   : > { %902 = vst.msk [vmem:[#allocation5 + $0x30] sm:$0xff] %vm236_vm0, %v901_v20  ;;  %v709_v24 = vld [vmem:[#allocation2 + $0x92] ss:$2 sm:$0xff]  ;;  %v467_v29 = vld [vmem:[#allocation2 + $0x4b] ss:$2 sm:$0xff] }
  0x36   : > { %v234_v25 = vld [vmem:[%s2617_s20 + $0x138] sm:$0xff]  ;;  %v235_v26 = vld [vmem:[%s2617_s20 + $0x140] sm:$0xf]  ;;  %v362_v30 = vld [vmem:[#allocation2 + $0x27] ss:$2 sm:$0xff]  ;;  %s2568_s20 = smov 96  }
  0x37   : > { %276 = vst.msk [vmem:[#allocation2 + $0x138] sm:$0xff] %vm236_vm0, %v234_v25  ;;  %v660_v31 = vld [vmem:[#allocation2 + $0x92] ss:$2 sm:$0xff]  ;;  %v815_v33 = vld [vmem:[#allocation2 + $0xb7] ss:$2 sm:$0xff]  ;;  %v2518_v25 = vld [vmem:[%s3348_s1 + $0x8] sm:$0xff]  }
  0x38   : > { %429 = vrot.lane.b32.xlu1 %v427_v54, %s2556_s25  ;;  %316 = vrot.lane.b32.xlu0 %v314_v55, %s2556_s25  ;;  %278 = vst.msk [vmem:[#allocation2 + $0x140] sm:$0xf] %vm277_vm1, %v235_v26  ;;  %v560_v32 = vld [vmem:[#allocation2 + $0x6e] ss:$2 sm:$0xff]  ;;  %v715_v34 = vld [vmem:[#allocation2 + $0x93] ss:$2 sm:$0xff] }
  0x39   : > { %v1009_v35 = vld [vmem:[#allocation2 + $0xfe] ss:$2 sm:$0xff]  ;;  %v667_v39 = vld [vmem:[#allocation2 + $0x93] ss:$2 sm:$0xff]  ;;  %v681_v3 = vld [vmem:[#allocation2 + $0xa3] ss:$2 sm:$0xff] }
  0x3a   : > { %v909_v36 = vld [vmem:[#allocation2 + $0xda] ss:$2 sm:$0xff]  ;;  %v567_v40 = vld [vmem:[#allocation2 + $0x6f] ss:$2 sm:$0xff]  ;;  %v1015_v43 = vld [vmem:[#allocation2 + $0xff] ss:$2 sm:$0xff] }
  0x3b   : > { %v474_v37 = vld [vmem:[#allocation2 + $0x5a] ss:$2 sm:$0xff]  ;;  %v915_v44 = vld [vmem:[#allocation2 + $0xdb] ss:$2 sm:$0xff]  ;;  %v2517_v20 = vld [vmem:[%s3348_s1 + $0x10] sm:$0xff]   ;;  %vm391_vm0 = vcmask 490944  }
  0x3c   : > { %623 = vrot.lane.b32.xlu1 %v621_v56, %s2555_s24  ;;  %523 = vrot.lane.b32.xlu0 %v521_v57, %s2555_s24  ;;  %v370_v38 = vld [vmem:[#allocation2 + $0x36] ss:$2 sm:$0xff]  ;;  %v821_v41 = vld [vmem:[#allocation2 + $0xc6] ss:$2 sm:$0xff]  ;;  %v481_v47 = vld [vmem:[#allocation2 + $0x5b] ss:$2 sm:$0xff] }
  0x3d   : > { %v721_v42 = vld [vmem:[#allocation2 + $0xa2] ss:$2 sm:$0xff]  ;;  %v378_v48 = vld [vmem:[#allocation2 + $0x37] ss:$2 sm:$0xff]  ;;  %v827_v55 = vld [vmem:[#allocation2 + $0xc7] ss:$2 sm:$0xff] }
  0x3e   : > { %v674_v51 = vld [vmem:[#allocation2 + $0xa2] ss:$2 sm:$0xff]  ;;  %v727_v56 = vld [vmem:[#allocation2 + $0xa3] ss:$2 sm:$0xff]  ;;  %vm399_vm1 = vcmask 523744  }
  0x3f   : > { %v574_v52 = vld [vmem:[#allocation2 + $0x7e] ss:$2 sm:$0xff]  ;;  %v394_v17 = vld [vmem:[#allocation2 + $0x39] ss:$2 sm:$0xff]  ;;  %v839_v26 = vld [vmem:[#allocation2 + $0xc9] ss:$2 sm:$0xff] }
  0x40   : > { %435 = vrot.lane.b32.xlu1 %v433_v58, %s2557_s26  ;;  %324 = vrot.lane.b32.xlu0 %v322_v59, %s2557_s26  ;;  %v1021_v59 = vld [vmem:[#allocation2 + $0x10e] ss:$2 sm:$0xff] }
  0x44   : > { %629 = vrot.lane.b32.xlu1 %v627_v60, %s2556_s25  ;;  %529 = vrot.lane.b32.xlu0 %v527_v61, %s2556_s25  ;;  %v921_v60 = vld [vmem:[#allocation2 + $0xea] ss:$2 sm:$0xff] }
  0x48   : > { %441 = vrot.lane.b32.xlu1 %v439_v62, %s2558_s27  ;;  %332 = vrot.lane.b32.xlu0 %v330_v63, %s2558_s27  ;;  %v488_v63 = vld [vmem:[#allocation2 + $0x5c] ss:$2 sm:$0xff] }
  0x4c   : > { %635 = vrot.lane.b32.xlu1 %v633_v0, %s2557_s26  ;;  %535 = vrot.lane.b32.xlu0 %v533_v1, %s2557_s26  ;;  %v386_v0 = vld [vmem:[#allocation2 + $0x38] ss:$2 sm:$0xff] }
  0x50   : > { %448 = vrot.lane.b32.xlu1 %v446_v2, %s2559_s28  ;;  %340 = vrot.lane.b32.xlu0 %v338_v4, %s2559_s28  ;;  %v581_v4 = vld [vmem:[#allocation2 + $0x7f] ss:$2 sm:$0xff] }
  0x54   : > { %641 = vrot.lane.b32.xlu1 %v639_v7, %s2558_s27  ;;  %541 = vrot.lane.b32.xlu0 %v539_v8, %s2558_s27  ;;  %v833_v7 = vld [vmem:[#allocation2 + $0xc8] ss:$2 sm:$0xff] }
  0x55   : > { %v733_v8 = vld [vmem:[#allocation2 + $0xa4] ss:$2 sm:$0xff] }
  0x58   : > { %455 = vrot.lane.b32.xlu1 %v453_v10, %s2560_s29  ;;  %348 = vrot.lane.b32.xlu0 %v346_v11, %s2560_s29  ;;  %v1027_v11 = vld [vmem:[#allocation2 + $0x10f] ss:$2 sm:$0xff] }
  0x5c   : > { %648 = vrot.lane.b32.xlu1 %v646_v12, %s2559_s28  ;;  %548 = vrot.lane.b32.xlu0 %v546_v13, %s2559_s28  ;;  %v927_v12 = vld [vmem:[#allocation2 + $0xeb] ss:$2 sm:$0xff] }
  0x60   : > { %805 = vrot.lane.b32.xlu1 %v803_v15, %s2553_s22  ;;  %705 = vrot.lane.b32.xlu0 %v703_v16, %s2553_s22  ;;  %v2516_v15 = vld [vmem:[%s3348_s1 + $0x18] sm:$0xff]  }
  0x61   : > { %v495_v16 = vld [vmem:[#allocation2 + $0x5d] ss:$2 sm:$0xff]  ;;  %2445 = vmatprep.subr.bf16.mxu0 %v2516_v15 }
  0x62   : > { %2446 = vmatpush3.bf16.msra.mxu0 %v2516_v15  ;;  %v881_v15 = vld [vmem:[#allocation2 + $0xeb] ss:$2 sm:$0xff] }
  0x63   : > { %2447 = vmatprep.subr.bf16.mxu0 %v2517_v20 }
  0x64   : > { %462 = vrot.lane.b32.xlu1 %v460_v18, %s2561_s30  ;;  %356 = vrot.lane.b32.xlu0 %v354_v19, %s2561_s30 }
  0x66   : > { %2448 = vmatpush3.bf16.msra.mxu0 %v2517_v20  ;;  %v974_v20 = vld [vmem:[#allocation2 + $0x10e] ss:$2 sm:$0xff] }
  0x67   : > { %2449 = vmatprep.subr.bf16.mxu0 %v2518_v25 }
  0x68   : > { %655 = vrot.lane.b32.xlu1 %v653_v21, %s2560_s29  ;;  %555 = vrot.lane.b32.xlu0 %v553_v22, %s2560_s29  ;;  %v688_v21 = vld [vmem:[#allocation2 + $0xa4] ss:$2 sm:$0xff] }
  0x69   : > { %v588_v22 = vld [vmem:[#allocation2 + $0x80] ss:$2 sm:$0xff] }
  0x6a   : > { %2450 = vmatpush3.bf16.msra.mxu0 %v2518_v25 }
  0x6c   : > { %811 = vrot.lane.b32.xlu1 %v809_v23, %s2552_s21  ;;  %711 = vrot.lane.b32.xlu0 %v709_v24, %s2552_s21 }
  0x70   : > { %1005 = vrot.lane.b32.xlu1 %v1003_v27, %s2553_s22  ;;  %905 = vrot.lane.b32.xlu0 %v903_v28, %s2553_s22  ;;  %v739_v27 = vld [vmem:[#allocation2 + $0xa5] ss:$2 sm:$0xff]  ;;  %s2569_s22 = smov 104  }
  0x74   : > { %469 = vrot.lane.b32.xlu1 %v467_v29, %s2562_s5  ;;  %364 = vrot.lane.b32.xlu0 %v362_v30, %s2562_s5  ;;  %v2519_v30 = vld [vmem:[%s3348_s1] sm:$0xff]  }
  0x75   : > { %2451 = vmatprep.subr.bf16.mxu0 %v2519_v30 }
  0x76   : > { %2452 = vmatpush3.bf16.msra.mxu0 %v2519_v30 }
  0x78   : > { %662 = vrot.lane.b32.xlu1 %v660_v31, %s2561_s30  ;;  %562 = vrot.lane.b32.xlu0 %v560_v32, %s2561_s30  ;;  %v1033_v31 = vld [vmem:[#allocation2 + $0x110] ss:$2 sm:$0xff] }
  0x79   : > { %v933_v32 = vld [vmem:[#allocation2 + $0xec] ss:$2 sm:$0xff] }
  0x7c   : > { %817 = vrot.lane.b32.xlu1 %v815_v33, %s2554_s23  ;;  %717 = vrot.lane.b32.xlu0 %v715_v34, %s2554_s23 }
  0x80   : > { %1011 = vrot.lane.b32.xlu1 %v1009_v35, %s2552_s21  ;;  %911 = vrot.lane.b32.xlu0 %v909_v36, %s2552_s21  ;;  %v695_v35 = vld [vmem:[#allocation2 + $0xa5] ss:$2 sm:$0xff] }
  0x81   : > { %v595_v36 = vld [vmem:[#allocation2 + $0x81] ss:$2 sm:$0xff] }
  0x84   : > { %476 = vrot.lane.b32.xlu1 %v474_v37, %s2563_s6  ;;  %372 = vrot.lane.b32.xlu0 %v370_v38, %s2563_s6 }
  0x88   : > { %669 = vrot.lane.b32.xlu1 %v667_v39, %s2562_s5  ;;  %569 = vrot.lane.b32.xlu0 %v567_v40, %s2562_s5  ;;  %v846_v39 = vld [vmem:[#allocation2 + $0xd8] ss:$2 sm:$0xff] }
  0x89   : > { %v746_v40 = vld [vmem:[#allocation2 + $0xb4] ss:$2 sm:$0xff] }
  0x8c   : > { %823 = vrot.lane.b32.xlu1 %v821_v41, %s2555_s24  ;;  %723 = vrot.lane.b32.xlu0 %v721_v42, %s2555_s24 }
  0x8e   : > { %v293_v45 = vpop.permute.xlu1 %292  ;;  %v285_v46 = vpop.permute.xlu0 %284 }
  0x8f   : > { %288 = vst.msk [vmem:[#allocation5] sm:$0xff] %vm287_vm2, %v285_v46 }
  0x90   : > { %1017 = vrot.lane.b32.xlu1 %v1015_v43, %s2554_s23  ;;  %917 = vrot.lane.b32.xlu0 %v915_v44, %s2554_s23  ;;  %296 = vst.msk [vmem:[#allocation5] sm:$0xff] %vm295_vm3, %v293_v45  ;;  %v1039_v43 = vld [vmem:[#allocation2 + $0x111] ss:$2 sm:$0xff]  ;;  %s2570_s23 = smov 112  }
  0x91   : > { %v939_v44 = vld [vmem:[#allocation2 + $0xed] ss:$2 sm:$0xff] }
  0x92   : > { %v412_v49 = vpop.permute.xlu1 %411  ;;  %v406_v50 = vpop.permute.xlu0 %405 }
  0x93   : > { %408 = vst.msk [vmem:[#allocation5 + $0x8] sm:$0xff] %vm287_vm2, %v406_v50 }
  0x94   : > { %483 = vrot.lane.b32.xlu1 %v481_v47, %s2564_s7  ;;  %380 = vrot.lane.b32.xlu0 %v378_v48, %s2564_s7  ;;  %414 = vst.msk [vmem:[#allocation5 + $0x8] sm:$0xff] %vm295_vm3, %v412_v49  ;;  %v853_v47 = vld [vmem:[#allocation2 + $0xd9] ss:$2 sm:$0xff] }
  0x95   : > { %v753_v48 = vld [vmem:[#allocation2 + $0xb5] ss:$2 sm:$0xff] }
  0x96   : > { %v606_v53 = vpop.permute.xlu1 %605  ;;  %v506_v54 = vpop.permute.xlu0 %505 }
  0x97   : > { %608 = vst.msk [vmem:[#allocation5 + $0x18] sm:$0xff] %vm287_vm2, %v606_v53  ;;  %508 = vst.msk [vmem:[#allocation5 + $0x10] sm:$0xff] %vm287_vm2, %v506_v54 }
  0x98   : > { %676 = vrot.lane.b32.xlu1 %v674_v51, %s2563_s6  ;;  %576 = vrot.lane.b32.xlu0 %v574_v52, %s2563_s6  ;;  %v1046_v51 = vld [vmem:[#allocation2 + $0x120] ss:$2 sm:$0xff] }
  0x99   : > { %v946_v52 = vld [vmem:[#allocation2 + $0xfc] ss:$2 sm:$0xff] }
  0x9a   : > { %v418_v57 = vpop.permute.xlu1 %417  ;;  %v301_v58 = vpop.permute.xlu0 %300 }
  0x9b   : > { %420 = vst.msk [vmem:[#allocation5 + $0x8] sm:$0xff] %vm303_vm4, %v418_v57  ;;  %304 = vst.msk [vmem:[#allocation5] sm:$0xff] %vm303_vm4, %v301_v58 }
  0x9c   : > { %829 = vrot.lane.b32.xlu1 %v827_v55, %s2556_s25  ;;  %729 = vrot.lane.b32.xlu0 %v727_v56, %s2556_s25  ;;  %v860_v55 = vld [vmem:[#allocation2 + $0xda] ss:$2 sm:$0xff] }
  0x9d   : > { %v760_v56 = vld [vmem:[#allocation2 + $0xb6] ss:$2 sm:$0xff] }
  0x9e   : > { %v612_v61 = vpop.permute.xlu1 %611  ;;  %v512_v62 = vpop.permute.xlu0 %511 }
  0x9f   : > { %614 = vst.msk [vmem:[#allocation5 + $0x18] sm:$0xff] %vm295_vm3, %v612_v61  ;;  %514 = vst.msk [vmem:[#allocation5 + $0x10] sm:$0xff] %vm295_vm3, %v512_v62 }
  0xa0   : > { %1023 = vrot.lane.b32.xlu1 %v1021_v59, %s2555_s24  ;;  %923 = vrot.lane.b32.xlu0 %v921_v60, %s2555_s24  ;;  %v1053_v59 = vld [vmem:[#allocation2 + $0x121] ss:$2 sm:$0xff] }
  0xa1   : > { %v953_v60 = vld [vmem:[#allocation2 + $0xfd] ss:$2 sm:$0xff] }
  0xa2   : > { %v424_v1 = vpop.permute.xlu1 %423  ;;  %v309_v2 = vpop.permute.xlu0 %308 }
  0xa3   : > { %426 = vst.msk [vmem:[#allocation5 + $0x8] sm:$0xff] %vm311_vm5, %v424_v1  ;;  %312 = vst.msk [vmem:[#allocation5] sm:$0xff] %vm311_vm5, %v309_v2 }
  0xa4   : > { %490 = vrot.lane.b32.xlu1 %v488_v63, %s2565_s8  ;;  %388 = vrot.lane.b32.xlu0 %v386_v0, %s2565_s8  ;;  %v867_v63 = vld [vmem:[#allocation2 + $0xdb] ss:$2 sm:$0xff] }
  0xa5   : > { %v767_v0 = vld [vmem:[#allocation2 + $0xb7] ss:$2 sm:$0xff] }
  0xa6   : > { %v618_v5 = vpop.permute.xlu1 %617  ;;  %v518_v6 = vpop.permute.xlu0 %517 }
  0xa7   : > { %620 = vst.msk [vmem:[#allocation5 + $0x18] sm:$0xff] %vm303_vm4, %v618_v5  ;;  %520 = vst.msk [vmem:[#allocation5 + $0x10] sm:$0xff] %vm303_vm4, %v518_v6 }
  0xa8   : > { %683 = vrot.lane.b32.xlu1 %v681_v3, %s2564_s7  ;;  %583 = vrot.lane.b32.xlu0 %v581_v4, %s2564_s7  ;;  %v1060_v3 = vld [vmem:[#allocation2 + $0x122] ss:$2 sm:$0xff] }
  0xa9   : > { %v960_v4 = vld [vmem:[#allocation2 + $0xfe] ss:$2 sm:$0xff] }
  0xaa   : > { %v430_v9 = vpop.permute.xlu1 %429  ;;  %v317_v10 = vpop.permute.xlu0 %316 }
  0xab   : > { %432 = vst.msk [vmem:[#allocation5 + $0x8] sm:$0xff] %vm319_vm6, %v430_v9  ;;  %320 = vst.msk [vmem:[#allocation5] sm:$0xff] %vm319_vm6, %v317_v10 }
  0xac   : > { %835 = vrot.lane.b32.xlu1 %v833_v7, %s2557_s26  ;;  %735 = vrot.lane.b32.xlu0 %v733_v8, %s2557_s26  ;;  %v874_v7 = vld [vmem:[#allocation2 + $0xea] ss:$2 sm:$0xff] }
  0xad   : > { %v774_v8 = vld [vmem:[#allocation2 + $0xc6] ss:$2 sm:$0xff] }
  0xae   : > { %v624_v13 = vpop.permute.xlu1 %623  ;;  %v524_v14 = vpop.permute.xlu0 %523 }
  0xaf   : > { %626 = vst.msk [vmem:[#allocation5 + $0x18] sm:$0xff] %vm311_vm5, %v624_v13  ;;  %526 = vst.msk [vmem:[#allocation5 + $0x10] sm:$0xff] %vm311_vm5, %v524_v14 }
  0xb0   : > { %1029 = vrot.lane.b32.xlu1 %v1027_v11, %s2556_s25  ;;  %929 = vrot.lane.b32.xlu0 %v927_v12, %s2556_s25  ;;  %v1067_v11 = vld [vmem:[#allocation2 + $0x123] ss:$2 sm:$0xff]  ;;  %s2571_s25 = smov 64  }
  0xb1   : > { %v967_v12 = vld [vmem:[#allocation2 + $0xff] ss:$2 sm:$0xff] }
  0xb2   : > { %v436_v18 = vpop.permute.xlu1 %435  ;;  %v325_v19 = vpop.permute.xlu0 %324 }
  0xb3   : > { %438 = vst.msk [vmem:[#allocation5 + $0x8] sm:$0xff] %vm327_vm7, %v436_v18  ;;  %328 = vst.msk [vmem:[#allocation5] sm:$0xff] %vm327_vm7, %v325_v19  ;;  %v1074_v19 = vld [vmem:[#allocation2 + $0x132] ss:$2 sm:$0xff] }
  0xb4   : > { %497 = vrot.lane.b32.xlu1 %v495_v16, %s2566_s13  ;;  %396 = vrot.lane.b32.xlu0 %v394_v17, %s2566_s13  ;;  %v781_v16 = vld [vmem:[#allocation2 + $0xc7] ss:$2 sm:$0xff] }
  0xb6   : > { %v630_v23 = vpop.permute.xlu1 %629  ;;  %v530_v24 = vpop.permute.xlu0 %529 }
  0xb7   : > { %632 = vst.msk [vmem:[#allocation5 + $0x18] sm:$0xff] %vm319_vm6, %v630_v23  ;;  %532 = vst.msk [vmem:[#allocation5 + $0x10] sm:$0xff] %vm319_vm6, %v530_v24  ;;  %v888_v23 = vld [vmem:[#allocation2 + $0xec] ss:$2 sm:$0xff] }
  0xb8   : > { %690 = vrot.lane.b32.xlu1 %v688_v21, %s2565_s8  ;;  %590 = vrot.lane.b32.xlu0 %v588_v22, %s2565_s8  ;;  %v788_v24 = vld [vmem:[#allocation2 + $0xc8] ss:$2 sm:$0xff] }
  0xba   : > { %v442_v28 = vpop.permute.xlu1 %441  ;;  %v333_v29 = vpop.permute.xlu0 %332 }
  0xbb   : > { %444 = vst.msk [vmem:[#allocation5 + $0x8] sm:$0xff] %vm335_vm8, %v442_v28  ;;  %336 = vst.msk [vmem:[#allocation5] sm:$0xff] %vm335_vm8, %v333_v29  ;;  %v981_v28 = vld [vmem:[#allocation2 + $0x10f] ss:$2 sm:$0xff] }
  0xbc   : > { %841 = vrot.lane.b32.xlu1 %v839_v26, %s2558_s27  ;;  %741 = vrot.lane.b32.xlu0 %v739_v27, %s2558_s27  ;;  %v1081_v27 = vld [vmem:[#allocation2 + $0x133] ss:$2 sm:$0xff] }
  0xbe   : > { %v636_v33 = vpop.permute.xlu1 %635  ;;  %v536_v34 = vpop.permute.xlu0 %535 }
  0xbf   : > { %638 = vst.msk [vmem:[#allocation5 + $0x18] sm:$0xff] %vm327_vm7, %v636_v33  ;;  %538 = vst.msk [vmem:[#allocation5 + $0x10] sm:$0xff] %vm327_vm7, %v536_v34 }
  0xc0   : > { %1035 = vrot.lane.b32.xlu1 %v1033_v31, %s2557_s26  ;;  %935 = vrot.lane.b32.xlu0 %v933_v32, %s2557_s26  ;;  %v895_v31 = vld [vmem:[#allocation2 + $0xed] ss:$2 sm:$0xff] }
  0xc1   : > { %v795_v32 = vld [vmem:[#allocation2 + $0xc9] ss:$2 sm:$0xff] }
  0xc2   : > { %v449_v37 = vpop.permute.xlu1 %448  ;;  %v341_v38 = vpop.permute.xlu0 %340 }
  0xc3   : > { %451 = vst.msk [vmem:[#allocation5 + $0x8] sm:$0xff] %vm343_vm9, %v449_v37  ;;  %344 = vst.msk [vmem:[#allocation5] sm:$0xff] %vm343_vm9, %v341_v38 }
  0xc4   : > { %697 = vrot.lane.b32.xlu1 %v695_v35, %s2566_s13  ;;  %597 = vrot.lane.b32.xlu0 %v595_v36, %s2566_s13  ;;  %v1088_v35 = vld [vmem:[#allocation2 + $0x134] ss:$2 sm:$0xff] }
  0xc5   : > { %v988_v36 = vld [vmem:[#allocation2 + $0x110] ss:$2 sm:$0xff] }
  0xc6   : > { %v642_v41 = vpop.permute.xlu1 %641  ;;  %v542_v42 = vpop.permute.xlu0 %541 }
  0xc7   : > { %644 = vst.msk [vmem:[#allocation5 + $0x18] sm:$0xff] %vm335_vm8, %v642_v41  ;;  %544 = vst.msk [vmem:[#allocation5 + $0x10] sm:$0xff] %vm335_vm8, %v542_v42 }
  0xc8   : > { %848 = vrot.lane.b32.xlu1 %v846_v39, %s2559_s28  ;;  %748 = vrot.lane.b32.xlu0 %v746_v40, %s2559_s28  ;;  %v1095_v39 = vld [vmem:[#allocation2 + $0x135] ss:$2 sm:$0xff] }
  0xc9   : > { %v995_v40 = vld [vmem:[#allocation2 + $0x111] ss:$2 sm:$0xff] }
  0xca   : > { %v456_v45 = vpop.permute.xlu1 %455  ;;  %v349_v46 = vpop.permute.xlu0 %348 }
  0xcb   : > { %458 = vst.msk [vmem:[#allocation5 + $0x8] sm:$0xff] %vm351_vm10, %v456_v45  ;;  %352 = vst.msk [vmem:[#allocation5] sm:$0xff] %vm351_vm10, %v349_v46 }
  0xcc   : > { %1041 = vrot.lane.b32.xlu1 %v1039_v43, %s2558_s27  ;;  %941 = vrot.lane.b32.xlu0 %v939_v44, %s2558_s27  ;;  %v2567_v43 = vmov 0.0   ;;  %s2572_s27 = smov 72  }
  0xcd   : > { %1248 = vst.msk [vmem:[#allocation3] sm:$0xff] %vm1247_vm15, %v2567_v43  ;;  %1249 = vst.msk [vmem:[#allocation3 + $0x8] sm:$0xff] %vm1247_vm15, %v2567_v43  ;;  %2461 = vmatprep.subr.bf16.mxu1 %v2567_v43 }
  0xce   : > { %v649_v49 = vpop.permute.xlu1 %648  ;;  %v549_v50 = vpop.permute.xlu0 %548  ;;  %1250 = vst.msk [vmem:[#allocation3 + $0x10] sm:$0xff] %vm1247_vm15, %v2567_v43  ;;  %1251 = vst.msk [vmem:[#allocation3 + $0x18] sm:$0xff] %vm1247_vm15, %v2567_v43 }
  0xcf   : > { %651 = vst.msk [vmem:[#allocation5 + $0x18] sm:$0xff] %vm343_vm9, %v649_v49  ;;  %551 = vst.msk [vmem:[#allocation5 + $0x10] sm:$0xff] %vm343_vm9, %v549_v50 }
  0xd0   : > { %855 = vrot.lane.b32.xlu1 %v853_v47, %s2560_s29  ;;  %755 = vrot.lane.b32.xlu0 %v753_v48, %s2560_s29  ;;  %1252 = vst.msk [vmem:[#allocation3 + $0x20] sm:$0xff] %vm1247_vm15, %v2567_v43  ;;  %1253 = vst.msk [vmem:[#allocation3 + $0x28] sm:$0xff] %vm1247_vm15, %v2567_v43 }
  0xd1   : > { %1254 = vst.msk [vmem:[#allocation3 + $0x30] sm:$0xff] %vm1247_vm15, %v2567_v43  ;;  %1255 = vst.msk [vmem:[#allocation3 + $0x38] sm:$0xff] %vm1247_vm15, %v2567_v43 }
  0xd2   : > { %v806_v53 = vpop.permute.xlu1 %805  ;;  %v706_v54 = vpop.permute.xlu0 %705  ;;  %1256 = vst.msk [vmem:[#allocation3 + $0x40] sm:$0xff] %vm1247_vm15, %v2567_v43  ;;  %1257 = vst.msk [vmem:[#allocation3 + $0x48] sm:$0xff] %vm1247_vm15, %v2567_v43 }
  0xd3   : > { %808 = vst.msk [vmem:[#allocation5 + $0x28] sm:$0xff] %vm287_vm2, %v806_v53  ;;  %708 = vst.msk [vmem:[#allocation5 + $0x20] sm:$0xff] %vm287_vm2, %v706_v54 }
  0xd4   : > { %1048 = vrot.lane.b32.xlu1 %v1046_v51, %s2559_s28  ;;  %948 = vrot.lane.b32.xlu0 %v946_v52, %s2559_s28  ;;  %1258 = vst.msk [vmem:[#allocation3 + $0x50] sm:$0xff] %vm1247_vm15, %v2567_v43  ;;  %1259 = vst.msk [vmem:[#allocation3 + $0x58] sm:$0xff] %vm1247_vm15, %v2567_v43  ;;  %v1273_v46 = vld [vmem:[#allocation3 + $0x1] ss:$2 sm:$0xf] }
  0xd6   : > { %v463_v57 = vpop.permute.xlu1 %462  ;;  %v357_v58 = vpop.permute.xlu0 %356 }
  0xd7   : > { %465 = vst.msk [vmem:[#allocation5 + $0x8] sm:$0xff] %vm359_vm11, %v463_v57  ;;  %360 = vst.msk [vmem:[#allocation5] sm:$0xff] %vm359_vm11, %v357_v58 }
  0xd8   : > { %862 = vrot.lane.b32.xlu1 %v860_v55, %s2561_s30  ;;  %762 = vrot.lane.b32.xlu0 %v760_v56, %s2561_s30 }
  0xda   : > { %v656_v61 = vpop.permute.xlu1 %655  ;;  %v556_v62 = vpop.permute.xlu0 %555 }
  0xdb   : > { %658 = vst.msk [vmem:[#allocation5 + $0x18] sm:$0xff] %vm351_vm10, %v656_v61  ;;  %558 = vst.msk [vmem:[#allocation5 + $0x10] sm:$0xff] %vm351_vm10, %v556_v62 }
  0xdc   : > { %1055 = vrot.lane.b32.xlu1 %v1053_v59, %s2560_s29  ;;  %955 = vrot.lane.b32.xlu0 %v953_v60, %s2560_s29  ;;  %s2573_s29 = smov 80  }
  0xde   : > { %v812_v1 = vpop.permute.xlu1 %811  ;;  %v712_v2 = vpop.permute.xlu0 %711 }
  0xdf   : > { %814 = vst.msk [vmem:[#allocation5 + $0x28] sm:$0xff] %vm295_vm3, %v812_v1  ;;  %714 = vst.msk [vmem:[#allocation5 + $0x20] sm:$0xff] %vm295_vm3, %v712_v2 }
  0xe0   : > { %869 = vrot.lane.b32.xlu1 %v867_v63, %s2562_s5  ;;  %769 = vrot.lane.b32.xlu0 %v767_v0, %s2562_s5 }
  0xe2   : > { %v1006_v5 = vpop.permute.xlu1 %1005  ;;  %v906_v6 = vpop.permute.xlu0 %905 }
  0xe3   : > { %1008 = vst.msk [vmem:[#allocation5 + $0x38] sm:$0xff] %vm287_vm2, %v1006_v5  ;;  %908 = vst.msk [vmem:[#allocation5 + $0x30] sm:$0xff] %vm287_vm2, %v906_v6  ;;  %vm1145_vm2 = vcmask 523264  }
  0xe4   : > { %1062 = vrot.lane.b32.xlu1 %v1060_v3, %s2561_s30  ;;  %962 = vrot.lane.b32.xlu0 %v960_v4, %s2561_s30 }
  0xe6   : > { %v470_v9 = vpop.permute.xlu1 %469  ;;  %v365_v10 = vpop.permute.xlu0 %364 }
  0xe7   : > { %472 = vst.msk [vmem:[#allocation5 + $0x8] sm:$0xff] %vm367_vm12, %v470_v9  ;;  %368 = vst.msk [vmem:[#allocation5] sm:$0xff] %vm367_vm12, %v365_v10 }
  0xe8   : > { %876 = vrot.lane.b32.xlu1 %v874_v7, %s2563_s6  ;;  %776 = vrot.lane.b32.xlu0 %v774_v8, %s2563_s6 }
  0xea   : > { %v663_v13 = vpop.permute.xlu1 %662  ;;  %v563_v14 = vpop.permute.xlu0 %562 }
  0xeb   : > { %665 = vst.msk [vmem:[#allocation5 + $0x18] sm:$0xff] %vm359_vm11, %v663_v13  ;;  %565 = vst.msk [vmem:[#allocation5 + $0x10] sm:$0xff] %vm359_vm11, %v563_v14 }
  0xec   : > { %1069 = vrot.lane.b32.xlu1 %v1067_v11, %s2562_s5  ;;  %969 = vrot.lane.b32.xlu0 %v967_v12, %s2562_s5  ;;  %s2574_s5 = smov 88  }
  0xee   : > { %v818_v17 = vpop.permute.xlu1 %817  ;;  %v718_v18 = vpop.permute.xlu0 %717 }
  0xef   : > { %820 = vst.msk [vmem:[#allocation5 + $0x28] sm:$0xff] %vm303_vm4, %v818_v17  ;;  %720 = vst.msk [vmem:[#allocation5 + $0x20] sm:$0xff] %vm303_vm4, %v718_v18 }
  0xf0   : > { %883 = vrot.lane.b32.xlu1 %v881_v15, %s2564_s7  ;;  %783 = vrot.lane.b32.xlu0 %v781_v16, %s2564_s7 }
  0xf2   : > { %v1012_v21 = vpop.permute.xlu1 %1011  ;;  %v912_v22 = vpop.permute.xlu0 %911 }
  0xf3   : > { %1014 = vst.msk [vmem:[#allocation5 + $0x38] sm:$0xff] %vm295_vm3, %v1012_v21  ;;  %914 = vst.msk [vmem:[#allocation5 + $0x30] sm:$0xff] %vm295_vm3, %v912_v22  ;;  %vm1260_vm3 = vcmask 60416  }
  0xf4   : > { %1076 = vrot.lane.b32.xlu1 %v1074_v19, %s2563_s6  ;;  %976 = vrot.lane.b32.xlu0 %v974_v20, %s2563_s6  ;;  %1261 = vst.msk [vmem:[#allocation3 + $0x60] sm:$0xf] %vm1260_vm3, %v2567_v43 }
  0xf6   : > { %v477_v25 = vpop.permute.xlu1 %476  ;;  %v373_v26 = vpop.permute.xlu0 %372 }
  0xf7   : > { %479 = vst.msk [vmem:[#allocation5 + $0x8] sm:$0xff] %vm375_vm13, %v477_v25  ;;  %376 = vst.msk [vmem:[#allocation5] sm:$0xff] %vm375_vm13, %v373_v26 }
  0xf8   : > { %890 = vrot.lane.b32.xlu1 %v888_v23, %s2565_s8  ;;  %790 = vrot.lane.b32.xlu0 %v788_v24, %s2565_s8 }
  0xfa   : > { %v670_v29 = vpop.permute.xlu1 %669  ;;  %v570_v30 = vpop.permute.xlu0 %569 }
  0xfb   : > { %672 = vst.msk [vmem:[#allocation5 + $0x18] sm:$0xff] %vm367_vm12, %v670_v29  ;;  %572 = vst.msk [vmem:[#allocation5 + $0x10] sm:$0xff] %vm367_vm12, %v570_v30 }
  0xfc   : > { %1083 = vrot.lane.b32.xlu1 %v1081_v27, %s2564_s7  ;;  %983 = vrot.lane.b32.xlu0 %v981_v28, %s2564_s7 }
  0xfe   : > { %v824_v33 = vpop.permute.xlu1 %823  ;;  %v724_v34 = vpop.permute.xlu0 %723 }
  0xff   : > { %826 = vst.msk [vmem:[#allocation5 + $0x28] sm:$0xff] %vm311_vm5, %v824_v33  ;;  %726 = vst.msk [vmem:[#allocation5 + $0x20] sm:$0xff] %vm311_vm5, %v724_v34 }
 0x100   : > { %897 = vrot.lane.b32.xlu1 %v895_v31, %s2566_s13  ;;  %797 = vrot.lane.b32.xlu0 %v795_v32, %s2566_s13 }
 0x102   : > { %v1018_v37 = vpop.permute.xlu1 %1017  ;;  %v918_v38 = vpop.permute.xlu0 %917 }
 0x103   : > { %1020 = vst.msk [vmem:[#allocation5 + $0x38] sm:$0xff] %vm303_vm4, %v1018_v37  ;;  %920 = vst.msk [vmem:[#allocation5 + $0x30] sm:$0xff] %vm303_vm4, %v918_v38  ;;  %vm1278_vm4 = vcmask 126016  }
 0x104   : > { %1090 = vrot.lane.b32.xlu1 %v1088_v35, %s2565_s8  ;;  %990 = vrot.lane.b32.xlu0 %v988_v36, %s2565_s8 }
 0x106   : > { %v484_v41 = vpop.permute.xlu1 %483  ;;  %v381_v42 = vpop.permute.xlu0 %380 }
 0x107   : > { %486 = vst.msk [vmem:[#allocation5 + $0x8] sm:$0xff] %vm383_vm14, %v484_v41  ;;  %384 = vst.msk [vmem:[#allocation5] sm:$0xff] %vm383_vm14, %v381_v42 }
 0x108   : > { %1097 = vrot.lane.b32.xlu1 %v1095_v39, %s2566_s13  ;;  %997 = vrot.lane.b32.xlu0 %v995_v40, %s2566_s13 }
 0x10a   : > { %v677_v44 = vpop.permute.xlu1 %676  ;;  %v577_v45 = vpop.permute.xlu0 %576 }
 0x10b   : > { %679 = vst.msk [vmem:[#allocation5 + $0x18] sm:$0xff] %vm375_vm13, %v677_v44  ;;  %579 = vst.msk [vmem:[#allocation5 + $0x10] sm:$0xff] %vm375_vm13, %v577_v45 }
 0x10c   : > { %1275 = vrot.lane.b32.xlu0 %v1273_v46, %s2552_s21 }
 0x10e   : > { %v830_v47 = vpop.permute.xlu1 %829  ;;  %v730_v48 = vpop.permute.xlu0 %729 }
 0x10f   : > { %832 = vst.msk [vmem:[#allocation5 + $0x28] sm:$0xff] %vm319_vm6, %v830_v47  ;;  %732 = vst.msk [vmem:[#allocation5 + $0x20] sm:$0xff] %vm319_vm6, %v730_v48 }
 0x112   : > { %v1024_v49 = vpop.permute.xlu1 %1023  ;;  %v924_v50 = vpop.permute.xlu0 %923 }
 0x113   : > { %1026 = vst.msk [vmem:[#allocation5 + $0x38] sm:$0xff] %vm311_vm5, %v1024_v49  ;;  %926 = vst.msk [vmem:[#allocation5 + $0x30] sm:$0xff] %vm311_vm5, %v924_v50  ;;  %vm1286_vm5 = vcmask 191616  }
 0x116   : > { %v491_v51 = vpop.permute.xlu1 %490  ;;  %v389_v52 = vpop.permute.xlu0 %388 }
 0x117   : > { %493 = vst.msk [vmem:[#allocation5 + $0x8] sm:$0xff] %vm391_vm0, %v491_v51  ;;  %392 = vst.msk [vmem:[#allocation5] sm:$0xff] %vm391_vm0, %v389_v52  ;;  %v1665_v52 = vld [vmem:[#allocation3 + $0x5a] ss:$2 sm:$0xf] }
 0x118   : > { %1667 = vrot.lane.b32.xlu1 %v1665_v52, %s2568_s20 }
 0x11a   : > { %v684_v53 = vpop.permute.xlu1 %683  ;;  %v584_v54 = vpop.permute.xlu0 %583 }
 0x11b   : > { %686 = vst.msk [vmem:[#allocation5 + $0x18] sm:$0xff] %vm383_vm14, %v684_v53  ;;  %586 = vst.msk [vmem:[#allocation5 + $0x10] sm:$0xff] %vm383_vm14, %v584_v54  ;;  %v1281_v53 = vld [vmem:[#allocation3 + $0x2] ss:$2 sm:$0xf] }
 0x11c   : > { %1283 = vrot.lane.b32.xlu0 %v1281_v53, %s2555_s24  ;;  %v1672_v54 = vld [vmem:[#allocation3 + $0x5b] ss:$2 sm:$0xf] }
 0x11d   : > { %1674 = vrot.lane.b32.xlu1 %v1672_v54, %s2569_s22 }
 0x11e   : > { %v836_v55 = vpop.permute.xlu1 %835  ;;  %v736_v56 = vpop.permute.xlu0 %735 }
 0x11f   : > { %838 = vst.msk [vmem:[#allocation5 + $0x28] sm:$0xff] %vm327_vm7, %v836_v55  ;;  %738 = vst.msk [vmem:[#allocation5 + $0x20] sm:$0xff] %vm327_vm7, %v736_v56  ;;  %v1289_v55 = vld [vmem:[#allocation3 + $0x3] ss:$2 sm:$0xf] }
 0x120   : > { %1291 = vrot.lane.b32.xlu0 %v1289_v55, %s2557_s26  ;;  %v1270_v56 = vld [vmem:[#allocation3] ss:$2 sm:$0xf] }
 0x121   : > { %1271 = vst.msk [vmem:[#allocation6] sm:$0xf] %vm1260_vm3, %v1270_v56 }
 0x122   : > { %v1030_v57 = vpop.permute.xlu1 %1029  ;;  %v930_v58 = vpop.permute.xlu0 %929 }
 0x123   : > { %1032 = vst.msk [vmem:[#allocation5 + $0x38] sm:$0xff] %vm319_vm6, %v1030_v57  ;;  %932 = vst.msk [vmem:[#allocation5 + $0x30] sm:$0xff] %vm319_vm6, %v930_v58  ;;  %vm1294_vm6 = vcmask 257216  }
 0x126   : > { %v498_v59 = vpop.permute.xlu1 %497  ;;  %v397_v60 = vpop.permute.xlu0 %396 }
 0x127   : > { %500 = vst.msk [vmem:[#allocation5 + $0x8] sm:$0xff] %vm399_vm1, %v498_v59  ;;  %400 = vst.msk [vmem:[#allocation5] sm:$0xff] %vm399_vm1, %v397_v60 }
 0x12a   : > { %v691_v61 = vpop.permute.xlu1 %690  ;;  %v591_v62 = vpop.permute.xlu0 %590 }
 0x12b   : > { %693 = vst.msk [vmem:[#allocation5 + $0x18] sm:$0xff] %vm391_vm0, %v691_v61  ;;  %593 = vst.msk [vmem:[#allocation5 + $0x10] sm:$0xff] %vm391_vm0, %v591_v62 }
 0x12e   : > { %v842_v63 = vpop.permute.xlu1 %841  ;;  %v742_v0 = vpop.permute.xlu0 %741  ;;  %v1101_v1 = vld [vmem:[#allocation5] sm:$0xff]  ;;  %v1102_v2 = vld [vmem:[#allocation5 + $0x8] sm:$0xff] }
 0x12f   : > { %844 = vst.msk [vmem:[#allocation5 + $0x28] sm:$0xff] %vm335_vm8, %v842_v63  ;;  %744 = vst.msk [vmem:[#allocation5 + $0x20] sm:$0xff] %vm335_vm8, %v742_v0  ;;  %v1109_v3 = vpack.c.bf16 %v1102_v2, %v1101_v1 }
 0x131   : > { %2453 = vmatprep.mubr.msk.bf16.mxu0 %vm1145_vm2, %v1109_v3 }
 0x132   : > { %v1036_v4 = vpop.permute.xlu1 %1035  ;;  %v936_v5 = vpop.permute.xlu0 %935 }
 0x133   : > { %1038 = vst.msk [vmem:[#allocation5 + $0x38] sm:$0xff] %vm327_vm7, %v1036_v4  ;;  %938 = vst.msk [vmem:[#allocation5 + $0x30] sm:$0xff] %vm327_vm7, %v936_v5 }
 0x136   : > { %v698_v6 = vpop.permute.xlu1 %697  ;;  %v598_v7 = vpop.permute.xlu0 %597 }
 0x137   : > { %700 = vst.msk [vmem:[#allocation5 + $0x18] sm:$0xff] %vm399_vm1, %v698_v6  ;;  %600 = vst.msk [vmem:[#allocation5 + $0x10] sm:$0xff] %vm399_vm1, %v598_v7 }
 0x13a   : > { %v849_v8 = vpop.permute.xlu1 %848  ;;  %v749_v9 = vpop.permute.xlu0 %748 }
 0x13b   : > { %851 = vst.msk [vmem:[#allocation5 + $0x28] sm:$0xff] %vm343_vm9, %v849_v8  ;;  %751 = vst.msk [vmem:[#allocation5 + $0x20] sm:$0xff] %vm343_vm9, %v749_v9 }
 0x13e   : > { %v1042_v10 = vpop.permute.xlu1 %1041  ;;  %v942_v11 = vpop.permute.xlu0 %941  ;;  %v1103_v12 = vld [vmem:[#allocation5 + $0x10] sm:$0xff]  ;;  %v1104_v13 = vld [vmem:[#allocation5 + $0x18] sm:$0xff] }
 0x13f   : > { %1044 = vst.msk [vmem:[#allocation5 + $0x38] sm:$0xff] %vm335_vm8, %v1042_v10  ;;  %944 = vst.msk [vmem:[#allocation5 + $0x30] sm:$0xff] %vm335_vm8, %v942_v11  ;;  %v1110_v14 = vpack.c.bf16 %v1104_v13, %v1103_v12 }
 0x141   : > { %2454 = vmatmul.mubr.msk.bf16.vlgmr.msra.gmra.mxu0 %vm1145_vm2, %v1110_v14 }
 0x142   : > { %v856_v15 = vpop.permute.xlu1 %855  ;;  %v756_v16 = vpop.permute.xlu0 %755 }
 0x143   : > { %858 = vst.msk [vmem:[#allocation5 + $0x28] sm:$0xff] %vm351_vm10, %v856_v15  ;;  %758 = vst.msk [vmem:[#allocation5 + $0x20] sm:$0xff] %vm351_vm10, %v756_v16 }
 0x146   : > { %v1049_v17 = vpop.permute.xlu1 %1048  ;;  %v949_v18 = vpop.permute.xlu0 %948 }
 0x147   : > { %1051 = vst.msk [vmem:[#allocation5 + $0x38] sm:$0xff] %vm343_vm9, %v1049_v17  ;;  %951 = vst.msk [vmem:[#allocation5 + $0x30] sm:$0xff] %vm343_vm9, %v949_v18 }
 0x14a   : > { %v863_v19 = vpop.permute.xlu1 %862  ;;  %v763_v20 = vpop.permute.xlu0 %762 }
 0x14b   : > { %865 = vst.msk [vmem:[#allocation5 + $0x28] sm:$0xff] %vm359_vm11, %v863_v19  ;;  %765 = vst.msk [vmem:[#allocation5 + $0x20] sm:$0xff] %vm359_vm11, %v763_v20 }
 0x14e   : > { %v1056_v21 = vpop.permute.xlu1 %1055  ;;  %v956_v22 = vpop.permute.xlu0 %955 }
 0x14f   : > { %1058 = vst.msk [vmem:[#allocation5 + $0x38] sm:$0xff] %vm351_vm10, %v1056_v21  ;;  %958 = vst.msk [vmem:[#allocation5 + $0x30] sm:$0xff] %vm351_vm10, %v956_v22 }
 0x152   : > { %v870_v23 = vpop.permute.xlu1 %869  ;;  %v770_v24 = vpop.permute.xlu0 %769 }
 0x153   : > { %872 = vst.msk [vmem:[#allocation5 + $0x28] sm:$0xff] %vm367_vm12, %v870_v23  ;;  %772 = vst.msk [vmem:[#allocation5 + $0x20] sm:$0xff] %vm367_vm12, %v770_v24 }
 0x156   : > { %v1063_v25 = vpop.permute.xlu1 %1062  ;;  %v963_v26 = vpop.permute.xlu0 %962 }
 0x157   : > { %1065 = vst.msk [vmem:[#allocation5 + $0x38] sm:$0xff] %vm359_vm11, %v1063_v25  ;;  %965 = vst.msk [vmem:[#allocation5 + $0x30] sm:$0xff] %vm359_vm11, %v963_v26 }
 0x15a   : > { %v877_v27 = vpop.permute.xlu1 %876  ;;  %v777_v28 = vpop.permute.xlu0 %776 }
 0x15b   : > { %879 = vst.msk [vmem:[#allocation5 + $0x28] sm:$0xff] %vm375_vm13, %v877_v27  ;;  %779 = vst.msk [vmem:[#allocation5 + $0x20] sm:$0xff] %vm375_vm13, %v777_v28 }
 0x15e   : > { %v1070_v29 = vpop.permute.xlu1 %1069  ;;  %v970_v30 = vpop.permute.xlu0 %969 }
 0x15f   : > { %1072 = vst.msk [vmem:[#allocation5 + $0x38] sm:$0xff] %vm367_vm12, %v1070_v29  ;;  %972 = vst.msk [vmem:[#allocation5 + $0x30] sm:$0xff] %vm367_vm12, %v970_v30 }
 0x162   : > { %v884_v31 = vpop.permute.xlu1 %883  ;;  %v784_v32 = vpop.permute.xlu0 %783 }
 0x163   : > { %886 = vst.msk [vmem:[#allocation5 + $0x28] sm:$0xff] %vm383_vm14, %v884_v31  ;;  %786 = vst.msk [vmem:[#allocation5 + $0x20] sm:$0xff] %vm383_vm14, %v784_v32 }
 0x166   : > { %v1077_v33 = vpop.permute.xlu1 %1076  ;;  %v977_v34 = vpop.permute.xlu0 %976 }
 0x167   : > { %1079 = vst.msk [vmem:[#allocation5 + $0x38] sm:$0xff] %vm375_vm13, %v1077_v33  ;;  %979 = vst.msk [vmem:[#allocation5 + $0x30] sm:$0xff] %vm375_vm13, %v977_v34 }
 0x16a   : > { %v891_v35 = vpop.permute.xlu1 %890  ;;  %v791_v36 = vpop.permute.xlu0 %790 }
 0x16b   : > { %893 = vst.msk [vmem:[#allocation5 + $0x28] sm:$0xff] %vm391_vm0, %v891_v35  ;;  %793 = vst.msk [vmem:[#allocation5 + $0x20] sm:$0xff] %vm391_vm0, %v791_v36 }
 0x16e   : > { %v1084_v37 = vpop.permute.xlu1 %1083  ;;  %v984_v38 = vpop.permute.xlu0 %983 }
 0x16f   : > { %1086 = vst.msk [vmem:[#allocation5 + $0x38] sm:$0xff] %vm383_vm14, %v1084_v37  ;;  %986 = vst.msk [vmem:[#allocation5 + $0x30] sm:$0xff] %vm383_vm14, %v984_v38 }
 0x172   : > { %v898_v39 = vpop.permute.xlu1 %897  ;;  %v798_v40 = vpop.permute.xlu0 %797 }
 0x173   : > { %900 = vst.msk [vmem:[#allocation5 + $0x28] sm:$0xff] %vm399_vm1, %v898_v39  ;;  %800 = vst.msk [vmem:[#allocation5 + $0x20] sm:$0xff] %vm399_vm1, %v798_v40 }
 0x176   : > { %v1091_v41 = vpop.permute.xlu1 %1090  ;;  %v991_v42 = vpop.permute.xlu0 %990 }
 0x177   : > { %1093 = vst.msk [vmem:[#allocation5 + $0x38] sm:$0xff] %vm391_vm0, %v1091_v41  ;;  %993 = vst.msk [vmem:[#allocation5 + $0x30] sm:$0xff] %vm391_vm0, %v991_v42  ;;  %vm1302_vm0 = vcmask 322816  }
 0x17a   : > { %v1098_v44 = vpop.permute.xlu1 %1097  ;;  %v998_v45 = vpop.permute.xlu0 %997  ;;  %v1105_v46 = vld [vmem:[#allocation5 + $0x20] sm:$0xff]  ;;  %v1106_v47 = vld [vmem:[#allocation5 + $0x28] sm:$0xff] }
 0x17b   : > { %1100 = vst.msk [vmem:[#allocation5 + $0x38] sm:$0xff] %vm399_vm1, %v1098_v44  ;;  %1000 = vst.msk [vmem:[#allocation5 + $0x30] sm:$0xff] %vm399_vm1, %v998_v45  ;;  %v1111_v48 = vpack.c.bf16 %v1106_v47, %v1105_v46  ;;  %vm1310_vm1 = vcmask 388416  }
 0x17d   : > { %2457 = vmatprep.mubr.msk.bf16.mxu0 %vm1145_vm2, %v1111_v48 }
 0x17e   : > { %v1276_v57 = vpop.permute.xlu0 %1275 }
 0x17f   : > { %1279 = vst.msk [vmem:[#allocation6] sm:$0xf] %vm1278_vm4, %v1276_v57 }
 0x182   : > { %v1107_v49 = vld [vmem:[#allocation5 + $0x30] sm:$0xff]  ;;  %v1108_v50 = vld [vmem:[#allocation5 + $0x38] sm:$0xff] }
 0x183   : > { %v1112_v51 = vpack.c.bf16 %v1108_v50, %v1107_v49 }
 0x185   : > { %2458 = vmatmul.mubr.msk.bf16.gmra.mxu0 %vm1145_vm2, %v1112_v51  ;;  %vm1318_vm2 = vcmask 454016  }
 0x18e   : > { %v1284_v58 = vpop.permute.xlu0 %1283 }
 0x18f   : > { %1287 = vst.msk [vmem:[#allocation6] sm:$0xf] %vm1286_vm5, %v1284_v58 }
 0x192   : > { %v1292_v59 = vpop.permute.xlu0 %1291 }
 0x193   : > { %1295 = vst.msk [vmem:[#allocation6] sm:$0xf] %vm1294_vm6, %v1292_v59 }
 0x201   : > { %v2455_v60 = vpop.f32.mrf.mxu0 }
 0x202   : > { %vm1225_vm7 = vcmp.ge.f32.partialorder %v2455_v60, 0.0  ;;  %v1233_v61 = vmul.f32 0.2, %v2455_v60 }
 0x203   : > { %v1192_v62 = vpop.f32.mrf.mxu0 }
 0x204   : > { %v1241_v63 = vsel %vm1225_vm7, %v2455_v60, %v1233_v61  ;;  %vm1223_vm8 = vcmp.ge.f32.partialorder %v1192_v62, 0.0  ;;  %v1231_v0 = vmul.f32 0.2, %v1192_v62  ;;  %vm1334_vm7 = vcmask 585216  }
 0x205   : > { %1264 = vst.msk [vmem:[#allocation3 + $0x1f] sm:$0xff] %vm1247_vm15, %v1241_v63  ;;  %v2456_v1 = vpop.f32.mrf.mxu0 }
 0x206   : > { %v1239_v2 = vsel %vm1223_vm8, %v1192_v62, %v1231_v0  ;;  %vm1226_vm9 = vcmp.ge.f32.partialorder %v2456_v1, 0.0  ;;  %v1234_v3 = vmul.f32 0.2, %v2456_v1  ;;  %vm1342_vm8 = vcmask 650816  }
 0x207   : > { %1262 = vst.msk [vmem:[#allocation3 + $0xb] sm:$0xff] %vm1247_vm15, %v1239_v2  ;;  %v1195_v4 = vpop.f32.mrf.mxu0 }
 0x208   : > { %v1242_v5 = vsel %vm1226_vm9, %v2456_v1, %v1234_v3  ;;  %vm1224_vm10 = vcmp.ge.f32.partialorder %v1195_v4, 0.0  ;;  %v1232_v6 = vmul.f32 0.2, %v1195_v4  ;;  %v2520_v1 = vld [vmem:[%s3349_s2 + $0x38] sm:$0xff]   ;;  %vm1350_vm9 = vcmask 716416  }
 0x209   : > { %1265 = vst.msk [vmem:[#allocation3 + $0x29] sm:$0xff] %vm1247_vm15, %v1242_v5  ;;  %2462 = vmatpush3.bf16.msra.mxu1 %v2520_v1  ;;  %v2521_v5 = vld [vmem:[%s3349_s2 + $0x30] sm:$0xff]  }
 0x20a   : > { %v1240_v7 = vsel %vm1224_vm10, %v1195_v4, %v1232_v6  ;;  %2463 = vmatprep.subr.bf16.mxu1 %v2567_v43  ;;  %v3058_v4 = vpop.permute.xlu1 %1667  ;;  %vm1358_vm10 = vcmask 782016  }
 0x20b   : > { %1263 = vst.msk [vmem:[#allocation3 + $0x15] sm:$0xff] %vm1247_vm15, %v1240_v7 }
 0x20c   : > { %v1412_v8 = vld [vmem:[#allocation3 + $0x1e] ss:$2 sm:$0xf]  ;;  %v1418_v10 = vld [vmem:[#allocation3 + $0x1f] ss:$2 sm:$0xf] }
 0x20d   : > { %v1361_v9 = vld [vmem:[#allocation3 + $0x1e] ss:$2 sm:$0xf]  ;;  %1414 = vrot.lane.b32.xlu1 %v1412_v8, %s2559_s28  ;;  %v1369_v11 = vld [vmem:[#allocation3 + $0x1f] ss:$2 sm:$0xf]  ;;  %2464 = vmatpush3.bf16.msra.mxu1 %v2521_v5 }
 0x20e   : > { %1363 = vrot.lane.b32.xlu0 %v1361_v9, %s2568_s20  ;;  %v1424_v12 = vld [vmem:[#allocation3 + $0x20] ss:$2 sm:$0xf]  ;;  %v1430_v14 = vld [vmem:[#allocation3 + $0x21] ss:$2 sm:$0xf]  ;;  %2465 = vmatprep.subr.bf16.mxu1 %v2567_v43 }
 0x20f   : > { %v1377_v13 = vld [vmem:[#allocation3 + $0x20] ss:$2 sm:$0xf]  ;;  %v1297_v15 = vld [vmem:[#allocation3 + $0xa] ss:$2 sm:$0xf] }
 0x210   : > { %v1492_v16 = vld [vmem:[#allocation3 + $0x28] ss:$2 sm:$0xf]  ;;  %v1305_v18 = vld [vmem:[#allocation3 + $0xb] ss:$2 sm:$0xf] }
 0x211   : > { %1420 = vrot.lane.b32.xlu1 %v1418_v10, %s2561_s30  ;;  %1493 = vst.msk [vmem:[#allocation6 + $0x8] sm:$0xf] %vm1260_vm3, %v1492_v16  ;;  %v1437_v19 = vld [vmem:[#allocation3 + $0x28] ss:$2 sm:$0xf]  ;;  %v2522_v8 = vld [vmem:[%s3349_s2 + $0x28] sm:$0xff]  }
 0x212   : > { %1371 = vrot.lane.b32.xlu0 %v1369_v11, %s2569_s22  ;;  %v1392_v17 = vld [vmem:[#allocation3 + $0x14] ss:$2 sm:$0xf]  ;;  %v1313_v20 = vld [vmem:[#allocation3 + $0xc] ss:$2 sm:$0xf]  ;;  %v3071_v11 = vpop.permute.xlu1 %1674  ;;  %2466 = vmatpush3.bf16.msra.mxu1 %v2522_v8 }
 0x213   : > { %1393 = vst.msk [vmem:[#allocation6 + $0x4] sm:$0xf] %vm1260_vm3, %v1392_v17  ;;  %v1444_v21 = vld [vmem:[#allocation3 + $0x29] ss:$2 sm:$0xf]  ;;  %2467 = vmatprep.subr.bf16.mxu1 %v2567_v43  ;;  %v2523_v16 = vld [vmem:[%s3349_s2 + $0x20] sm:$0xff]  }
 0x214   : > { %v1321_v22 = vld [vmem:[#allocation3 + $0xd] ss:$2 sm:$0xf]  ;;  %v1451_v23 = vld [vmem:[#allocation3 + $0x2a] ss:$2 sm:$0xf] }
 0x215   : > { %1426 = vrot.lane.b32.xlu1 %v1424_v12, %s2563_s6  ;;  %v1494_v24 = vld [vmem:[#allocation3 + $0x29] ss:$2 sm:$0xf]  ;;  %v1500_v26 = vld [vmem:[#allocation3 + $0x2a] ss:$2 sm:$0xf] }
 0x216   : > { %1379 = vrot.lane.b32.xlu0 %v1377_v13, %s2570_s23  ;;  %v1458_v25 = vld [vmem:[#allocation3 + $0x2b] ss:$2 sm:$0xf]  ;;  %v1394_v27 = vld [vmem:[#allocation3 + $0x15] ss:$2 sm:$0xf]  ;;  %2468 = vmatpush3.bf16.msra.mxu1 %v2523_v16 }
 0x217   : > { %v1506_v28 = vld [vmem:[#allocation3 + $0x2b] ss:$2 sm:$0xf]  ;;  %v1400_v29 = vld [vmem:[#allocation3 + $0x16] ss:$2 sm:$0xf]  ;;  %2469 = vmatprep.subr.bf16.mxu1 %v2567_v43 }
 0x218   : > { %v1406_v30 = vld [vmem:[#allocation3 + $0x17] ss:$2 sm:$0xf]  ;;  %v1329_v31 = vld [vmem:[#allocation3 + $0x14] ss:$2 sm:$0xf] }
 0x219   : > { %1432 = vrot.lane.b32.xlu1 %v1430_v14, %s2565_s8  ;;  %v1337_v32 = vld [vmem:[#allocation3 + $0x15] ss:$2 sm:$0xf]  ;;  %v1345_v33 = vld [vmem:[#allocation3 + $0x16] ss:$2 sm:$0xf] }
 0x21a   : > { %1299 = vrot.lane.b32.xlu0 %v1297_v15, %s2559_s28  ;;  %v1353_v34 = vld [vmem:[#allocation3 + $0x17] ss:$2 sm:$0xf]  ;;  %v1385_v63 = vld [vmem:[#allocation3 + $0x21] ss:$2 sm:$0xf] }
 0x21d   : > { %1439 = vrot.lane.b32.xlu1 %v1437_v19, %s2571_s25 }
 0x21e   : > { %1307 = vrot.lane.b32.xlu0 %v1305_v18, %s2561_s30 }
 0x221   : > { %1446 = vrot.lane.b32.xlu1 %v1444_v21, %s2572_s27  ;;  %v2524_v21 = vld [vmem:[%s3349_s2 + $0x18] sm:$0xff]  }
 0x222   : > { %1315 = vrot.lane.b32.xlu0 %v1313_v20, %s2563_s6  ;;  %2470 = vmatpush3.bf16.msra.mxu1 %v2524_v21 }
 0x223   : > { %2471 = vmatprep.subr.bf16.mxu1 %v2567_v43 }
 0x225   : > { %1453 = vrot.lane.b32.xlu1 %v1451_v23, %s2573_s29  ;;  %v1679_v23 = vld [vmem:[#allocation3 + $0x5c] ss:$2 sm:$0xf] }
 0x226   : > { %1323 = vrot.lane.b32.xlu0 %v1321_v22, %s2565_s8 }
 0x229   : > { %1460 = vrot.lane.b32.xlu1 %v1458_v25, %s2574_s5 }
 0x22a   : > { %1496 = vrot.lane.b32.xlu0 %v1494_v24, %s2552_s21  ;;  %v2525_v24 = vld [vmem:[%s3349_s2 + $0x10] sm:$0xff]  }
 0x22b   : > { %2472 = vmatpush3.bf16.msra.mxu1 %v2525_v24 }
 0x22c   : > { %2473 = vmatprep.subr.bf16.mxu1 %v2567_v43 }
 0x22d   : > { %1396 = vrot.lane.b32.xlu1 %v1394_v27, %s2552_s21  ;;  %v2526_v27 = vld [vmem:[%s3349_s2 + $0x8] sm:$0xff]  }
 0x22e   : > { %1502 = vrot.lane.b32.xlu0 %v1500_v26, %s2555_s24 }
 0x22f   : > { %2474 = vmatpush3.bf16.msra.mxu1 %v2526_v27 }
 0x230   : > { %2475 = vmatprep.subr.bf16.mxu1 %v2567_v43 }
 0x231   : > { %1402 = vrot.lane.b32.xlu1 %v1400_v29, %s2555_s24 }
 0x232   : > { %1508 = vrot.lane.b32.xlu0 %v1506_v28, %s2557_s26 }
 0x235   : > { %1408 = vrot.lane.b32.xlu1 %v1406_v30, %s2557_s26 }
 0x236   : > { %1331 = vrot.lane.b32.xlu0 %v1329_v31, %s2571_s25  ;;  %v1686_v31 = vld [vmem:[#allocation3 + $0x5d] ss:$2 sm:$0xf] }
 0x23a   : > { %1339 = vrot.lane.b32.xlu0 %v1337_v32, %s2572_s27  ;;  %v2527_v32 = vld [vmem:[%s3349_s2] sm:$0xff]  }
 0x23b   : > { %2476 = vmatpush3.bf16.msra.mxu1 %v2527_v32 }
 0x23e   : > { %1347 = vrot.lane.b32.xlu0 %v1345_v33, %s2573_s29 }
 0x242   : > { %1355 = vrot.lane.b32.xlu0 %v1353_v34, %s2574_s5 }
 0x245   : > { %v2459_v35 = vpop.f32.mrf.mxu0 }
 0x246   : > { %vm1229_vm11 = vcmp.ge.f32.partialorder %v2459_v35, 0.0  ;;  %v1237_v36 = vmul.f32 0.2, %v2459_v35 }
 0x247   : > { %v1208_v37 = vpop.f32.mrf.mxu0 }
 0x248   : > { %v1245_v38 = vsel %vm1229_vm11, %v2459_v35, %v1237_v36  ;;  %vm1227_vm12 = vcmp.ge.f32.partialorder %v1208_v37, 0.0  ;;  %v1235_v39 = vmul.f32 0.2, %v1208_v37  ;;  %vm1366_vm11 = vcmask 847616  }
 0x249   : > { %1268 = vst.msk [vmem:[#allocation3 + $0x47] sm:$0xff] %vm1247_vm15, %v1245_v38  ;;  %v2460_v40 = vpop.f32.mrf.mxu0 }
 0x24a   : > { %v1243_v41 = vsel %vm1227_vm12, %v1208_v37, %v1235_v39  ;;  %vm1230_vm13 = vcmp.ge.f32.partialorder %v2460_v40, 0.0  ;;  %v1238_v42 = vmul.f32 0.2, %v2460_v40  ;;  %vm1374_vm12 = vcmask 913216  }
 0x24b   : > { %1266 = vst.msk [vmem:[#allocation3 + $0x33] sm:$0xff] %vm1247_vm15, %v1243_v41  ;;  %v1211_v44 = vpop.f32.mrf.mxu0 }
 0x24c   : > { %v1246_v45 = vsel %vm1230_vm13, %v2460_v40, %v1238_v42  ;;  %vm1228_vm14 = vcmp.ge.f32.partialorder %v1211_v44, 0.0  ;;  %v1236_v46 = vmul.f32 0.2, %v1211_v44  ;;  %vm1382_vm13 = vcmask 978816  }
 0x24d   : > { %1269 = vst.msk [vmem:[#allocation3 + $0x51] sm:$0xff] %vm1247_vm15, %v1246_v45 }
 0x24e   : > { %v1244_v47 = vsel %vm1228_vm14, %v1211_v44, %v1236_v46  ;;  %vm1390_vm14 = vcmask 1044416  }
 0x24f   : > { %1267 = vst.msk [vmem:[#allocation3 + $0x3d] sm:$0xff] %vm1247_vm15, %v1244_v47  ;;  %vm2576_vm15 = vmmov 0  }
 0x250   : > { %v1612_v48 = vld [vmem:[#allocation3 + $0x46] ss:$2 sm:$0xf]  ;;  %v1618_v50 = vld [vmem:[#allocation3 + $0x47] ss:$2 sm:$0xf]  ;;  %2477 = vmatprep.mubr.msk.bf16.mxu1 %vm2576_vm15, %v2567_v43 }
 0x251   : > { %v1565_v49 = vld [vmem:[#allocation3 + $0x46] ss:$2 sm:$0xf]  ;;  %1614 = vrot.lane.b32.xlu1 %v1612_v48, %s2559_s28  ;;  %v1572_v51 = vld [vmem:[#allocation3 + $0x47] ss:$2 sm:$0xf] }
 0x252   : > { %1567 = vrot.lane.b32.xlu0 %v1565_v49, %s2568_s20  ;;  %v1624_v52 = vld [vmem:[#allocation3 + $0x48] ss:$2 sm:$0xf]  ;;  %v1630_v54 = vld [vmem:[#allocation3 + $0x49] ss:$2 sm:$0xf] }
 0x253   : > { %v1579_v53 = vld [vmem:[#allocation3 + $0x48] ss:$2 sm:$0xf]  ;;  %v1512_v55 = vld [vmem:[#allocation3 + $0x32] ss:$2 sm:$0xf] }
 0x254   : > { %v1518_v57 = vld [vmem:[#allocation3 + $0x33] ss:$2 sm:$0xf]  ;;  %v1465_v58 = vld [vmem:[#allocation3 + $0x32] ss:$2 sm:$0xf] }
 0x255   : > { %1620 = vrot.lane.b32.xlu1 %v1618_v50, %s2561_s30  ;;  %v1524_v59 = vld [vmem:[#allocation3 + $0x34] ss:$2 sm:$0xf]  ;;  %v1472_v60 = vld [vmem:[#allocation3 + $0x33] ss:$2 sm:$0xf] }
 0x256   : > { %1574 = vrot.lane.b32.xlu0 %v1572_v51, %s2569_s22  ;;  %v1592_v56 = vld [vmem:[#allocation3 + $0x3c] ss:$2 sm:$0xf]  ;;  %v1530_v61 = vld [vmem:[#allocation3 + $0x35] ss:$2 sm:$0xf] }
 0x257   : > { %1593 = vst.msk [vmem:[#allocation6 + $0xc] sm:$0xf] %vm1260_vm3, %v1592_v56  ;;  %v1479_v62 = vld [vmem:[#allocation3 + $0x34] ss:$2 sm:$0xf]  ;;  %vm1326_vm3 = vcmask 519616  }
 0x258   : > { %v1637_v0 = vld [vmem:[#allocation3 + $0x50] ss:$2 sm:$0xf]  ;;  %v1644_v2 = vld [vmem:[#allocation3 + $0x51] ss:$2 sm:$0xf] }
 0x259   : > { %1626 = vrot.lane.b32.xlu1 %v1624_v52, %s2563_s6  ;;  %v1537_v3 = vld [vmem:[#allocation3 + $0x3c] ss:$2 sm:$0xf]  ;;  %v1651_v6 = vld [vmem:[#allocation3 + $0x52] ss:$2 sm:$0xf] }
 0x25a   : > { %1581 = vrot.lane.b32.xlu0 %v1579_v53, %s2570_s23  ;;  %v1544_v7 = vld [vmem:[#allocation3 + $0x3d] ss:$2 sm:$0xf]  ;;  %v1658_v9 = vld [vmem:[#allocation3 + $0x53] ss:$2 sm:$0xf] }
 0x25b   : > { %v1551_v10 = vld [vmem:[#allocation3 + $0x3e] ss:$2 sm:$0xf]  ;;  %v1594_v12 = vld [vmem:[#allocation3 + $0x3d] ss:$2 sm:$0xf] }
 0x25c   : > { %v1558_v13 = vld [vmem:[#allocation3 + $0x3f] ss:$2 sm:$0xf]  ;;  %v1600_v17 = vld [vmem:[#allocation3 + $0x3e] ss:$2 sm:$0xf] }
 0x25d   : > { %1632 = vrot.lane.b32.xlu1 %v1630_v54, %s2565_s8  ;;  %v1586_v18 = vld [vmem:[#allocation3 + $0x49] ss:$2 sm:$0xf]  ;;  %v1606_v22 = vld [vmem:[#allocation3 + $0x3f] ss:$2 sm:$0xf] }
 0x25e   : > { %1514 = vrot.lane.b32.xlu0 %v1512_v55, %s2559_s28  ;;  %v1486_v30 = vld [vmem:[#allocation3 + $0x35] ss:$2 sm:$0xf] }
 0x261   : > { %1467 = vrot.lane.b32.xlu1 %v1465_v58, %s2568_s20 }
 0x262   : > { %1520 = vrot.lane.b32.xlu0 %v1518_v57, %s2561_s30  ;;  %s2575_s30 = smov 120  }
 0x265   : > { %1474 = vrot.lane.b32.xlu1 %v1472_v60, %s2569_s22 }
 0x266   : > { %1526 = vrot.lane.b32.xlu0 %v1524_v59, %s2563_s6 }
 0x269   : > { %1481 = vrot.lane.b32.xlu1 %v1479_v62, %s2570_s23 }
 0x26a   : > { %1532 = vrot.lane.b32.xlu0 %v1530_v61, %s2565_s8 }
 0x26d   : > { %1639 = vrot.lane.b32.xlu1 %v1637_v0, %s2571_s25 }
 0x26e   : > { %1387 = vrot.lane.b32.xlu0 %v1385_v63, %s2575_s30 }
 0x271   : > { %1646 = vrot.lane.b32.xlu1 %v1644_v2, %s2572_s27 }
 0x272   : > { %1539 = vrot.lane.b32.xlu0 %v1537_v3, %s2571_s25 }
 0x275   : > { %1653 = vrot.lane.b32.xlu1 %v1651_v6, %s2573_s29 }
 0x276   : > { %1546 = vrot.lane.b32.xlu0 %v1544_v7, %s2572_s27 }
 0x279   : > { %1660 = vrot.lane.b32.xlu1 %v1658_v9, %s2574_s5 }
 0x27a   : > { %1553 = vrot.lane.b32.xlu0 %v1551_v10, %s2573_s29 }
 0x27d   : > { %1596 = vrot.lane.b32.xlu1 %v1594_v12, %s2552_s21 }
 0x27e   : > { %1560 = vrot.lane.b32.xlu0 %v1558_v13, %s2574_s5 }
 0x27f   : > { %v3076_v14 = vpop.permute.xlu1 %1414 }
 0x280   : > { %v3078_v15 = vpop.permute.xlu0 %1363 }
 0x281   : > { %1602 = vrot.lane.b32.xlu1 %v1600_v17, %s2555_s24 }
 0x282   : > { %1588 = vrot.lane.b32.xlu0 %v1586_v18, %s2575_s30 }
 0x283   : > { %v1421_v19 = vpop.permute.xlu1 %1420 }
 0x284   : > { %v3085_v20 = vpop.permute.xlu0 %1371 }
 0x285   : > { %1608 = vrot.lane.b32.xlu1 %v1606_v22, %s2557_s26  ;;  %v1813_v22 = vlaneseq }
 0x287   : > { %v1427_v25 = vpop.permute.xlu1 %1426 }
 0x288   : > { %v3096_v26 = vpop.permute.xlu0 %1379 }
 0x289   : > { %1681 = vrot.lane.b32.xlu1 %v1679_v23, %s2570_s23  ;;  %v2577_v23 = vmov 1966171168  }
 0x28a   : > { %v1828_v24 = vunpack.c.l.s4 %v2577_v23 }
 0x28b   : > { %v1433_v28 = vpop.permute.xlu1 %1432 }
 0x28c   : > { %v1300_v29 = vpop.permute.xlu0 %1299  ;;  %v1829_v27 = vunpack.c.0.s8 %v1828_v24 }
 0x28d   : > { %1303 = vst.msk [vmem:[#allocation6] sm:$0xf] %vm1302_vm0, %v1300_v29  ;;  %1488 = vrot.lane.b32.xlu1 %v1486_v30, %s2575_s30 }
 0x28f   : > { %v1440_v34 = vpop.permute.xlu1 %1439 }
 0x290   : > { %v1308_v33 = vpop.permute.xlu0 %1307 }
 0x291   : > { %1311 = vst.msk [vmem:[#allocation6] sm:$0xf] %vm1310_vm1, %v1308_v33  ;;  %1688 = vrot.lane.b32.xlu1 %v1686_v31, %s2575_s30 }
 0x293   : > { %v1447_v36 = vpop.permute.xlu1 %1446 }
 0x294   : > { %v1316_v35 = vpop.permute.xlu0 %1315 }
 0x295   : > { %1319 = vst.msk [vmem:[#allocation6] sm:$0xf] %vm1318_vm2, %v1316_v35  ;;  %v2529_v35 = vld [vmem:[%s3350_s3 + $0x38] sm:$0xff]  }
 0x297   : > { %v1454_v38 = vpop.permute.xlu1 %1453 }
 0x298   : > { %v1324_v37 = vpop.permute.xlu0 %1323 }
 0x299   : > { %1327 = vst.msk [vmem:[#allocation6] sm:$0xf] %vm1326_vm3, %v1324_v37 }
 0x29b   : > { %v1461_v40 = vpop.permute.xlu1 %1460 }
 0x29c   : > { %v1497_v39 = vpop.permute.xlu0 %1496 }
 0x29d   : > { %1499 = vst.msk [vmem:[#allocation6 + $0x8] sm:$0xf] %vm1278_vm4, %v1497_v39 }
 0x29f   : > { %v1397_v41 = vpop.permute.xlu1 %1396 }
 0x2a0   : > { %v1503_v43 = vpop.permute.xlu0 %1502  ;;  %1399 = vst.msk [vmem:[#allocation6 + $0x4] sm:$0xf] %vm1278_vm4, %v1397_v41 }
 0x2a1   : > { %1505 = vst.msk [vmem:[#allocation6 + $0x8] sm:$0xf] %vm1286_vm5, %v1503_v43  ;;  %v2531_v43 = vld [vmem:[%s3350_s3 + $0x30] sm:$0xff]  }
 0x2a3   : > { %v1403_v44 = vpop.permute.xlu1 %1402 }
 0x2a4   : > { %v1509_v42 = vpop.permute.xlu0 %1508  ;;  %1405 = vst.msk [vmem:[#allocation6 + $0x4] sm:$0xf] %vm1286_vm5, %v1403_v44 }
 0x2a5   : > { %1511 = vst.msk [vmem:[#allocation6 + $0x8] sm:$0xf] %vm1294_vm6, %v1509_v42 }
 0x2a7   : > { %v1409_v45 = vpop.permute.xlu1 %1408 }
 0x2a8   : > { %v1332_v46 = vpop.permute.xlu0 %1331  ;;  %1411 = vst.msk [vmem:[#allocation6 + $0x4] sm:$0xf] %vm1294_vm6, %v1409_v45 }
 0x2a9   : > { %1335 = vst.msk [vmem:[#allocation6] sm:$0xf] %vm1334_vm7, %v1332_v46 }
 0x2aa   : > { %1417 = vst.msk [vmem:[#allocation6 + $0x4] sm:$0xf] %vm1302_vm0, %v3076_v14 }
 0x2ab   : > { %1423 = vst.msk [vmem:[#allocation6 + $0x4] sm:$0xf] %vm1310_vm1, %v1421_v19 }
 0x2ac   : > { %1429 = vst.msk [vmem:[#allocation6 + $0x4] sm:$0xf] %vm1318_vm2, %v1427_v25  ;;  %v1340_v47 = vpop.permute.xlu0 %1339 }
 0x2ad   : > { %1435 = vst.msk [vmem:[#allocation6 + $0x4] sm:$0xf] %vm1326_vm3, %v1433_v28  ;;  %v3174_v28 = vshrl.u32 %v1813_v22, 7 }
 0x2ae   : > { %1343 = vst.msk [vmem:[#allocation6] sm:$0xf] %vm1342_vm8, %v1340_v47 }
 0x2af   : > { %1442 = vst.msk [vmem:[#allocation6 + $0x4] sm:$0xf] %vm1334_vm7, %v1440_v34  ;;  %v3177_v32 = vsub.s32 %v1829_v27, %v3174_v28  ;;  %v2528_v34 = vld [vmem:[%s3350_s3 + $0x78] sm:$0xff]  }
 0x2b0   : > { %1449 = vst.msk [vmem:[#allocation6 + $0x4] sm:$0xf] %vm1342_vm8, %v1447_v36  ;;  %v1348_v48 = vpop.permute.xlu0 %1347  ;;  %2423 = vmatprep.subr.bf16.mxu0 %v2528_v34 }
 0x2b1   : > { %1456 = vst.msk [vmem:[#allocation6 + $0x4] sm:$0xf] %vm1350_vm9, %v1454_v38  ;;  %1351 = vst.msk [vmem:[#allocation6] sm:$0xf] %vm1350_vm9, %v1348_v48  ;;  %2424 = vmatpush3.bf16.msra.mxu0 %v2529_v35  ;;  %v2532_v48 = vld [vmem:[%s3350_s3 + $0x68] sm:$0xff]  }
 0x2b2   : > { %1463 = vst.msk [vmem:[#allocation6 + $0x4] sm:$0xf] %vm1358_vm10, %v1461_v40  ;;  %v2530_v40 = vld [vmem:[%s3350_s3 + $0x70] sm:$0xff]  }
 0x2b3   : > { %2425 = vmatprep.subr.bf16.mxu0 %v2530_v40 }
 0x2b4   : > { %v1356_v49 = vpop.permute.xlu0 %1355 }
 0x2b5   : > { %1359 = vst.msk [vmem:[#allocation6] sm:$0xf] %vm1358_vm10, %v1356_v49  ;;  %2426 = vmatpush3.bf16.msra.mxu0 %v2531_v43  ;;  %v2533_v49 = vld [vmem:[%s3350_s3 + $0x28] sm:$0xff]  }
 0x2b6   : > { %1367 = vst.msk [vmem:[#allocation6] sm:$0xf] %vm1366_vm11, %v3078_v15  ;;  %2427 = vmatprep.subr.bf16.mxu0 %v2532_v48 }
 0x2b7   : > { %1375 = vst.msk [vmem:[#allocation6] sm:$0xf] %vm1374_vm12, %v3085_v20 }
 0x2b8   : > { %1383 = vst.msk [vmem:[#allocation6] sm:$0xf] %vm1382_vm13, %v3096_v26 }
 0x2b9   : > { %2428 = vmatpush3.bf16.msra.mxu0 %v2533_v49 }
 0x2c3   : > { %v1615_v50 = vpop.permute.xlu1 %1614 }
 0x2c4   : > { %v1568_v51 = vpop.permute.xlu0 %1567 }
 0x2c7   : > { %v1621_v52 = vpop.permute.xlu1 %1620 }
 0x2c8   : > { %v1575_v53 = vpop.permute.xlu0 %1574 }
 0x2cb   : > { %v1627_v54 = vpop.permute.xlu1 %1626 }
 0x2cc   : > { %v1582_v55 = vpop.permute.xlu0 %1581 }
 0x2cf   : > { %v1633_v56 = vpop.permute.xlu1 %1632 }
 0x2d0   : > { %v1515_v57 = vpop.permute.xlu0 %1514 }
 0x2d1   : > { %1517 = vst.msk [vmem:[#allocation6 + $0x8] sm:$0xf] %vm1302_vm0, %v1515_v57 }
 0x2d3   : > { %v1468_v59 = vpop.permute.xlu1 %1467 }
 0x2d4   : > { %v1521_v58 = vpop.permute.xlu0 %1520  ;;  %1470 = vst.msk [vmem:[#allocation6 + $0x4] sm:$0xf] %vm1366_vm11, %v1468_v59 }
 0x2d5   : > { %1523 = vst.msk [vmem:[#allocation6 + $0x8] sm:$0xf] %vm1310_vm1, %v1521_v58 }
 0x2d7   : > { %v1475_v61 = vpop.permute.xlu1 %1474 }
 0x2d8   : > { %v1527_v60 = vpop.permute.xlu0 %1526  ;;  %1477 = vst.msk [vmem:[#allocation6 + $0x4] sm:$0xf] %vm1374_vm12, %v1475_v61  ;;  %v2537_v61 = vld [vmem:[%s3350_s3 + $0x18] sm:$0xff]  }
 0x2d9   : > { %1529 = vst.msk [vmem:[#allocation6 + $0x8] sm:$0xf] %vm1318_vm2, %v1527_v60  ;;  %v2536_v60 = vld [vmem:[%s3350_s3 + $0x58] sm:$0xff]  }
 0x2db   : > { %v1482_v63 = vpop.permute.xlu1 %1481 }
 0x2dc   : > { %v1533_v62 = vpop.permute.xlu0 %1532  ;;  %1484 = vst.msk [vmem:[#allocation6 + $0x4] sm:$0xf] %vm1382_vm13, %v1482_v63 }
 0x2dd   : > { %1535 = vst.msk [vmem:[#allocation6 + $0x8] sm:$0xf] %vm1326_vm3, %v1533_v62 }
 0x2df   : > { %v1640_v1 = vpop.permute.xlu1 %1639 }
 0x2e0   : > { %v1388_v0 = vpop.permute.xlu0 %1387 }
 0x2e1   : > { %1391 = vst.msk [vmem:[#allocation6] sm:$0xf] %vm1390_vm14, %v1388_v0 }
 0x2e3   : > { %v1647_v2 = vpop.permute.xlu1 %1646 }
 0x2e4   : > { %v1540_v3 = vpop.permute.xlu0 %1539 }
 0x2e5   : > { %1542 = vst.msk [vmem:[#allocation6 + $0x8] sm:$0xf] %vm1334_vm7, %v1540_v3  ;;  %v2539_v3 = vld [vmem:[%s3350_s3 + $0x10] sm:$0xff]  }
 0x2e7   : > { %v1654_v5 = vpop.permute.xlu1 %1653 }
 0x2e8   : > { %v1547_v6 = vpop.permute.xlu0 %1546 }
 0x2e9   : > { %1549 = vst.msk [vmem:[#allocation6 + $0x8] sm:$0xf] %vm1342_vm8, %v1547_v6 }
 0x2eb   : > { %v1661_v7 = vpop.permute.xlu1 %1660 }
 0x2ec   : > { %v1554_v8 = vpop.permute.xlu0 %1553 }
 0x2ed   : > { %1556 = vst.msk [vmem:[#allocation6 + $0x8] sm:$0xf] %vm1350_vm9, %v1554_v8 }
 0x2ef   : > { %v1597_v9 = vpop.permute.xlu1 %1596 }
 0x2f0   : > { %v1561_v10 = vpop.permute.xlu0 %1560  ;;  %1599 = vst.msk [vmem:[#allocation6 + $0xc] sm:$0xf] %vm1278_vm4, %v1597_v9  ;;  %v2541_v9 = vld [vmem:[%s3350_s3 + $0x8] sm:$0xff]  }
 0x2f1   : > { %1563 = vst.msk [vmem:[#allocation6 + $0x8] sm:$0xf] %vm1358_vm10, %v1561_v10 }
 0x2f2   : > { %1570 = vst.msk [vmem:[#allocation6 + $0x8] sm:$0xf] %vm1366_vm11, %v1568_v51 }
 0x2f3   : > { %1577 = vst.msk [vmem:[#allocation6 + $0x8] sm:$0xf] %vm1374_vm12, %v1575_v53  ;;  %v1603_v12 = vpop.permute.xlu1 %1602 }
 0x2f4   : > { %1584 = vst.msk [vmem:[#allocation6 + $0x8] sm:$0xf] %vm1382_vm13, %v1582_v55  ;;  %v1589_v13 = vpop.permute.xlu0 %1588  ;;  %v2535_v55 = vld [vmem:[%s3350_s3 + $0x20] sm:$0xff]  }
 0x2f5   : > { %1605 = vst.msk [vmem:[#allocation6 + $0xc] sm:$0xf] %vm1286_vm5, %v1603_v12  ;;  %vm1806_vm5 = vcmask 125952   ;;  %v2542_v12 = vld [vmem:[%s3350_s3 + $0x40] sm:$0xff]  }
 0x2f6   : > { %1591 = vst.msk [vmem:[#allocation6 + $0x8] sm:$0xf] %vm1390_vm14, %v1589_v13 }
 0x2f7   : > { %v1609_v14 = vpop.permute.xlu1 %1608 }
 0x2f8   : > { %1611 = vst.msk [vmem:[#allocation6 + $0xc] sm:$0xf] %vm1294_vm6, %v1609_v14  ;;  %vm1808_vm6 = vcmask 130052  }
 0x2f9   : > { %1617 = vst.msk [vmem:[#allocation6 + $0xc] sm:$0xf] %vm1302_vm0, %v1615_v50  ;;  %vm3180_vm0 = vcmp.lt.s32.totalorder %v1813_v22, 16 }
 0x2fa   : > { %1623 = vst.msk [vmem:[#allocation6 + $0xc] sm:$0xf] %vm1310_vm1, %v1621_v52  ;;  %vm1837_vm1 = vcmp.ge.s32.totalorder %v1813_v22, 16 }
 0x2fb   : > { %1629 = vst.msk [vmem:[#allocation6 + $0xc] sm:$0xf] %vm1318_vm2, %v1627_v54  ;;  %v1682_v15 = vpop.permute.xlu1 %1681  ;;  %v2534_v54 = vld [vmem:[%s3350_s3 + $0x60] sm:$0xff]   ;;  %vm1838_vm2 = vcmp.lt.s32.totalorder %v1813_v22, 32 }
 0x2fc   : > { %1635 = vst.msk [vmem:[#allocation6 + $0xc] sm:$0xf] %vm1326_vm3, %v1633_v56  ;;  %2429 = vmatprep.subr.bf16.mxu0 %v2534_v54  ;;  %vm1839_vm3 = vmand %vm1837_vm1, %vm1838_vm2  ;;  %vm3328_vm1 = vcmp.lt.s32.totalorder %v1813_v22, 112 }
 0x2fd   : > { %1642 = vst.msk [vmem:[#allocation6 + $0xc] sm:$0xf] %vm1334_vm7, %v1640_v1  ;;  %2430 = vmatpush3.bf16.msra.mxu0 %v2535_v55  ;;  %vm3267_vm7 = vcmp.ge.s32.totalorder %v1813_v22, 32 }
 0x2fe   : > { %1649 = vst.msk [vmem:[#allocation6 + $0xc] sm:$0xf] %vm1342_vm8, %v1647_v2  ;;  %2431 = vmatprep.subr.bf16.mxu0 %v2536_v60  ;;  %v2538_v2 = vld [vmem:[%s3350_s3 + $0x50] sm:$0xff]   ;;  %vm3272_vm8 = vcmp.lt.s32.totalorder %v1813_v22, 48 }
 0x2ff   : > { %1656 = vst.msk [vmem:[#allocation6 + $0xc] sm:$0xf] %vm1350_vm9, %v1654_v5  ;;  %v1489_v16 = vpop.permute.xlu1 %1488  ;;  %v2540_v5 = vld [vmem:[%s3350_s3 + $0x48] sm:$0xff]   ;;  %vm1862_vm9 = vmand %vm3267_vm7, %vm3272_vm8  ;;  %vm1976_vm7 = vcmp.lt.s32.totalorder %v1813_v22, 128 }
 0x300   : > { %1663 = vst.msk [vmem:[#allocation6 + $0xc] sm:$0xf] %vm1358_vm10, %v1661_v7  ;;  %vm3281_vm10 = vcmp.ge.s32.totalorder %v1813_v22, 48 }
 0x301   : > { %1491 = vst.msk [vmem:[#allocation6 + $0x4] sm:$0xf] %vm1390_vm14, %v1489_v16  ;;  %2432 = vmatpush3.bf16.msra.mxu0 %v2537_v61 }
 0x302   : > { %1670 = vst.msk [vmem:[#allocation6 + $0xc] sm:$0xf] %vm1366_vm11, %v3058_v4  ;;  %2433 = vmatprep.subr.bf16.mxu0 %v2538_v2  ;;  %vm3286_vm11 = vcmp.lt.s32.totalorder %v1813_v22, 64 }
 0x303   : > { %1677 = vst.msk [vmem:[#allocation6 + $0xc] sm:$0xf] %vm1374_vm12, %v3071_v11  ;;  %v1689_v17 = vpop.permute.xlu1 %1688  ;;  %vm1885_vm12 = vmand %vm3281_vm10, %vm3286_vm11 }
 0x304   : > { %1684 = vst.msk [vmem:[#allocation6 + $0xc] sm:$0xf] %vm1382_vm13, %v1682_v15  ;;  %v2543_v15 = vld [vmem:[%s3350_s3] sm:$0xff]   ;;  %vm3295_vm13 = vcmp.ge.s32.totalorder %v1813_v22, 64 }
 0x305   : > { %1691 = vst.msk [vmem:[#allocation6 + $0xc] sm:$0xf] %vm1390_vm14, %v1689_v17  ;;  %2434 = vmatpush3.bf16.msra.mxu0 %v2539_v3  ;;  %vm3300_vm14 = vcmp.lt.s32.totalorder %v1813_v22, 80 }
 0x306   : > { %2435 = vmatprep.subr.bf16.mxu0 %v2540_v5 }
 0x308   : > { %v1692_v18 = vld [vmem:[#allocation6] sm:$0xff] }
 0x309   : > { %2436 = vmatpush3.bf16.msra.mxu0 %v2541_v9 }
 0x30a   : > { %2437 = vmatprep.subr.bf16.mxu0 %v2542_v12 }
 0x30c   : > { %v1693_v19 = vld [vmem:[#allocation6 + $0x8] sm:$0xff] }
 0x30d   : > { %v1694_v20 = vpack.c.bf16 %v1693_v19, %v1692_v18  ;;  %2438 = vmatpush3.bf16.msra.mxu0 %v2543_v15 }
 0x30f   : > { %2478 = vmatmul.mubr.bf16.vlgmr.msra.gmra.mxu1 %v1694_v20 }
 0x3cf   : > { %v1793_v21 = vpop.f32.mrf.mxu1 }
 0x3d0   : > { %vm1800_vm4 = vcmp.ge.f32.partialorder %v1793_v21, 0.0  ;;  %v1802_v25 = vmul.f32 0.2, %v1793_v21 }
 0x3d1   : > { %v2479_v4 = vpop.f32.mrf.mxu1 }
 0x3d2   : > { %v1804_v26 = vsel %vm1800_vm4, %v1793_v21, %v1802_v25  ;;  %vm1908_vm4 = vmand %vm3295_vm13, %vm3300_vm14 }
 0x3d3   : > { %1807 = vst.msk [vmem:[#allocation4] sm:$0xf] %vm1806_vm5, %v1804_v26  ;;  %v1796_v11 = vpop.f32.mrf.mxu1 }
 0x3d4   : > { %1809 = vst.msk [vmem:[#allocation4] sm:$0xf0] %vm1808_vm6, %v1804_v26  ;;  %vm1801_vm15 = vcmp.ge.f32.partialorder %v1796_v11, 0.0  ;;  %v1803_v29 = vmul.f32 0.2, %v1796_v11 }
 0x3d5   : > { %v2480_v30 = vpop.f32.mrf.mxu1 }
 0x3d6   : > { %v1805_v31 = vsel %vm1801_vm15, %v1796_v11, %v1803_v29 }
 0x3d7   : > { %1810 = vst.msk [vmem:[#allocation4 + $0x8] sm:$0xf] %vm1806_vm5, %v1805_v31  ;;  %vm3309_vm5 = vcmp.ge.s32.totalorder %v1813_v22, 80 }
 0x3d8   : > { %1811 = vst.msk [vmem:[#allocation4 + $0x8] sm:$0xf0] %vm1808_vm6, %v1805_v31  ;;  %vm3314_vm6 = vcmp.lt.s32.totalorder %v1813_v22, 96 }
 0x3d9   : > { %vm1931_vm15 = vmand %vm3309_vm5, %vm3314_vm6 }
 0x3da   : > { %v2374_v36 = vld.sshfl [vmem:[#allocation4 + $0x1] sm:$0x1 pattern:$0x75316420]  ;;  %v1812_v37 = vld [vmem:[#allocation4] sm:$0x1] }
 0x3db   : > { %v1833_v38 = vrot.slane %v2374_v36, %v3177_v32  ;;  %1817 = vst.msk [vmem:[#allocation7] sm:$0x1] %vm3180_vm0, %v1812_v37  ;;  %v2375_v39 = vld.sshfl [vmem:[#allocation4 + $0x2] sm:$0x1 pattern:$0x75316420] }
 0x3dc   : > { %v1856_v44 = vrot.slane %v2375_v39, %v3177_v32  ;;  %v2376_v46 = vld.sshfl [vmem:[#allocation4 + $0x3] sm:$0x1 pattern:$0x75316420] }
 0x3dd   : > { %1834 = vrot.lane.b32.xlu0 %v1833_v38, %s2555_s24  ;;  %v1879_v50 = vrot.slane %v2376_v46, %v3177_v32  ;;  %v2377_v52 = vld.sshfl [vmem:[#allocation4 + $0x4] sm:$0x1 pattern:$0x75316420] }
 0x3de   : > { %v2381_v41 = vld.sshfl [vmem:[#allocation4 + $0x9] sm:$0x1 pattern:$0x75316420]  ;;  %v1979_v42 = vld [vmem:[#allocation4 + $0x8] sm:$0x1]  ;;  %v1902_v56 = vrot.slane %v2377_v52, %v3177_v32 }
 0x3df   : > { %v1996_v45 = vrot.slane %v2381_v41, %v3177_v32  ;;  %1980 = vst.msk [vmem:[#allocation7 + $0x1] sm:$0x1] %vm3180_vm0, %v1979_v42  ;;  %v2382_v47 = vld.sshfl [vmem:[#allocation4 + $0xa] sm:$0x1 pattern:$0x75316420] }
 0x3e0   : > { %v2016_v51 = vrot.slane %v2382_v47, %v3177_v32  ;;  %v2383_v53 = vld.sshfl [vmem:[#allocation4 + $0xb] sm:$0x1 pattern:$0x75316420]  ;;  %vm3323_vm0 = vcmp.ge.s32.totalorder %v1813_v22, 96  ;;  %v2125_v41 = vsub.s32 0, %v3174_v28 }
 0x3e1   : > { %1857 = vrot.lane.b32.xlu0 %v1856_v44, %s2559_s28  ;;  %1997 = vrot.lane.b32.xlu1 %v1996_v45, %s2555_s24  ;;  %v2036_v57 = vrot.slane %v2383_v53, %v3177_v32  ;;  %v2378_v58 = vld.sshfl [vmem:[#allocation4 + $0x5] sm:$0x1 pattern:$0x75316420]  ;;  %vm1954_vm2 = vmand %vm3323_vm0, %vm3328_vm1  ;;  %v2129_v42 = vsub.s32 1, %v3174_v28 }
 0x3e2   : > { %v2384_v59 = vld.sshfl [vmem:[#allocation4 + $0xc] sm:$0x1 pattern:$0x75316420]  ;;  %v1925_v63 = vrot.slane %v2378_v58, %v3177_v32 }
 0x3e3   : > { %v2379_v62 = vld.sshfl [vmem:[#allocation4 + $0x6] sm:$0x1 pattern:$0x75316420]  ;;  %v2056_v0 = vrot.slane %v2384_v59, %v3177_v32 }
 0x3e4   : > { %v2385_v1 = vld.sshfl [vmem:[#allocation4 + $0xd] sm:$0x1 pattern:$0x75316420]  ;;  %v1948_v6 = vrot.slane %v2379_v62, %v3177_v32 }
 0x3e5   : > { %1880 = vrot.lane.b32.xlu0 %v1879_v50, %s2563_s6  ;;  %2017 = vrot.lane.b32.xlu1 %v2016_v51, %s2559_s28  ;;  %v2076_v7 = vrot.slane %v2385_v1, %v3177_v32  ;;  %v2380_v8 = vld.sshfl [vmem:[#allocation4 + $0x7] sm:$0x1 pattern:$0x75316420] }
 0x3e6   : > { %v2386_v10 = vld.sshfl [vmem:[#allocation4 + $0xe] sm:$0x1 pattern:$0x75316420]  ;;  %v1971_v13 = vrot.slane %v2380_v8, %v3177_v32 }
 0x3e7   : > { %v2096_v14 = vrot.slane %v2386_v10, %v3177_v32  ;;  %v2387_v16 = vld.sshfl [vmem:[#allocation4 + $0xf] sm:$0x1 pattern:$0x75316420] }
 0x3e8   : > { %v2116_v17 = vrot.slane %v2387_v16, %v3177_v32 }
 0x3e9   : > { %1903 = vrot.lane.b32.xlu0 %v1902_v56, %s2571_s25  ;;  %2037 = vrot.lane.b32.xlu1 %v2036_v57, %s2563_s6 }
 0x3ed   : > { %1926 = vrot.lane.b32.xlu0 %v1925_v63, %s2573_s29  ;;  %2057 = vrot.lane.b32.xlu1 %v2056_v0, %s2571_s25 }
 0x3f1   : > { %1949 = vrot.lane.b32.xlu0 %v1948_v6, %s2568_s20  ;;  %2077 = vrot.lane.b32.xlu1 %v2076_v7, %s2573_s29  ;;  %s193_s29 = scalar_lea.vmem %s3351_s4, %s3375_s16 }
 0x3f5   : > { %1972 = vrot.lane.b32.xlu0 %v1971_v13, %s2570_s23  ;;  %2097 = vrot.lane.b32.xlu1 %v2096_v14, %s2568_s20 }
 0x3f9   : > { %2117 = vrot.lane.b32.xlu1 %v2116_v17, %s2570_s23 }
 0x44f   : > { %v1835_v20 = vpop.permute.xlu0 %1834 }
 0x450   : > { %1840 = vst.msk [vmem:[#allocation7] sm:$0x1] %vm1839_vm3, %v1835_v20 }
 0x453   : > { %v1858_v24 = vpop.permute.xlu0 %1857  ;;  %v1998_v25 = vpop.permute.xlu1 %1997 }
 0x454   : > { %1863 = vst.msk [vmem:[#allocation7] sm:$0x1] %vm1862_vm9, %v1858_v24 }
 0x455   : > { %2000 = vst.msk [vmem:[#allocation7 + $0x1] sm:$0x1] %vm1839_vm3, %v1998_v25  ;;  %vm1975_vm3 = vcmp.ge.s32.totalorder %v1813_v22, 112 }
 0x456   : > { %vm1977_vm8 = vmand %vm1975_vm3, %vm1976_vm7 }
 0x457   : > { %v1881_v11 = vpop.permute.xlu0 %1880  ;;  %v2018_v27 = vpop.permute.xlu1 %2017 }
 0x458   : > { %1886 = vst.msk [vmem:[#allocation7] sm:$0x1] %vm1885_vm12, %v1881_v11 }
 0x459   : > { %2020 = vst.msk [vmem:[#allocation7 + $0x1] sm:$0x1] %vm1862_vm9, %v2018_v27  ;;  %vm2303_vm9 = vcmask 0  }
 0x45b   : > { %v1904_v31 = vpop.permute.xlu0 %1903  ;;  %v2038_v32 = vpop.permute.xlu1 %2037 }
 0x45c   : > { %1909 = vst.msk [vmem:[#allocation7] sm:$0x1] %vm1908_vm4, %v1904_v31 }
 0x45d   : > { %2040 = vst.msk [vmem:[#allocation7 + $0x1] sm:$0x1] %vm1885_vm12, %v2038_v32 }
 0x45f   : > { %v1927_v35 = vpop.permute.xlu0 %1926  ;;  %v2058_v36 = vpop.permute.xlu1 %2057 }
 0x460   : > { %1932 = vst.msk [vmem:[#allocation7] sm:$0x1] %vm1931_vm15, %v1927_v35 }
 0x461   : > { %2060 = vst.msk [vmem:[#allocation7 + $0x1] sm:$0x1] %vm1908_vm4, %v2058_v36 }
 0x463   : > { %v1950_v37 = vpop.permute.xlu0 %1949  ;;  %v2078_v38 = vpop.permute.xlu1 %2077 }
 0x464   : > { %1955 = vst.msk [vmem:[#allocation7] sm:$0x1] %vm1954_vm2, %v1950_v37 }
 0x465   : > { %2080 = vst.msk [vmem:[#allocation7 + $0x1] sm:$0x1] %vm1931_vm15, %v2078_v38 }
 0x467   : > { %v1973_v39 = vpop.permute.xlu0 %1972  ;;  %v2098_v40 = vpop.permute.xlu1 %2097 }
 0x468   : > { %1978 = vst.msk [vmem:[#allocation7] sm:$0x1] %vm1977_vm8, %v1973_v39 }
 0x469   : > { %2100 = vst.msk [vmem:[#allocation7 + $0x1] sm:$0x1] %vm1954_vm2, %v2098_v40 }
 0x46b   : > { %v2118_v43 = vpop.permute.xlu1 %2117 }
 0x46c   : > { %2120 = vst.msk [vmem:[#allocation7 + $0x1] sm:$0x1] %vm1977_vm8, %v2118_v43 }
 0x473   : > { %v2121_v44 = vld [vmem:[#allocation7] sm:$0x3] }
 0x474   : > { %v2126_v45 = vrot.slane %v2121_v44, %v2125_v41  ;;  %v2130_v46 = vrot.slane %v2121_v44, %v2129_v42 }
 0x476   : > { %v2133_v22 = vpack.c.bf16 %v2126_v45, %v2126_v45  ;;  %v2134_v47 = vpack.c.bf16 %v2130_v46, %v2130_v46 }
 0x478   : > { %2295 = vmatprep.mubr.bf16.mxu0 %v2134_v47 }
 0x479   : > { %2296 = vmatmul.mubr.bf16.vlgmr.msra.gmra.mxu0 %v2133_v22 }
 0x539   : > { %v2439_v48 = vpop.f32.mrf.mxu0 }
 0x53b   : > { %v2440_v49 = vpop.f32.mrf.mxu0 }
 0x53c   : > { %v2441_v50 = vadd.f32 %v2440_v49, %v2439_v48 }
 0x53d   : > { %v2442_v51 = vpop.f32.mrf.mxu0 }
 0x53e   : > { %2304 = vst.msk [vmem:[%s193_s29] sm:$0x1] %vm2303_vm9, %v2441_v50 }
 0x53f   : > { %v2443_v52 = vpop.f32.mrf.mxu0 }
 0x540 PF: > { %s14_s15 = sadd.s32 1, %s2550_s15  }
 0x541   : > { %p11_p4 = scmp.ge.s32.totalorder %s14_s15, 4  }
 0x543   :  { %13 = sbr.rel (!%p11_p4) target bundleno = 1 (0x1), region = 176 }

</bundles_post_ra>
